<compile_context>
chip_gen: v7x
topology: tpu7x:2x2x1
jax: 0.10.0
libtpu: 0.0.40
codegen_flags: <defaults>
</compile_context>

<pallas_src>
import functools
import math

import numpy as np

import jax
import jax.numpy as jnp
from jax.experimental import pallas as pl
from jax.experimental.pallas import tpu as pltpu


# ----------------------------------------------------------------------------
# Host-side helpers replicating the PyTorch module's size arithmetic
# ----------------------------------------------------------------------------
def smaller_or_divisible(num):
    return np.vectorize(lambda x: x if x < num else num * round(x / num))


def divisible_blocksizes_numattnheads(sizes, num_attnheads):
    sizes = smaller_or_divisible(num_attnheads)(sizes).astype(int)
    nums = np.where(sizes[:-1] > num_attnheads, num_attnheads, 1)
    return sizes, nums


def sinusoidal_pe(max_len, d_model):
    """Standard sinusoidal positional encoding, shape [max_len, d_model]."""
    pe = np.zeros((max_len, d_model), dtype=np.float64)
    position = np.arange(max_len, dtype=np.float64)[:, None]
    div_term = np.exp(np.arange(0, d_model, 2, dtype=np.float64)
                      * (-np.log(10000.0) / d_model))
    pe[:, 0::2] = np.sin(position * div_term)
    pe[:, 1::2] = np.cos(position * div_term)[:, : d_model // 2]
    return pe.astype(np.float32)


def irfft_matrix(n):
    """Real matrix F with data[..., t] = sum_f F[t, f] * packed_freq[..., f].

    Matches from_frequency_domain: even n: X[0]=a0, X[k]=a_{2k-1}+i*a_{2k}
    (k=1..n/2-1), X[n/2]=a_{n-1}; odd n: X[0]=a0, X[k]=a_{2k-1}+i*a_{2k}
    (k=1..(n-1)/2); followed by torch.fft.irfft(X, n=n, norm='ortho').
    """
    F = np.zeros((n, n), dtype=np.float64)
    t = np.arange(n, dtype=np.float64)
    scale = 1.0 / np.sqrt(n)
    F[:, 0] = scale
    if n % 2 == 0:
        kmax = n // 2 - 1
        F[:, n - 1] = scale * ((-1.0) ** np.arange(n))
    else:
        kmax = (n - 1) // 2
    for k in range(1, kmax + 1):
        ang = 2.0 * np.pi * k * t / n
        F[:, 2 * k - 1] = 2.0 * scale * np.cos(ang)
        F[:, 2 * k] = -2.0 * scale * np.sin(ang)
    return F.astype(np.float32)


def _cdiv(a, b):
    return -(-a // b)


# ----------------------------------------------------------------------------
# In-kernel helpers
# ----------------------------------------------------------------------------
def _layernorm(h, w, b, eps=1e-5):
    mu = jnp.mean(h, axis=-1, keepdims=True)
    var = jnp.mean((h - mu) ** 2, axis=-1, keepdims=True)
    return (h - mu) * jax.lax.rsqrt(var + eps) * w + b


# ----------------------------------------------------------------------------
# Fused decoder-block kernel: PE add + num_layers transformer layers + convT
# (for the last block the irfft is already folded into the conv weights).
# Rows of x/h are position-major within the grid block: row = s*tb + t.
# ----------------------------------------------------------------------------
def decoder_block_kernel(x_ref, pe_ref, mask_ref,
                         wq_ref, wk_ref, wv_ref, bq_ref, bk_ref, bv_ref,
                         wo_ref, bo_ref, ln1w_ref, ln1b_ref,
                         w1_ref, b1_ref, w2_ref, b2_ref, ln2w_ref, ln2b_ref,
                         convw_ref, convb_ref, o_ref,
                         *, nhead, num_layers, tb, seq):
    N, D = x_ref.shape                  # N = tb * seq
    H = nhead
    mmdt = wq_ref.dtype                 # matmul operand dtype (bf16 by default)
    f32 = jnp.float32

    h = x_ref[...] + pe_ref[...]        # [N, D] f32 (PE pre-tiled to N rows)

    if seq > 1:
        # additive block-diagonal mask: 0 within a batch element, -1e30 across
        # elements -> batch elements folded into the row dim never mix in attention.
        mask = mask_ref[...]            # [N, N] f32

    for l in range(num_layers):         # static unroll (small layer count)
        hm = h.astype(mmdt)
        hb = jnp.broadcast_to(hm[None], (H, N, D))          # heads = batched dim

        v = jnp.einsum('hnd,hde->hne', hb, wv_ref[l],
                       preferred_element_type=f32) + bv_ref[l]
        if seq == 1:
            ctx = v                      # softmax over a single key = identity
        else:
            q = jnp.einsum('hnd,hde->hne', hb, wq_ref[l],
                           preferred_element_type=f32) + bq_ref[l]
            k = jnp.einsum('hnd,hde->hne', hb, wk_ref[l],
                           preferred_element_type=f32) + bk_ref[l]
            s_att = jnp.einsum('hqe,hke->hqk', q.astype(mmdt), k.astype(mmdt),
                               preferred_element_type=f32)
            s_att = s_att + mask[None]
            s_att = s_att - jnp.max(s_att, axis=-1, keepdims=True)
            p = jnp.exp(s_att)
            p = p * pl.reciprocal(jnp.sum(p, axis=-1, keepdims=True), approx=True)
            ctx = jnp.einsum('hqk,hke->hqe', p.astype(mmdt), v.astype(mmdt),
                             preferred_element_type=f32)

        # head merge folded into the (per-head) output projection + sum over heads
        outh = jnp.einsum('hne,hef->hnf', ctx.astype(mmdt), wo_ref[l],
                          preferred_element_type=f32)        # [H, N, D]
        attn = jnp.sum(outh, axis=0) + bo_ref[l]             # [N, D]

        # post-norm TransformerEncoderLayer (norm_first=False), dropout = identity
        h = _layernorm(h + attn, ln1w_ref[l], ln1b_ref[l])
        f = jnp.maximum(jnp.dot(h.astype(mmdt), w1_ref[l],
                                preferred_element_type=f32) + b1_ref[l], 0.0)
        f2 = jnp.dot(f.astype(mmdt), w2_ref[l],
                     preferred_element_type=f32) + b2_ref[l]
        h = _layernorm(h + f2, ln2w_ref[l], ln2b_ref[l])

    # ConvTranspose1d (+ irfft fold for the last block) as ONE matmul:
    # hc[t, s*D + ci] = h[s*tb + t, ci]; rows for fixed s are contiguous because
    # h is position-major, so this is a lane-axis concat of aligned row blocks.
    if seq == 1:
        hc = h.astype(mmdt)                                   # [tb, D]
    else:
        hc = jnp.concatenate([h[s * tb:(s + 1) * tb, :] for s in range(seq)],
                             axis=-1).astype(mmdt)            # [tb, seq*D]
    y = jnp.dot(hc, convw_ref[...], preferred_element_type=f32) + convb_ref[...]
    o_ref[...] = y                                            # [tb, Fout_pad], lane-dense


# ----------------------------------------------------------------------------
# Wrapper: batch folding, layout plumbing, BlockSpecs
# ----------------------------------------------------------------------------
_W_KEYS = ('wq', 'wk', 'wv', 'bq', 'bk', 'bv', 'wo', 'bo',
           'ln1w', 'ln1b', 'w1', 'b1', 'w2', 'b2', 'ln2w', 'ln2b',
           'convW', 'convb')


def _choose_tb(batch, seq, target_rows=256):
    """Pick batch-fold TB: N = TB*seq ~ target MXU rows, >=2 grid steps if possible."""
    tb = max(1, min(batch, _cdiv(target_rows, seq)))
    if batch >= 2 and _cdiv(batch, tb) < 2:      # keep >=2 steps (v7x dual TC)
        tb = _cdiv(batch, 2)
    if tb >= 8:                                   # sublane-align the row blocks
        tb = (tb // 8) * 8
    return tb


def _run_block(x, blk):
    # x: [B, S, D] f32, channels-last
    B, S, D = int(x.shape[0]), blk['S'], blk['D']
    TB = _choose_tb(B, S)
    G = _cdiv(B, TB)
    B_pad = G * TB
    if B_pad != B:
        x = jnp.pad(x, ((0, B_pad - B), (0, 0), (0, 0)))
    N = S * TB
    Fout_pad = int(blk['convW'].shape[-1])

    # position-major rows within each grid block: row = s*TB + t_local
    x_pm = x.reshape(G, TB, S, D).transpose(0, 2, 1, 3).reshape(G, N, D)
    pe_rep = jnp.repeat(blk['pe'], TB, axis=0)                       # [N, D]
    bid = jnp.arange(N, dtype=jnp.int32) % TB                        # batch id of row
    mask = jnp.where(bid[:, None] == bid[None, :], 0.0, -1e30).astype(jnp.float32)

    weights = tuple(blk[k] for k in _W_KEYS)

    in_specs = [pl.BlockSpec((None, N, D), lambda g: (g, 0, 0))]
    for arr in (pe_rep, mask) + weights:
        # full-array blocks with constant index maps: fetched once, stay resident
        in_specs.append(pl.BlockSpec(arr.shape, lambda g, _nd=arr.ndim: (0,) * _nd))

    # VMEM budget (weights are double-buffered by the default pipeliner).
    weight_bytes = sum(int(a.size) * a.dtype.itemsize for a in (pe_rep, mask) + weights)
    io_bytes = N * D * 4 + TB * Fout_pad * 4
    act_bytes = 4 * (N * blk['d_ff'] + 2 * blk['nhead'] * N * N
                     + 4 * blk['nhead'] * N * D + 4 * N * D + 2 * TB * Fout_pad)
    vmem_limit = int(min(max(2 * (weight_bytes + io_bytes) + act_bytes + (8 << 20),
                             32 << 20), 64 << 20))

    # Advisory cost estimate for XLA's scheduler.
    L, H, dff = blk['num_layers'], blk['nhead'], blk['d_ff']
    dh = D // H
    proj = (3 if S > 1 else 1) * 2 * N * D * D
    attn_fl = (4 * H * N * N * dh) if S > 1 else 0
    flops_layer = proj + 2 * N * D * D + 4 * N * D * dff + attn_fl
    flops = G * (L * flops_layer + 2 * TB * (S * D) * Fout_pad)
    trans = G * L * H * N * N if S > 1 else 0
    cost = pl.CostEstimate(flops=int(flops), transcendentals=int(trans),
                           bytes_accessed=int(x_pm.size * 4 + G * TB * Fout_pad * 4
                                              + weight_bytes))

    kern = functools.partial(decoder_block_kernel, nhead=H, num_layers=L,
                             tb=TB, seq=S)
    y = pl.pallas_call(
        kern,
        out_shape=jax.ShapeDtypeStruct((G, TB, Fout_pad), jnp.float32),
        grid=(G,),
        in_specs=in_specs,
        out_specs=pl.BlockSpec((None, TB, Fout_pad), lambda g: (g, 0, 0)),
        compiler_params=pltpu.CompilerParams(
            dimension_semantics=("parallel",),
            vmem_limit_bytes=vmem_limit),
        cost_estimate=cost,
    )(x_pm, pe_rep, mask, *weights)

    y = y.reshape(B_pad, Fout_pad)[:B, :blk['fout']]
    # time-major [B, L_out, d_out] for intermediate blocks; [B, num_vars, num_steps]
    # (the final PyTorch layout) for the last block -- both are plain reshapes.
    return y.reshape(B, blk['out_rows'], blk['out_cols'])


# ----------------------------------------------------------------------------
# Parameters (deterministic synthetic init) + forward
# ----------------------------------------------------------------------------
def init_params(key, dim_latent, num_vars, num_steps,
                num_blocks=4, num_attnlayers=3, num_attnheads=8,
                d_ff=2048, matmul_dtype=jnp.bfloat16):
    sizes_vars = np.around(np.logspace(np.log10(dim_latent), np.log10(num_vars),
                                       num_blocks + 1)).astype(int)
    sizes_vars, nums_heads = divisible_blocksizes_numattnheads(sizes_vars,
                                                               num_attnheads)
    sizes_feats = np.around(np.logspace(0, np.log10(num_steps),
                                        num_blocks + 1)).astype(int)
    sizes_kernel = sizes_feats[1:] - sizes_feats[:-1] + 1
    n = int(sizes_feats[-1])
    V = int(sizes_vars[-1])
    F = irfft_matrix(n)                                   # [n, n]

    def w(k_, shape):
        return 0.02 * jax.random.normal(k_, shape, dtype=jnp.float32)

    blocks = []
    for i in range(num_blocks):
        d, d_out = int(sizes_vars[i]), int(sizes_vars[i + 1])
        S, L_out, K = int(sizes_feats[i]), int(sizes_feats[i + 1]), int(sizes_kernel[i])
        H = int(nums_heads[i])
        dh = d // H
        scale = 1.0 / math.sqrt(dh)
        is_last = (i == num_blocks - 1)

        wq, wk, wv, bq, bk, bv, wo, bo = [], [], [], [], [], [], [], []
        ln1w, ln1b, ln2w, ln2b = [], [], [], []
        w1, b1, w2, b2 = [], [], [], []
        for _ in range(num_attnlayers):
            key, k0, k1, k2, k3, k4, k5 = jax.random.split(key, 7)
            # Per-head x@W convention.  Mapping from real PyTorch weights:
            #   wq[h] = in_proj_weight[h*dh:(h+1)*dh, :].T * (1/sqrt(dh))
            #   wk[h] = in_proj_weight[d + h*dh : d+(h+1)*dh, :].T   (similar for wv)
            #   wo[h] = out_proj.weight.T[h*dh:(h+1)*dh, :]
            wq.append(w(k0, (H, d, dh)) * scale)          # attn scale folded in
            wk.append(w(k1, (H, d, dh)))
            wv.append(w(k2, (H, d, dh)))
            bq.append(jnp.zeros((H, 1, dh), jnp.float32))
            bk.append(jnp.zeros((H, 1, dh), jnp.float32))
            bv.append(jnp.zeros((H, 1, dh), jnp.float32))
            wo.append(w(k3, (H, dh, d)))
            bo.append(jnp.zeros((1, d), jnp.float32))
            ln1w.append(jnp.ones((1, d), jnp.float32))
            ln1b.append(jnp.zeros((1, d), jnp.float32))
            w1.append(w(k4, (d, d_ff)))
            b1.append(jnp.zeros((1, d_ff), jnp.float32))
            w2.append(w(k5, (d_ff, d)))
            b2.append(jnp.zeros((1, d), jnp.float32))
            ln2w.append(jnp.ones((1, d), jnp.float32))
            ln2b.append(jnp.zeros((1, d), jnp.float32))

        key, kc, kb = jax.random.split(key, 3)
        # TODO(synk): when loading real PyTorch ConvTranspose1d weights
        # ([C_in, C_out, K]) permute them to [K, C_in, C_out] first.
        conv_w = np.asarray(w(kc, (K, d, d_out)))
        conv_b = np.asarray(w(kb, (d_out,)))

        if not is_last:
            # Toeplitz, flattened: Wc[s*d+ci, t*d_out+co] = conv_w[t-s, ci, co]
            Fout = L_out * d_out
            Wc = np.zeros((S, d, L_out, d_out), np.float32)
            for s in range(S):
                Wc[s, :, s:s + K, :] = np.transpose(conv_w, (1, 0, 2))
            Wc = Wc.reshape(S * d, Fout)
            bc = np.tile(conv_b, L_out)
            out_rows, out_cols = L_out, d_out
        else:
            # fold irfft (norm='ortho') into the last conv:
            #   Wc[s*d+ci, v*n+t'] = sum_k conv_w[k, ci, v] * F[t', s+k]
            #   bc[v*n+t']         = conv_b[v] * sum_f F[t', f]
            Fout = d_out * n
            Wc = np.zeros((S, d, d_out, n), np.float32)
            for s in range(S):
                Fk = F[:, s:s + K]                           # [n, K]
                Wc[s] = np.einsum('kcv,tk->cvt', conv_w, Fk)
            Wc = Wc.reshape(S * d, Fout)
            bc = np.kron(conv_b, F.sum(axis=1)).astype(np.float32)
            out_rows, out_cols = d_out, n                    # final [B, V, n]

        Fout_pad = _cdiv(Fout, 128) * 128                    # lane-dense output store
        Wc_pad = np.zeros((S * d, Fout_pad), np.float32)
        Wc_pad[:, :Fout] = Wc
        bc_pad = np.zeros((1, Fout_pad), np.float32)
        bc_pad[0, :Fout] = bc

        blocks.append(dict(
            S=S, D=d, nhead=H, num_layers=num_attnlayers, d_ff=d_ff,
            fout=Fout, out_rows=out_rows, out_cols=out_cols,
            pe=jnp.asarray(sinusoidal_pe(S, d)),
            wq=jnp.stack(wq).astype(matmul_dtype),
            wk=jnp.stack(wk).astype(matmul_dtype),
            wv=jnp.stack(wv).astype(matmul_dtype),
            bq=jnp.stack(bq), bk=jnp.stack(bk), bv=jnp.stack(bv),
            wo=jnp.stack(wo).astype(matmul_dtype), bo=jnp.stack(bo),
            ln1w=jnp.stack(ln1w), ln1b=jnp.stack(ln1b),
            w1=jnp.stack(w1).astype(matmul_dtype), b1=jnp.stack(b1),
            w2=jnp.stack(w2).astype(matmul_dtype), b2=jnp.stack(b2),
            ln2w=jnp.stack(ln2w), ln2b=jnp.stack(ln2b),
            convW=jnp.asarray(Wc_pad).astype(matmul_dtype),
            convb=jnp.asarray(bc_pad),
        ))
    return dict(blocks=blocks, num_steps=n, num_vars=V)


def freq_attn_decoder_forward(latent, params):
    # latent: [B, dim_latent]  ->  output: [B, num_vars, num_steps] (PyTorch layout)
    x = latent[:, None, :].astype(jnp.float32)   # channels-last [B, 1, dim_latent]
    for blk in params['blocks']:
        x = _run_block(x, blk)
    return x


# ----------------------------------------------------------------------------
if __name__ == "__main__":
    key = jax.random.PRNGKey(0)
    pkey, xkey = jax.random.split(key)

    batch = 2
    dim_latent, num_vars, num_steps = 32, 4, 16
    params = init_params(pkey, dim_latent, num_vars, num_steps,
                         num_blocks=2, num_attnlayers=2, num_attnheads=8)

    latent = jax.random.normal(xkey, (batch, dim_latent), dtype=jnp.float32)
    out = freq_attn_decoder_forward(latent, params)
    out = jax.block_until_ready(out)

    assert out.shape == (batch, num_vars, num_steps), out.shape
    assert bool(jnp.all(jnp.isfinite(out)))
    print("KERNEL_OK")
</pallas_src>

<mosaic_0001>
module attributes {stable_mosaic.version = 11 : i64} {
  func.func @decoder_block_kernel(%arg0: i32, %arg1: memref<1x1x32xf32, #tpu.memory_space<vmem>>, %arg2: memref<1x32xf32, #tpu.memory_space<vmem>>, %arg3: memref<1x1xf32, #tpu.memory_space<vmem>>, %arg4: memref<2x8x32x4xbf16, #tpu.memory_space<vmem>>, %arg5: memref<2x8x32x4xbf16, #tpu.memory_space<vmem>>, %arg6: memref<2x8x32x4xbf16, #tpu.memory_space<vmem>>, %arg7: memref<2x8x1x4xf32, #tpu.memory_space<vmem>>, %arg8: memref<2x8x1x4xf32, #tpu.memory_space<vmem>>, %arg9: memref<2x8x1x4xf32, #tpu.memory_space<vmem>>, %arg10: memref<2x8x4x32xbf16, #tpu.memory_space<vmem>>, %arg11: memref<2x1x32xf32, #tpu.memory_space<vmem>>, %arg12: memref<2x1x32xf32, #tpu.memory_space<vmem>>, %arg13: memref<2x1x32xf32, #tpu.memory_space<vmem>>, %arg14: memref<2x32x2048xbf16, #tpu.memory_space<vmem>>, %arg15: memref<2x1x2048xf32, #tpu.memory_space<vmem>>, %arg16: memref<2x2048x32xbf16, #tpu.memory_space<vmem>>, %arg17: memref<2x1x32xf32, #tpu.memory_space<vmem>>, %arg18: memref<2x1x32xf32, #tpu.memory_space<vmem>>, %arg19: memref<2x1x32xf32, #tpu.memory_space<vmem>>, %arg20: memref<32x128xbf16, #tpu.memory_space<vmem>>, %arg21: memref<1x128xf32, #tpu.memory_space<vmem>>, %arg22: memref<1x1x128xf32, #tpu.memory_space<vmem>>) attributes {dimension_semantics = [#tpu.dimension_semantics<parallel>], iteration_bounds = array<i64: 2>, scalar_prefetch = 0 : i64, scratch_operands = 0 : i64, tpu.core_type = #tpu.core_type<tc>, window_params = [{transform_indices = @transform_0, window_bounds = array<i64: 1, 1, 32>}, {pipeline_mode = #tpu.pipeline_mode<synchronous>, transform_indices = @transform_1, window_bounds = array<i64: 1, 32>}, {pipeline_mode = #tpu.pipeline_mode<synchronous>, transform_indices = @transform_2, window_bounds = array<i64: 1, 1>}, {pipeline_mode = #tpu.pipeline_mode<synchronous>, transform_indices = @transform_3, window_bounds = array<i64: 2, 8, 32, 4>}, {pipeline_mode = #tpu.pipeline_mode<synchronous>, transform_indices = @transform_4, window_bounds = array<i64: 2, 8, 32, 4>}, {pipeline_mode = #tpu.pipeline_mode<synchronous>, transform_indices = @transform_5, window_bounds = array<i64: 2, 8, 32, 4>}, {pipeline_mode = #tpu.pipeline_mode<synchronous>, transform_indices = @transform_6, window_bounds = array<i64: 2, 8, 1, 4>}, {pipeline_mode = #tpu.pipeline_mode<synchronous>, transform_indices = @transform_7, window_bounds = array<i64: 2, 8, 1, 4>}, {pipeline_mode = #tpu.pipeline_mode<synchronous>, transform_indices = @transform_8, window_bounds = array<i64: 2, 8, 1, 4>}, {pipeline_mode = #tpu.pipeline_mode<synchronous>, transform_indices = @transform_9, window_bounds = array<i64: 2, 8, 4, 32>}, {pipeline_mode = #tpu.pipeline_mode<synchronous>, transform_indices = @transform_10, window_bounds = array<i64: 2, 1, 32>}, {pipeline_mode = #tpu.pipeline_mode<synchronous>, transform_indices = @transform_11, window_bounds = array<i64: 2, 1, 32>}, {pipeline_mode = #tpu.pipeline_mode<synchronous>, transform_indices = @transform_12, window_bounds = array<i64: 2, 1, 32>}, {pipeline_mode = #tpu.pipeline_mode<synchronous>, transform_indices = @transform_13, window_bounds = array<i64: 2, 32, 2048>}, {pipeline_mode = #tpu.pipeline_mode<synchronous>, transform_indices = @transform_14, window_bounds = array<i64: 2, 1, 2048>}, {pipeline_mode = #tpu.pipeline_mode<synchronous>, transform_indices = @transform_15, window_bounds = array<i64: 2, 2048, 32>}, {pipeline_mode = #tpu.pipeline_mode<synchronous>, transform_indices = @transform_16, window_bounds = array<i64: 2, 1, 32>}, {pipeline_mode = #tpu.pipeline_mode<synchronous>, transform_indices = @transform_17, window_bounds = array<i64: 2, 1, 32>}, {pipeline_mode = #tpu.pipeline_mode<synchronous>, transform_indices = @transform_18, window_bounds = array<i64: 2, 1, 32>}, {pipeline_mode = #tpu.pipeline_mode<synchronous>, transform_indices = @transform_19, window_bounds = array<i64: 32, 128>}, {pipeline_mode = #tpu.pipeline_mode<synchronous>, transform_indices = @transform_20, window_bounds = array<i64: 1, 128>}, {transform_indices = @transform_21, window_bounds = array<i64: 1, 1, 128>}]} {
    %c0 = arith.constant 0 : index
    %c0_0 = arith.constant 0 : index
    %c0_1 = arith.constant 0 : index
    %0 = vector.load %arg1[%c0, %c0_0, %c0_1] : memref<1x1x32xf32, #tpu.memory_space<vmem>>, vector<1x1x32xf32>
    %1 = vector.shape_cast %0 : vector<1x1x32xf32> to vector<1x32xf32>
    %c0_2 = arith.constant 0 : index
    %c0_3 = arith.constant 0 : index
    %2 = vector.load %arg2[%c0_2, %c0_3] : memref<1x32xf32, #tpu.memory_space<vmem>>, vector<1x32xf32>
    %3 = arith.addf %1, %2 : vector<1x32xf32>
    %4 = arith.truncf %3 : vector<1x32xf32> to vector<1x32xbf16>
    %5 = vector.shape_cast %4 : vector<1x32xbf16> to vector<1x1x32xbf16>
    %6 = vector.shape_cast %5 : vector<1x1x32xbf16> to vector<1x1x32xbf16>
    %7 = vector.broadcast %6 : vector<1x1x32xbf16> to vector<8x1x32xbf16>
    %c0_4 = arith.constant 0 : index
    %c0_5 = arith.constant 0 : index
    %c0_6 = arith.constant 0 : index
    %c0_7 = arith.constant 0 : index
    %8 = vector.load %arg6[%c0_4, %c0_5, %c0_6, %c0_7] : memref<2x8x32x4xbf16, #tpu.memory_space<vmem>>, vector<1x8x32x4xbf16>
    %9 = vector.shape_cast %8 : vector<1x8x32x4xbf16> to vector<8x32x4xbf16>
    "tpu.trace_start"() <{level = 10 : i32, message = "hnd,hde->hne"}> : () -> ()
    %cst = arith.constant dense<0.000000e+00> : vector<8x1x4xf32>
    %10 = tpu.matmul %7, %9, %cst {dimension_numbers = #tpu.dot_dimension_numbers<[2], [1], [1], [2], [0, 0, 0, 1, 1, 2], [0], [0]>} : vector<8x1x32xbf16>, vector<8x32x4xbf16>, vector<8x1x4xf32> -> vector<8x1x4xf32>
    "tpu.trace_stop"() : () -> ()
    %c0_8 = arith.constant 0 : index
    %c0_9 = arith.constant 0 : index
    %c0_10 = arith.constant 0 : index
    %c0_11 = arith.constant 0 : index
    %11 = vector.load %arg9[%c0_8, %c0_9, %c0_10, %c0_11] : memref<2x8x1x4xf32, #tpu.memory_space<vmem>>, vector<1x8x1x4xf32>
    %12 = vector.shape_cast %11 : vector<1x8x1x4xf32> to vector<8x1x4xf32>
    %13 = arith.addf %10, %12 : vector<8x1x4xf32>
    %14 = arith.truncf %13 : vector<8x1x4xf32> to vector<8x1x4xbf16>
    %c0_12 = arith.constant 0 : index
    %c0_13 = arith.constant 0 : index
    %c0_14 = arith.constant 0 : index
    %c0_15 = arith.constant 0 : index
    %15 = vector.load %arg10[%c0_12, %c0_13, %c0_14, %c0_15] : memref<2x8x4x32xbf16, #tpu.memory_space<vmem>>, vector<1x8x4x32xbf16>
    %16 = vector.shape_cast %15 : vector<1x8x4x32xbf16> to vector<8x4x32xbf16>
    "tpu.trace_start"() <{level = 10 : i32, message = "hne,hef->hnf"}> : () -> ()
    %cst_16 = arith.constant dense<0.000000e+00> : vector<8x1x32xf32>
    %17 = tpu.matmul %14, %16, %cst_16 {dimension_numbers = #tpu.dot_dimension_numbers<[2], [1], [1], [2], [0, 0, 0, 1, 1, 2], [0], [0]>} : vector<8x1x4xbf16>, vector<8x4x32xbf16>, vector<8x1x32xf32> -> vector<8x1x32xf32>
    "tpu.trace_stop"() : () -> ()
    %cst_17 = arith.constant dense<0.000000e+00> : vector<1x32xf32>
    %18 = vector.multi_reduction <add>, %17, %cst_17 [0] : vector<8x1x32xf32> to vector<1x32xf32>
    %c0_18 = arith.constant 0 : index
    %c0_19 = arith.constant 0 : index
    %c0_20 = arith.constant 0 : index
    %19 = vector.load %arg11[%c0_18, %c0_19, %c0_20] : memref<2x1x32xf32, #tpu.memory_space<vmem>>, vector<1x1x32xf32>
    %20 = vector.shape_cast %19 : vector<1x1x32xf32> to vector<1x32xf32>
    %21 = arith.addf %18, %20 : vector<1x32xf32>
    %22 = arith.addf %3, %21 : vector<1x32xf32>
    %c0_21 = arith.constant 0 : index
    %c0_22 = arith.constant 0 : index
    %c0_23 = arith.constant 0 : index
    %23 = vector.load %arg12[%c0_21, %c0_22, %c0_23] : memref<2x1x32xf32, #tpu.memory_space<vmem>>, vector<1x1x32xf32>
    %24 = vector.shape_cast %23 : vector<1x1x32xf32> to vector<1x32xf32>
    %c0_24 = arith.constant 0 : index
    %c0_25 = arith.constant 0 : index
    %c0_26 = arith.constant 0 : index
    %25 = vector.load %arg13[%c0_24, %c0_25, %c0_26] : memref<2x1x32xf32, #tpu.memory_space<vmem>>, vector<1x1x32xf32>
    %26 = vector.shape_cast %25 : vector<1x1x32xf32> to vector<1x32xf32>
    %cst_27 = arith.constant dense<0.000000e+00> : vector<1xf32>
    %27 = vector.multi_reduction <add>, %22, %cst_27 [1] : vector<1x32xf32> to vector<1xf32>
    %28 = vector.shape_cast %27 : vector<1xf32> to vector<1x1xf32>
    %cst_28 = arith.constant 3.200000e+01 : f32
    %29 = vector.broadcast %cst_28 : f32 to vector<1x1xf32>
    %30 = arith.divf %28, %29 : vector<1x1xf32>
    %31 = vector.broadcast %30 : vector<1x1xf32> to vector<1x32xf32>
    %32 = arith.subf %22, %31 : vector<1x32xf32>
    %33 = arith.mulf %32, %32 : vector<1x32xf32>
    %cst_29 = arith.constant dense<0.000000e+00> : vector<1xf32>
    %34 = vector.multi_reduction <add>, %33, %cst_29 [1] : vector<1x32xf32> to vector<1xf32>
    %35 = vector.shape_cast %34 : vector<1xf32> to vector<1x1xf32>
    %cst_30 = arith.constant 3.200000e+01 : f32
    %36 = vector.broadcast %cst_30 : f32 to vector<1x1xf32>
    %37 = arith.divf %35, %36 : vector<1x1xf32>
    %38 = vector.broadcast %30 : vector<1x1xf32> to vector<1x32xf32>
    %39 = arith.subf %22, %38 : vector<1x32xf32>
    %cst_31 = arith.constant 9.99999974E-6 : f32
    %40 = vector.broadcast %cst_31 : f32 to vector<1x1xf32>
    %41 = arith.addf %37, %40 : vector<1x1xf32>
    %42 = math.rsqrt %41 : vector<1x1xf32>
    %43 = vector.broadcast %42 : vector<1x1xf32> to vector<1x32xf32>
    %44 = arith.mulf %39, %43 : vector<1x32xf32>
    %45 = arith.mulf %44, %24 : vector<1x32xf32>
    %46 = arith.addf %45, %26 : vector<1x32xf32>
    %47 = arith.truncf %46 : vector<1x32xf32> to vector<1x32xbf16>
    %c0_32 = arith.constant 0 : index
    %c0_33 = arith.constant 0 : index
    %c0_34 = arith.constant 0 : index
    %48 = vector.load %arg14[%c0_32, %c0_33, %c0_34] : memref<2x32x2048xbf16, #tpu.memory_space<vmem>>, vector<1x32x2048xbf16>
    %49 = vector.shape_cast %48 : vector<1x32x2048xbf16> to vector<32x2048xbf16>
    %cst_35 = arith.constant dense<0.000000e+00> : vector<1x2048xf32>
    %50 = tpu.matmul %47, %49, %cst_35 {dimension_numbers = #tpu.dot_dimension_numbers<[1], [0], [0], [1], [0, 0, 1, 1], [], []>} : vector<1x32xbf16>, vector<32x2048xbf16>, vector<1x2048xf32> -> vector<1x2048xf32>
    %c0_36 = arith.constant 0 : index
    %c0_37 = arith.constant 0 : index
    %c0_38 = arith.constant 0 : index
    %51 = vector.load %arg15[%c0_36, %c0_37, %c0_38] : memref<2x1x2048xf32, #tpu.memory_space<vmem>>, vector<1x1x2048xf32>
    %52 = vector.shape_cast %51 : vector<1x1x2048xf32> to vector<1x2048xf32>
    %53 = arith.addf %50, %52 : vector<1x2048xf32>
    %cst_39 = arith.constant 0.000000e+00 : f32
    %54 = vector.broadcast %cst_39 : f32 to vector<1x2048xf32>
    %55 = arith.maximumf %53, %54 : vector<1x2048xf32>
    %56 = arith.truncf %55 : vector<1x2048xf32> to vector<1x2048xbf16>
    %c0_40 = arith.constant 0 : index
    %c0_41 = arith.constant 0 : index
    %c0_42 = arith.constant 0 : index
    %57 = vector.load %arg16[%c0_40, %c0_41, %c0_42] : memref<2x2048x32xbf16, #tpu.memory_space<vmem>>, vector<1x2048x32xbf16>
    %58 = vector.shape_cast %57 : vector<1x2048x32xbf16> to vector<2048x32xbf16>
    %cst_43 = arith.constant dense<0.000000e+00> : vector<1x32xf32>
    %59 = tpu.matmul %56, %58, %cst_43 {dimension_numbers = #tpu.dot_dimension_numbers<[1], [0], [0], [1], [0, 0, 1, 1], [], []>} : vector<1x2048xbf16>, vector<2048x32xbf16>, vector<1x32xf32> -> vector<1x32xf32>
    %c0_44 = arith.constant 0 : index
    %c0_45 = arith.constant 0 : index
    %c0_46 = arith.constant 0 : index
    %60 = vector.load %arg17[%c0_44, %c0_45, %c0_46] : memref<2x1x32xf32, #tpu.memory_space<vmem>>, vector<1x1x32xf32>
    %61 = vector.shape_cast %60 : vector<1x1x32xf32> to vector<1x32xf32>
    %62 = arith.addf %59, %61 : vector<1x32xf32>
    %63 = arith.addf %46, %62 : vector<1x32xf32>
    %c0_47 = arith.constant 0 : index
    %c0_48 = arith.constant 0 : index
    %c0_49 = arith.constant 0 : index
    %64 = vector.load %arg18[%c0_47, %c0_48, %c0_49] : memref<2x1x32xf32, #tpu.memory_space<vmem>>, vector<1x1x32xf32>
    %65 = vector.shape_cast %64 : vector<1x1x32xf32> to vector<1x32xf32>
    %c0_50 = arith.constant 0 : index
    %c0_51 = arith.constant 0 : index
    %c0_52 = arith.constant 0 : index
    %66 = vector.load %arg19[%c0_50, %c0_51, %c0_52] : memref<2x1x32xf32, #tpu.memory_space<vmem>>, vector<1x1x32xf32>
    %67 = vector.shape_cast %66 : vector<1x1x32xf32> to vector<1x32xf32>
    %cst_53 = arith.constant dense<0.000000e+00> : vector<1xf32>
    %68 = vector.multi_reduction <add>, %63, %cst_53 [1] : vector<1x32xf32> to vector<1xf32>
    %69 = vector.shape_cast %68 : vector<1xf32> to vector<1x1xf32>
    %cst_54 = arith.constant 3.200000e+01 : f32
    %70 = vector.broadcast %cst_54 : f32 to vector<1x1xf32>
    %71 = arith.divf %69, %70 : vector<1x1xf32>
    %72 = vector.broadcast %71 : vector<1x1xf32> to vector<1x32xf32>
    %73 = arith.subf %63, %72 : vector<1x32xf32>
    %74 = arith.mulf %73, %73 : vector<1x32xf32>
    %cst_55 = arith.constant dense<0.000000e+00> : vector<1xf32>
    %75 = vector.multi_reduction <add>, %74, %cst_55 [1] : vector<1x32xf32> to vector<1xf32>
    %76 = vector.shape_cast %75 : vector<1xf32> to vector<1x1xf32>
    %cst_56 = arith.constant 3.200000e+01 : f32
    %77 = vector.broadcast %cst_56 : f32 to vector<1x1xf32>
    %78 = arith.divf %76, %77 : vector<1x1xf32>
    %79 = vector.broadcast %71 : vector<1x1xf32> to vector<1x32xf32>
    %80 = arith.subf %63, %79 : vector<1x32xf32>
    %cst_57 = arith.constant 9.99999974E-6 : f32
    %81 = vector.broadcast %cst_57 : f32 to vector<1x1xf32>
    %82 = arith.addf %78, %81 : vector<1x1xf32>
    %83 = math.rsqrt %82 : vector<1x1xf32>
    %84 = vector.broadcast %83 : vector<1x1xf32> to vector<1x32xf32>
    %85 = arith.mulf %80, %84 : vector<1x32xf32>
    %86 = arith.mulf %85, %65 : vector<1x32xf32>
    %87 = arith.addf %86, %67 : vector<1x32xf32>
    %88 = arith.truncf %87 : vector<1x32xf32> to vector<1x32xbf16>
    %89 = vector.shape_cast %88 : vector<1x32xbf16> to vector<1x1x32xbf16>
    %90 = vector.shape_cast %89 : vector<1x1x32xbf16> to vector<1x1x32xbf16>
    %91 = vector.broadcast %90 : vector<1x1x32xbf16> to vector<8x1x32xbf16>
    %c1 = arith.constant 1 : index
    %c0_58 = arith.constant 0 : index
    %c0_59 = arith.constant 0 : index
    %c0_60 = arith.constant 0 : index
    %92 = vector.load %arg6[%c1, %c0_58, %c0_59, %c0_60] : memref<2x8x32x4xbf16, #tpu.memory_space<vmem>>, vector<1x8x32x4xbf16>
    %93 = vector.shape_cast %92 : vector<1x8x32x4xbf16> to vector<8x32x4xbf16>
    "tpu.trace_start"() <{level = 10 : i32, message = "hnd,hde->hne"}> : () -> ()
    %cst_61 = arith.constant dense<0.000000e+00> : vector<8x1x4xf32>
    %94 = tpu.matmul %91, %93, %cst_61 {dimension_numbers = #tpu.dot_dimension_numbers<[2], [1], [1], [2], [0, 0, 0, 1, 1, 2], [0], [0]>} : vector<8x1x32xbf16>, vector<8x32x4xbf16>, vector<8x1x4xf32> -> vector<8x1x4xf32>
    "tpu.trace_stop"() : () -> ()
    %c1_62 = arith.constant 1 : index
    %c0_63 = arith.constant 0 : index
    %c0_64 = arith.constant 0 : index
    %c0_65 = arith.constant 0 : index
    %95 = vector.load %arg9[%c1_62, %c0_63, %c0_64, %c0_65] : memref<2x8x1x4xf32, #tpu.memory_space<vmem>>, vector<1x8x1x4xf32>
    %96 = vector.shape_cast %95 : vector<1x8x1x4xf32> to vector<8x1x4xf32>
    %97 = arith.addf %94, %96 : vector<8x1x4xf32>
    %98 = arith.truncf %97 : vector<8x1x4xf32> to vector<8x1x4xbf16>
    %c1_66 = arith.constant 1 : index
    %c0_67 = arith.constant 0 : index
    %c0_68 = arith.constant 0 : index
    %c0_69 = arith.constant 0 : index
    %99 = vector.load %arg10[%c1_66, %c0_67, %c0_68, %c0_69] : memref<2x8x4x32xbf16, #tpu.memory_space<vmem>>, vector<1x8x4x32xbf16>
    %100 = vector.shape_cast %99 : vector<1x8x4x32xbf16> to vector<8x4x32xbf16>
    "tpu.trace_start"() <{level = 10 : i32, message = "hne,hef->hnf"}> : () -> ()
    %cst_70 = arith.constant dense<0.000000e+00> : vector<8x1x32xf32>
    %101 = tpu.matmul %98, %100, %cst_70 {dimension_numbers = #tpu.dot_dimension_numbers<[2], [1], [1], [2], [0, 0, 0, 1, 1, 2], [0], [0]>} : vector<8x1x4xbf16>, vector<8x4x32xbf16>, vector<8x1x32xf32> -> vector<8x1x32xf32>
    "tpu.trace_stop"() : () -> ()
    %cst_71 = arith.constant dense<0.000000e+00> : vector<1x32xf32>
    %102 = vector.multi_reduction <add>, %101, %cst_71 [0] : vector<8x1x32xf32> to vector<1x32xf32>
    %c1_72 = arith.constant 1 : index
    %c0_73 = arith.constant 0 : index
    %c0_74 = arith.constant 0 : index
    %103 = vector.load %arg11[%c1_72, %c0_73, %c0_74] : memref<2x1x32xf32, #tpu.memory_space<vmem>>, vector<1x1x32xf32>
    %104 = vector.shape_cast %103 : vector<1x1x32xf32> to vector<1x32xf32>
    %105 = arith.addf %102, %104 : vector<1x32xf32>
    %106 = arith.addf %87, %105 : vector<1x32xf32>
    %c1_75 = arith.constant 1 : index
    %c0_76 = arith.constant 0 : index
    %c0_77 = arith.constant 0 : index
    %107 = vector.load %arg12[%c1_75, %c0_76, %c0_77] : memref<2x1x32xf32, #tpu.memory_space<vmem>>, vector<1x1x32xf32>
    %108 = vector.shape_cast %107 : vector<1x1x32xf32> to vector<1x32xf32>
    %c1_78 = arith.constant 1 : index
    %c0_79 = arith.constant 0 : index
    %c0_80 = arith.constant 0 : index
    %109 = vector.load %arg13[%c1_78, %c0_79, %c0_80] : memref<2x1x32xf32, #tpu.memory_space<vmem>>, vector<1x1x32xf32>
    %110 = vector.shape_cast %109 : vector<1x1x32xf32> to vector<1x32xf32>
    %cst_81 = arith.constant dense<0.000000e+00> : vector<1xf32>
    %111 = vector.multi_reduction <add>, %106, %cst_81 [1] : vector<1x32xf32> to vector<1xf32>
    %112 = vector.shape_cast %111 : vector<1xf32> to vector<1x1xf32>
    %cst_82 = arith.constant 3.200000e+01 : f32
    %113 = vector.broadcast %cst_82 : f32 to vector<1x1xf32>
    %114 = arith.divf %112, %113 : vector<1x1xf32>
    %115 = vector.broadcast %114 : vector<1x1xf32> to vector<1x32xf32>
    %116 = arith.subf %106, %115 : vector<1x32xf32>
    %117 = arith.mulf %116, %116 : vector<1x32xf32>
    %cst_83 = arith.constant dense<0.000000e+00> : vector<1xf32>
    %118 = vector.multi_reduction <add>, %117, %cst_83 [1] : vector<1x32xf32> to vector<1xf32>
    %119 = vector.shape_cast %118 : vector<1xf32> to vector<1x1xf32>
    %cst_84 = arith.constant 3.200000e+01 : f32
    %120 = vector.broadcast %cst_84 : f32 to vector<1x1xf32>
    %121 = arith.divf %119, %120 : vector<1x1xf32>
    %122 = vector.broadcast %114 : vector<1x1xf32> to vector<1x32xf32>
    %123 = arith.subf %106, %122 : vector<1x32xf32>
    %cst_85 = arith.constant 9.99999974E-6 : f32
    %124 = vector.broadcast %cst_85 : f32 to vector<1x1xf32>
    %125 = arith.addf %121, %124 : vector<1x1xf32>
    %126 = math.rsqrt %125 : vector<1x1xf32>
    %127 = vector.broadcast %126 : vector<1x1xf32> to vector<1x32xf32>
    %128 = arith.mulf %123, %127 : vector<1x32xf32>
    %129 = arith.mulf %128, %108 : vector<1x32xf32>
    %130 = arith.addf %129, %110 : vector<1x32xf32>
    %131 = arith.truncf %130 : vector<1x32xf32> to vector<1x32xbf16>
    %c1_86 = arith.constant 1 : index
    %c0_87 = arith.constant 0 : index
    %c0_88 = arith.constant 0 : index
    %132 = vector.load %arg14[%c1_86, %c0_87, %c0_88] : memref<2x32x2048xbf16, #tpu.memory_space<vmem>>, vector<1x32x2048xbf16>
    %133 = vector.shape_cast %132 : vector<1x32x2048xbf16> to vector<32x2048xbf16>
    %cst_89 = arith.constant dense<0.000000e+00> : vector<1x2048xf32>
    %134 = tpu.matmul %131, %133, %cst_89 {dimension_numbers = #tpu.dot_dimension_numbers<[1], [0], [0], [1], [0, 0, 1, 1], [], []>} : vector<1x32xbf16>, vector<32x2048xbf16>, vector<1x2048xf32> -> vector<1x2048xf32>
    %c1_90 = arith.constant 1 : index
    %c0_91 = arith.constant 0 : index
    %c0_92 = arith.constant 0 : index
    %135 = vector.load %arg15[%c1_90, %c0_91, %c0_92] : memref<2x1x2048xf32, #tpu.memory_space<vmem>>, vector<1x1x2048xf32>
    %136 = vector.shape_cast %135 : vector<1x1x2048xf32> to vector<1x2048xf32>
    %137 = arith.addf %134, %136 : vector<1x2048xf32>
    %cst_93 = arith.constant 0.000000e+00 : f32
    %138 = vector.broadcast %cst_93 : f32 to vector<1x2048xf32>
    %139 = arith.maximumf %137, %138 : vector<1x2048xf32>
    %140 = arith.truncf %139 : vector<1x2048xf32> to vector<1x2048xbf16>
    %c1_94 = arith.constant 1 : index
    %c0_95 = arith.constant 0 : index
    %c0_96 = arith.constant 0 : index
    %141 = vector.load %arg16[%c1_94, %c0_95, %c0_96] : memref<2x2048x32xbf16, #tpu.memory_space<vmem>>, vector<1x2048x32xbf16>
    %142 = vector.shape_cast %141 : vector<1x2048x32xbf16> to vector<2048x32xbf16>
    %cst_97 = arith.constant dense<0.000000e+00> : vector<1x32xf32>
    %143 = tpu.matmul %140, %142, %cst_97 {dimension_numbers = #tpu.dot_dimension_numbers<[1], [0], [0], [1], [0, 0, 1, 1], [], []>} : vector<1x2048xbf16>, vector<2048x32xbf16>, vector<1x32xf32> -> vector<1x32xf32>
    %c1_98 = arith.constant 1 : index
    %c0_99 = arith.constant 0 : index
    %c0_100 = arith.constant 0 : index
    %144 = vector.load %arg17[%c1_98, %c0_99, %c0_100] : memref<2x1x32xf32, #tpu.memory_space<vmem>>, vector<1x1x32xf32>
    %145 = vector.shape_cast %144 : vector<1x1x32xf32> to vector<1x32xf32>
    %146 = arith.addf %143, %145 : vector<1x32xf32>
    %147 = arith.addf %130, %146 : vector<1x32xf32>
    %c1_101 = arith.constant 1 : index
    %c0_102 = arith.constant 0 : index
    %c0_103 = arith.constant 0 : index
    %148 = vector.load %arg18[%c1_101, %c0_102, %c0_103] : memref<2x1x32xf32, #tpu.memory_space<vmem>>, vector<1x1x32xf32>
    %149 = vector.shape_cast %148 : vector<1x1x32xf32> to vector<1x32xf32>
    %c1_104 = arith.constant 1 : index
    %c0_105 = arith.constant 0 : index
    %c0_106 = arith.constant 0 : index
    %150 = vector.load %arg19[%c1_104, %c0_105, %c0_106] : memref<2x1x32xf32, #tpu.memory_space<vmem>>, vector<1x1x32xf32>
    %151 = vector.shape_cast %150 : vector<1x1x32xf32> to vector<1x32xf32>
    %cst_107 = arith.constant dense<0.000000e+00> : vector<1xf32>
    %152 = vector.multi_reduction <add>, %147, %cst_107 [1] : vector<1x32xf32> to vector<1xf32>
    %153 = vector.shape_cast %152 : vector<1xf32> to vector<1x1xf32>
    %cst_108 = arith.constant 3.200000e+01 : f32
    %154 = vector.broadcast %cst_108 : f32 to vector<1x1xf32>
    %155 = arith.divf %153, %154 : vector<1x1xf32>
    %156 = vector.broadcast %155 : vector<1x1xf32> to vector<1x32xf32>
    %157 = arith.subf %147, %156 : vector<1x32xf32>
    %158 = arith.mulf %157, %157 : vector<1x32xf32>
    %cst_109 = arith.constant dense<0.000000e+00> : vector<1xf32>
    %159 = vector.multi_reduction <add>, %158, %cst_109 [1] : vector<1x32xf32> to vector<1xf32>
    %160 = vector.shape_cast %159 : vector<1xf32> to vector<1x1xf32>
    %cst_110 = arith.constant 3.200000e+01 : f32
    %161 = vector.broadcast %cst_110 : f32 to vector<1x1xf32>
    %162 = arith.divf %160, %161 : vector<1x1xf32>
    %163 = vector.broadcast %155 : vector<1x1xf32> to vector<1x32xf32>
    %164 = arith.subf %147, %163 : vector<1x32xf32>
    %cst_111 = arith.constant 9.99999974E-6 : f32
    %165 = vector.broadcast %cst_111 : f32 to vector<1x1xf32>
    %166 = arith.addf %162, %165 : vector<1x1xf32>
    %167 = math.rsqrt %166 : vector<1x1xf32>
    %168 = vector.broadcast %167 : vector<1x1xf32> to vector<1x32xf32>
    %169 = arith.mulf %164, %168 : vector<1x32xf32>
    %170 = arith.mulf %169, %149 : vector<1x32xf32>
    %171 = arith.addf %170, %151 : vector<1x32xf32>
    %172 = arith.truncf %171 : vector<1x32xf32> to vector<1x32xbf16>
    %c0_112 = arith.constant 0 : index
    %c0_113 = arith.constant 0 : index
    %173 = vector.load %arg20[%c0_112, %c0_113] : memref<32x128xbf16, #tpu.memory_space<vmem>>, vector<32x128xbf16>
    %cst_114 = arith.constant dense<0.000000e+00> : vector<1x128xf32>
    %174 = tpu.matmul %172, %173, %cst_114 {dimension_numbers = #tpu.dot_dimension_numbers<[1], [0], [0], [1], [0, 0, 1, 1], [], []>} : vector<1x32xbf16>, vector<32x128xbf16>, vector<1x128xf32> -> vector<1x128xf32>
    %c0_115 = arith.constant 0 : index
    %c0_116 = arith.constant 0 : index
    %175 = vector.load %arg21[%c0_115, %c0_116] : memref<1x128xf32, #tpu.memory_space<vmem>>, vector<1x128xf32>
    %176 = arith.addf %174, %175 : vector<1x128xf32>
    %c0_117 = arith.constant 0 : index
    %c0_118 = arith.constant 0 : index
    %c0_119 = arith.constant 0 : index
    %177 = vector.load %arg22[%c0_117, %c0_118, %c0_119] : memref<1x1x128xf32, #tpu.memory_space<vmem>>, vector<1x1x128xf32>
    %178 = vector.shape_cast %177 : vector<1x1x128xf32> to vector<1x128xf32>
    %179 = vector.shape_cast %176 : vector<1x128xf32> to vector<1x1x128xf32>
    tpu.vector_store %arg22[%c0_117, %c0_118, %c0_119], %179 {strides = array<i32>} : memref<1x1x128xf32, #tpu.memory_space<vmem>>, vector<1x1x128xf32>,
    return
  }
  func.func @transform_0(%arg0: i32) -> (i32, i32, i32) {
    %c0_i32 = arith.constant 0 : i32
    %c0_i32_0 = arith.constant 0 : i32
    %c0_i32_1 = arith.constant 0 : i32
    return %arg0, %c0_i32, %c0_i32_0 : i32, i32, i32
  }
  func.func @transform_1(%arg0: i32) -> (i32, i32) {
    %c0_i32 = arith.constant 0 : i32
    %c0_i32_0 = arith.constant 0 : i32
    %c0_i32_1 = arith.constant 0 : i32
    return %c0_i32, %c0_i32_0 : i32, i32
  }
  func.func @transform_2(%arg0: i32) -> (i32, i32) {
    %c0_i32 = arith.constant 0 : i32
    %c0_i32_0 = arith.constant 0 : i32
    %c0_i32_1 = arith.constant 0 : i32
    return %c0_i32, %c0_i32_0 : i32, i32
  }
  func.func @transform_3(%arg0: i32) -> (i32, i32, i32, i32) {
    %c0_i32 = arith.constant 0 : i32
    %c0_i32_0 = arith.constant 0 : i32
    %c0_i32_1 = arith.constant 0 : i32
    %c0_i32_2 = arith.constant 0 : i32
    %c0_i32_3 = arith.constant 0 : i32
    return %c0_i32, %c0_i32_0, %c0_i32_1, %c0_i32_2 : i32, i32, i32, i32
  }
  func.func @transform_4(%arg0: i32) -> (i32, i32, i32, i32) {
    %c0_i32 = arith.constant 0 : i32
    %c0_i32_0 = arith.constant 0 : i32
    %c0_i32_1 = arith.constant 0 : i32
    %c0_i32_2 = arith.constant 0 : i32
    %c0_i32_3 = arith.constant 0 : i32
    return %c0_i32, %c0_i32_0, %c0_i32_1, %c0_i32_2 : i32, i32, i32, i32
  }
  func.func @transform_5(%arg0: i32) -> (i32, i32, i32, i32) {
    %c0_i32 = arith.constant 0 : i32
    %c0_i32_0 = arith.constant 0 : i32
    %c0_i32_1 = arith.constant 0 : i32
    %c0_i32_2 = arith.constant 0 : i32
    %c0_i32_3 = arith.constant 0 : i32
    return %c0_i32, %c0_i32_0, %c0_i32_1, %c0_i32_2 : i32, i32, i32, i32
  }
  func.func @transform_6(%arg0: i32) -> (i32, i32, i32, i32) {
    %c0_i32 = arith.constant 0 : i32
    %c0_i32_0 = arith.constant 0 : i32
    %c0_i32_1 = arith.constant 0 : i32
    %c0_i32_2 = arith.constant 0 : i32
    %c0_i32_3 = arith.constant 0 : i32
    return %c0_i32, %c0_i32_0, %c0_i32_1, %c0_i32_2 : i32, i32, i32, i32
  }
  func.func @transform_7(%arg0: i32) -> (i32, i32, i32, i32) {
    %c0_i32 = arith.constant 0 : i32
    %c0_i32_0 = arith.constant 0 : i32
    %c0_i32_1 = arith.constant 0 : i32
    %c0_i32_2 = arith.constant 0 : i32
    %c0_i32_3 = arith.constant 0 : i32
    return %c0_i32, %c0_i32_0, %c0_i32_1, %c0_i32_2 : i32, i32, i32, i32
  }
  func.func @transform_8(%arg0: i32) -> (i32, i32, i32, i32) {
    %c0_i32 = arith.constant 0 : i32
    %c0_i32_0 = arith.constant 0 : i32
    %c0_i32_1 = arith.constant 0 : i32
    %c0_i32_2 = arith.constant 0 : i32
    %c0_i32_3 = arith.constant 0 : i32
    return %c0_i32, %c0_i32_0, %c0_i32_1, %c0_i32_2 : i32, i32, i32, i32
  }
  func.func @transform_9(%arg0: i32) -> (i32, i32, i32, i32) {
    %c0_i32 = arith.constant 0 : i32
    %c0_i32_0 = arith.constant 0 : i32
    %c0_i32_1 = arith.constant 0 : i32
    %c0_i32_2 = arith.constant 0 : i32
    %c0_i32_3 = arith.constant 0 : i32
    return %c0_i32, %c0_i32_0, %c0_i32_1, %c0_i32_2 : i32, i32, i32, i32
  }
  func.func @transform_10(%arg0: i32) -> (i32, i32, i32) {
    %c0_i32 = arith.constant 0 : i32
    %c0_i32_0 = arith.constant 0 : i32
    %c0_i32_1 = arith.constant 0 : i32
    %c0_i32_2 = arith.constant 0 : i32
    return %c0_i32, %c0_i32_0, %c0_i32_1 : i32, i32, i32
  }
  func.func @transform_11(%arg0: i32) -> (i32, i32, i32) {
    %c0_i32 = arith.constant 0 : i32
    %c0_i32_0 = arith.constant 0 : i32
    %c0_i32_1 = arith.constant 0 : i32
    %c0_i32_2 = arith.constant 0 : i32
    return %c0_i32, %c0_i32_0, %c0_i32_1 : i32, i32, i32
  }
  func.func @transform_12(%arg0: i32) -> (i32, i32, i32) {
    %c0_i32 = arith.constant 0 : i32
    %c0_i32_0 = arith.constant 0 : i32
    %c0_i32_1 = arith.constant 0 : i32
    %c0_i32_2 = arith.constant 0 : i32
    return %c0_i32, %c0_i32_0, %c0_i32_1 : i32, i32, i32
  }
  func.func @transform_13(%arg0: i32) -> (i32, i32, i32) {
    %c0_i32 = arith.constant 0 : i32
    %c0_i32_0 = arith.constant 0 : i32
    %c0_i32_1 = arith.constant 0 : i32
    %c0_i32_2 = arith.constant 0 : i32
    return %c0_i32, %c0_i32_0, %c0_i32_1 : i32, i32, i32
  }
  func.func @transform_14(%arg0: i32) -> (i32, i32, i32) {
    %c0_i32 = arith.constant 0 : i32
    %c0_i32_0 = arith.constant 0 : i32
    %c0_i32_1 = arith.constant 0 : i32
    %c0_i32_2 = arith.constant 0 : i32
    return %c0_i32, %c0_i32_0, %c0_i32_1 : i32, i32, i32
  }
  func.func @transform_15(%arg0: i32) -> (i32, i32, i32) {
    %c0_i32 = arith.constant 0 : i32
    %c0_i32_0 = arith.constant 0 : i32
    %c0_i32_1 = arith.constant 0 : i32
    %c0_i32_2 = arith.constant 0 : i32
    return %c0_i32, %c0_i32_0, %c0_i32_1 : i32, i32, i32
  }
  func.func @transform_16(%arg0: i32) -> (i32, i32, i32) {
    %c0_i32 = arith.constant 0 : i32
    %c0_i32_0 = arith.constant 0 : i32
    %c0_i32_1 = arith.constant 0 : i32
    %c0_i32_2 = arith.constant 0 : i32
    return %c0_i32, %c0_i32_0, %c0_i32_1 : i32, i32, i32
  }
  func.func @transform_17(%arg0: i32) -> (i32, i32, i32) {
    %c0_i32 = arith.constant 0 : i32
    %c0_i32_0 = arith.constant 0 : i32
    %c0_i32_1 = arith.constant 0 : i32
    %c0_i32_2 = arith.constant 0 : i32
    return %c0_i32, %c0_i32_0, %c0_i32_1 : i32, i32, i32
  }
  func.func @transform_18(%arg0: i32) -> (i32, i32, i32) {
    %c0_i32 = arith.constant 0 : i32
    %c0_i32_0 = arith.constant 0 : i32
    %c0_i32_1 = arith.constant 0 : i32
    %c0_i32_2 = arith.constant 0 : i32
    return %c0_i32, %c0_i32_0, %c0_i32_1 : i32, i32, i32
  }
  func.func @transform_19(%arg0: i32) -> (i32, i32) {
    %c0_i32 = arith.constant 0 : i32
    %c0_i32_0 = arith.constant 0 : i32
    %c0_i32_1 = arith.constant 0 : i32
    return %c0_i32, %c0_i32_0 : i32, i32
  }
  func.func @transform_20(%arg0: i32) -> (i32, i32) {
    %c0_i32 = arith.constant 0 : i32
    %c0_i32_0 = arith.constant 0 : i32
    %c0_i32_1 = arith.constant 0 : i32
    return %c0_i32, %c0_i32_0 : i32, i32
  }
  func.func @transform_21(%arg0: i32) -> (i32, i32, i32) {
    %c0_i32 = arith.constant 0 : i32
    %c0_i32_0 = arith.constant 0 : i32
    %c0_i32_1 = arith.constant 0 : i32
    return %arg0, %c0_i32, %c0_i32_0 : i32, i32, i32
  }
}

</mosaic_0001>

<bundles_post_ra>
// kernel: tpu_custom_call.1
= control target key start
LH: loop header
LB: loop body
LE: loop exit
PB: predicated region body
PF: predicated region fallthrough
CT: control target
= control target key end

     0   :  { %s10220_s0 = inlined_call_operand.vmem [shape: f32[2,1,32], index: 0, kind: input, shape index: {}]   ;;  %s10221_s1 = inlined_call_operand.vmem [shape: f32[1,32], index: 1, kind: input, shape index: {}]   ;;  %s10222_s2 = inlined_call_operand.<no memory space> [shape: f32[1,1], index: 2, kind: input, shape index: {}]   ;;  %s10223_s3 = inlined_call_operand.vmem [shape: bf16[2,8,32,4], index: 3, kind: input, shape index: {}]   ;;  %s10224_s4 = inlined_call_operand.vmem [shape: bf16[2,8,32,4], index: 4, kind: input, shape index: {}]   ;;  %s10225_s5 = inlined_call_operand.vmem [shape: bf16[2,8,32,4], index: 5, kind: input, shape index: {}]   ;;  %s10226_s6 = inlined_call_operand.vmem [shape: f32[2,8,1,4], index: 6, kind: input, shape index: {}]   ;;  %s10227_s7 = inlined_call_operand.vmem [shape: f32[2,8,1,4], index: 7, kind: input, shape index: {}]   ;;  %s10228_s8 = inlined_call_operand.vmem [shape: f32[2,8,1,4], index: 8, kind: input, shape index: {}]   ;;  %s10229_s9 = inlined_call_operand.vmem [shape: bf16[2,8,4,32], index: 9, kind: input, shape index: {}]   ;;  %s10230_s10 = inlined_call_operand.vmem [shape: f32[2,1,32], index: 10, kind: input, shape index: {}]   ;;  %s10231_s11 = inlined_call_operand.vmem [shape: f32[2,1,32], index: 11, kind: input, shape index: {}]   ;;  %s10232_s12 = inlined_call_operand.vmem [shape: f32[2,1,32], index: 12, kind: input, shape index: {}]   ;;  %s10233_s13 = inlined_call_operand.vmem [shape: bf16[2,32,2048], index: 13, kind: input, shape index: {}]   ;;  %s10234_s14 = inlined_call_operand.vmem [shape: f32[2,1,2048], index: 14, kind: input, shape index: {}]   ;;  %s10235_s15 = inlined_call_operand.vmem [shape: bf16[2,2048,32], index: 15, kind: input, shape index: {}]   ;;  %s10236_s16 = inlined_call_operand.vmem [shape: f32[2,1,32], index: 16, kind: input, shape index: {}]   ;;  %s10237_s17 = inlined_call_operand.vmem [shape: f32[2,1,32], index: 17, kind: input, shape index: {}]   ;;  %s10238_s18 = inlined_call_operand.vmem [shape: f32[2,1,32], index: 18, kind: input, shape index: {}]   ;;  %s10239_s19 = inlined_call_operand.vmem [shape: bf16[32,128], index: 19, kind: input, shape index: {}]   ;;  %s10240_s20 = inlined_call_operand.vmem [shape: f32[1,128], index: 20, kind: input, shape index: {}]   ;;  %s10241_s21 = inlined_call_operand.hbm [shape: f32[2,1,128], index: 21, kind: output, shape index: {}]  }
   0x1   :  { %10246 = sst [smem:[#allocation9_spill]] %s10220_s0 }
   0x2   :  { %10247 = sst [smem:[#allocation10_spill]] %s10221_s1 }
   0x3   :  { %10248 = sst [smem:[#allocation11_spill]] %s10225_s5 }
   0x4   :  { %28 = vsyncpa [#allocation4], 0 }
   0x5   :  { %30 = vsyncpa [#allocation4 + $0x1], 0  ;;  %s8501_s1 = smov 0   ;;  %s8503_s6 = smov 0  }
   0x6   :  { %s8505_s7 = smov 0   ;;  %s8507_s24 = smov 0  }
   0x7 LB: > { %10249 = sst [smem:[#allocation6_spill]] %s8381_s7  ;;  %s8522_s25 = sadd.s32 4294967295, %s8385_s24   ;;  %s8385_s24 = sphi %s8507_s24, %s10257_s24   ;;  %s8381_s7 = sphi %s8505_s7, %s10259_s7   ;;  %s8377_s6 = sphi %s8503_s6, %s10261_s6   ;;  %s8373_s1 = sphi %s8501_s1, %s10260_s1  }
   0x8   : > { %s6562_s2 = sadd.s32 4294967294, %s8385_s24   ;;  %s8526_s26 = sadd.s32 1, %s8385_s24  }
   0x9   : > { %10250 = sst [smem:[#allocation7_spill]] %s8526_s26  ;;  %s489_s27 = sadd.s32 1, %s8381_s7 }
   0xa   : > { %s486_s3 = ssub.s32 %s8385_s24, %s8526_s26  ;;  %p499_p0 = scmp.ne.s32.totalorder %s8381_s7, %s8377_s6 }
   0xb   : > { %p487_p1 = scmp.eq.s32.totalorder %s486_s3, 0  ;;  %p500_p2 = scmp.eq.s32.totalorder %s8522_s25, 1 }
   0xc   : > { %p505_p3 = scmp.ne.s32.totalorder %s8377_s6, %s8373_s1  ;;  %p506_p4 = scmp.eq.s32.totalorder %s6562_s2, 1 }
   0xd   : > { %s8537_s28 = scalar_select %p487_p1, %s8381_s7, %s489_s27  }
   0xe   : > { %p8539_p5 = por %p500_p2, %p499_p0  ;;  %p8543_p6 = por %p506_p4, %p505_p3 }
   0xf   : > { %10251 = sst [smem:[#allocation8_spill]] %s8537_s28  ;;  %p6565_p7 = scmp.ge.s32.totalorder %s8385_s24, 1 }
  0x10   : > { %p590_p8 = scmp.lt.s32.totalorder %s8385_s24, 3 }
  0x12   : > { %p591_p9 = pnand %p6565_p7, %p590_p8 }
  0x13   : > { %s10254_s30 = sld [smem:[#allocation11_spill]] (!%p591_p9)  ;;  %v8387_v1 = vmov (!%p591_p9), 0.0   ;;  %vm8388_vm0 = vmmov (!%p591_p9), 0   ;;  %p647_p10 = scmp.lt.s32.totalorder (!%p591_p9), %s8522_s25, 1  ;;  %vm707_vm1 = vcmask (!%p591_p9), 261120   ;;  %vm1135_vm2 = vcmask (!%p591_p9), 1041408  }
  0x14   : > { %594 = sbr.rel (%p591_p9) target bundleno = 3519 (0xdbf), region = 104  ;;  %7751 = vmatprep.subr.bf16.mxu0 (!%p591_p9), %v8387_v1  ;;  %7759 = vmatprep.subr.bf16.mxu1 (!%p591_p9), %v8387_v1  ;;  %s10255_s2 = sld [smem:[#allocation10_spill]] (!%p591_p9)  ;;  %v1123_v13 = vld [vmem:[%s10229_s9] sm:$0x3] (!%p591_p9)  ;;  %v1124_v23 = vld [vmem:[%s10229_s9 + $0x2] sm:$0x3] (!%p591_p9) }
  0x15   : > { %7755 = vmatprep.mubr.msk.bf16.mxu0 (!%p591_p9), %vm8388_vm0, %v8387_v1  ;;  %7763 = vmatprep.mubr.msk.bf16.mxu1 (!%p591_p9), %vm8388_vm0, %v8387_v1  ;;  %s10256_s7 = sld [smem:[#allocation9_spill]] (!%p591_p9)  ;;  %v1137_v16 = vsel (!%p591_p9), %vm1135_vm2, %v1123_v13, 0  ;;  %v1183_v24 = vsel (!%p591_p9), %vm1135_vm2, %v1124_v23, 0  ;;  %v687_v25 = vld [vmem:[%s10228_s8] sm:$0x1] (!%p591_p9)  ;;  %vm1131_vm3 = vcmask (!%p591_p9), 31744  }
  0x16   : > { %v688_v26 = vld [vmem:[%s10228_s8 + $0x1] sm:$0x1] (!%p591_p9)  ;;  %v1125_v29 = vld [vmem:[%s10229_s9 + $0x4] sm:$0x3] (!%p591_p9)  ;;  %v1126_v30 = vld [vmem:[%s10229_s9 + $0x6] sm:$0x3] (!%p591_p9) }
  0x17   : > { %v1229_v41 = vsel (!%p591_p9), %vm1135_vm2, %v1125_v29, 0  ;;  %v1275_v42 = vsel (!%p591_p9), %vm1135_vm2, %v1126_v30, 0  ;;  %v689_v43 = vld [vmem:[%s10228_s8 + $0x2] sm:$0x1] (!%p591_p9)  ;;  %v690_v44 = vld [vmem:[%s10228_s8 + $0x3] sm:$0x1] (!%p591_p9) }
  0x18   : > { %v1127_v47 = vld [vmem:[%s10229_s9 + $0x8] sm:$0x3] (!%p591_p9)  ;;  %v1128_v48 = vld [vmem:[%s10229_s9 + $0xa] sm:$0x3] (!%p591_p9)  ;;  %v691_v61 = vld [vmem:[%s10228_s8 + $0x4] sm:$0x1] (!%p591_p9) }
  0x19   : > { %v8025_v0 = vld [vmem:[%s10254_s30] sm:$0xff] (!%p591_p9)   ;;  %v8026_v2 = vld [vmem:[%s10254_s30 + $0x10] sm:$0xff] (!%p591_p9)   ;;  %v8027_v3 = vld [vmem:[%s10254_s30 + $0x8] sm:$0xff] (!%p591_p9)   ;;  %v1321_v59 = vsel (!%p591_p9), %vm1135_vm2, %v1127_v47, 0  ;;  %v1367_v60 = vsel (!%p591_p9), %vm1135_vm2, %v1128_v48, 0  ;;  %vm1501_vm4 = vcmask (!%p591_p9), 253952  }
  0x1a   : > { %7752 = vmatpush3.bf16.msra.mxu0 (!%p591_p9), %v8025_v0  ;;  %7760 = vmatpush3.bf16.msra.mxu1 (!%p591_p9), %v8026_v2  ;;  %v8028_v4 = vld [vmem:[%s10254_s30 + $0x18] sm:$0xff] (!%p591_p9)   ;;  %v652_v5 = vld [vmem:[%s10255_s2] sm:$0x1] (!%p591_p9)  ;;  %v8030_v9 = vld [vmem:[%s10254_s30 + $0x30] sm:$0xff] (!%p591_p9)   ;;  %s645_s28 = sand.u32 (!%p591_p9), 1, %s8377_s6   ;;  %s7313_s27 = sshll.u32 (!%p591_p9), %s8522_s25, 4 }
  0x1b   : > { %7753 = vmatprep.subr.bf16.mxu0 %v8387_v1  ;;  %7761 = vmatprep.subr.bf16.mxu1 %v8387_v1  ;;  %s648_s4 = scalar_select %p647_p10, %s8522_s25, 1  ;;  %v8029_v8 = vld [vmem:[%s10254_s30 + $0x20] sm:$0xff]   ;;  %v8031_v11 = vld [vmem:[%s10254_s30 + $0x28] sm:$0xff]   ;;  %v8032_v12 = vld [vmem:[%s10254_s30 + $0x38] sm:$0xff]  }
  0x1c   : > { %v8033_v14 = vld [vmem:[%s10254_s30 + $0x40] sm:$0xff]   ;;  %v8034_v15 = vld [vmem:[%s10254_s30 + $0x50] sm:$0xff]   ;;  %v8035_v17 = vld [vmem:[%s10254_s30 + $0x48] sm:$0xff]   ;;  %s646_s3 = scalar_lea.vmem [#allocation3], %s645_s28 }
  0x1d   : > { %s649_s26 = scalar_lea.vmem %s10256_s7, %s648_s4  ;;  %v8036_v18 = vld [vmem:[%s10254_s30 + $0x58] sm:$0xff]   ;;  %v8037_v19 = vld [vmem:[%s10254_s30 + $0x60] sm:$0xff]   ;;  %v8038_v20 = vld [vmem:[%s10254_s30 + $0x70] sm:$0xff]   ;;  %s6510_s5 = sshll.u32 %s646_s3, 4  ;;  %s10180_s5 = int_to_ptr.vmem [resolvable:$true] %s6510_s5 }
  0x1e   : > { %7754 = vmatpush3.bf16.msra.mxu0 %v8027_v3  ;;  %7762 = vmatpush3.bf16.msra.mxu1 %v8028_v4  ;;  %v651_v6 = vld [vmem:[%s649_s26] sm:$0x1]  ;;  %v8039_v21 = vld [vmem:[%s10254_s30 + $0x68] sm:$0xff]   ;;  %v8040_v22 = vld [vmem:[%s10254_s30 + $0x78] sm:$0xff]   ;;  %s10178_s7 = scalar_lea.hbm %s10241_s21, %s7313_s27  ;;  %s6498_s26 = scalar_lea.sflag [#allocation4], %s645_s28 }
  0x1f   : > { %7767 = vmatprep.subr.bf16.mxu0 %v8387_v1  ;;  %v8578_v7 = vadd.f32 %v652_v5, %v651_v6  ;;  %7775 = vmatprep.subr.bf16.mxu1 %v8387_v1  ;;  %v692_v62 = vld [vmem:[%s10228_s8 + $0x5] sm:$0x1]  ;;  %v1129_v2 = vld [vmem:[%s10229_s9 + $0xc] sm:$0x3]  ;;  %v1130_v3 = vld [vmem:[%s10229_s9 + $0xe] sm:$0x3] }
  0x20   : > { %s8323_s25 = scalar_lea.vmem %s10180_s5, 16  ;;  %s8390_s4 = smov [#allocation3]  }
  0x21   : > { %v654_v10 = vpack.c.bf16 %v8578_v7, %v8578_v7  ;;  %p8324_p11 = scmp.ne.s32.totalorder %s10180_s5, %s8323_s25  ;;  %s8327_s2 = sshll.u32 %s8390_s4, 4  ;;  %s8328_s2 = int_to_ptr.vmem [resolvable:$false] %s8327_s2 }
  0x22   : > { %s8329_s22 = scalar_lea.vmem %s8328_s2, 32  ;;  %p8330_p0 = scmp.lt.s32.totalorder %s10180_s5, %s8328_s2 }
  0x23   : > { %7756 = vmatmul.mubr.msk.bf16.vlgmr.msra.gmra.mrb[0].mxu0 %vm707_vm1, %v654_v10  ;;  %7764 = vmatmul.mubr.msk.bf16.vlgmr.msra.gmra.mrb[0].mxu1 %vm707_vm1, %v654_v10  ;;  %p8325_p12 = pnand %p8324_p11, %p8539_p5  ;;  %p8331_p1 = scmp.lt.s32.totalorder %s8329_s22, %s8323_s25 }
  0x24   : > { %7768 = vmatpush3.bf16.msra.mxu0 %v8029_v8  ;;  %7776 = vmatpush3.bf16.msra.mxu1 %v8030_v9 }
  0x25   : > { %7769 = vmatprep.subr.bf16.mxu0 %v8387_v1  ;;  %7777 = vmatprep.subr.bf16.mxu1 %v8387_v1  ;;  %p8326_p13 = pneg %p8325_p12  ;;  %p8332_p2 = por %p8331_p1, %p8330_p0 }
  0x26   : > { %7771 = vmatprep.mubr.msk.bf16.mxu0 %vm8388_vm0, %v8387_v1  ;;  %7779 = vmatprep.mubr.msk.bf16.mxu1 %vm8388_vm0, %v8387_v1 }
  0x27   : > { %p8333_p3 = pnand %p8332_p2, %p8326_p13 }
  0x28   : > { %7770 = vmatpush3.bf16.msra.mxu0 %v8031_v11  ;;  %7778 = vmatpush3.bf16.msra.mxu1 %v8032_v12 }
  0x29   : > { %7783 = vmatprep.subr.bf16.mxu0 %v8387_v1  ;;  %7791 = vmatprep.subr.bf16.mxu1 %v8387_v1 }
  0x2b   : > { %7772 = vmatmul.mubr.msk.bf16.vlgmr.msra.gmra.mrb[4].mxu0 %vm707_vm1, %v654_v10  ;;  %7780 = vmatmul.mubr.msk.bf16.vlgmr.msra.gmra.mrb[4].mxu1 %vm707_vm1, %v654_v10 }
  0x2c   : > { %7784 = vmatpush3.bf16.msra.mxu0 %v8033_v14  ;;  %7792 = vmatpush3.bf16.msra.mxu1 %v8034_v15  ;;  %v1413_v15 = vsel %vm1135_vm2, %v1129_v2, 0 }
  0x2d   : > { %7785 = vmatprep.subr.bf16.mxu0 %v8387_v1  ;;  %7793 = vmatprep.subr.bf16.mxu1 %v8387_v1 }
  0x2e   : > { %7787 = vmatprep.mubr.msk.bf16.mxu0 %vm8388_vm0, %v8387_v1  ;;  %7795 = vmatprep.mubr.msk.bf16.mxu1 %vm8388_vm0, %v8387_v1 }
  0x30   : > { %7786 = vmatpush3.bf16.msra.mxu0 %v8035_v17  ;;  %7794 = vmatpush3.bf16.msra.mxu1 %v8036_v18  ;;  %v693_v17 = vld [vmem:[%s10228_s8 + $0x6] sm:$0x1]  ;;  %v694_v18 = vld [vmem:[%s10228_s8 + $0x7] sm:$0x1] }
  0x31   : > { %7799 = vmatprep.subr.bf16.mxu0 %v8387_v1  ;;  %7807 = vmatprep.subr.bf16.mxu1 %v8387_v1 }
  0x33   : > { %7788 = vmatmul.mubr.msk.bf16.vlgmr.msra.gmra.mrb[8].mxu0 %vm707_vm1, %v654_v10  ;;  %7796 = vmatmul.mubr.msk.bf16.vlgmr.msra.gmra.mrb[8].mxu1 %vm707_vm1, %v654_v10 }
  0x34   : > { %7800 = vmatpush3.bf16.msra.mxu0 %v8037_v19  ;;  %7808 = vmatpush3.bf16.msra.mxu1 %v8038_v20 }
  0x35   : > { %7801 = vmatprep.subr.bf16.mxu0 %v8387_v1  ;;  %7809 = vmatprep.subr.bf16.mxu1 %v8387_v1 }
  0x36   : > { %7803 = vmatprep.mubr.msk.bf16.mxu0 %vm8388_vm0, %v8387_v1  ;;  %7811 = vmatprep.mubr.msk.bf16.mxu1 %vm8388_vm0, %v8387_v1 }
  0x38   : > { %7802 = vmatpush3.bf16.msra.mxu0 %v8039_v21  ;;  %7810 = vmatpush3.bf16.msra.mxu1 %v8040_v22 }
  0x39   : > { %7815 = vmatprep.subr.bf16.mxu0 %v8387_v1  ;;  %7821 = vmatprep.subr.bf16.mxu1 %v8387_v1 }
  0x3b   : > { %7804 = vmatmul.mubr.msk.bf16.vlgmr.msra.gmra.mrb[12].mxu0 %vm707_vm1, %v654_v10  ;;  %7812 = vmatmul.mubr.msk.bf16.vlgmr.msra.gmra.mrb[12].mxu1 %vm707_vm1, %v654_v10 }
  0x3c   : > { %7816 = vmatpush3.bf16.msra.mxu0 %v1137_v16  ;;  %7817 = vmatprep.mubr.msk.bf16.mxu0 %vm8388_vm0, %v8387_v1  ;;  %v1459_v16 = vsel %vm1135_vm2, %v1130_v3, 0 }
  0x3d   : > { %7823 = vmatprep.mubr.msk.bf16.mxu1 %vm8388_vm0, %v8387_v1  ;;  %7827 = vmatprep.subr.bf16.mxu0 %v8387_v1 }
  0x3e   : > { %7822 = vmatpush3.bf16.msra.mxu1 %v1183_v24 }
  0x3f   : > { %7833 = vmatprep.subr.bf16.mxu1 %v8387_v1 }
  0xf6   : > { %v745_v27 = vpop.f32.mrb[0].mxu0  ;;  %v797_v28 = vpop.f32.mrb[0].mxu1 }
  0xf7   : > { %v746_v31 = vadd.f32 %v745_v27, %v687_v25  ;;  %v798_v32 = vadd.f32 %v797_v28, %v688_v26  ;;  %v7757_v33 = vpop.f32.mrb[1].mxu0  ;;  %v7765_v34 = vpop.f32.mrb[1].mxu1 }
  0xf8   : > { %v748_v35 = vpop.f32.mrb[2].mxu0  ;;  %v800_v36 = vpop.f32.mrb[2].mxu1 }
  0xf9   : > { %v1115_v37 = vpack.c.bf16 %v746_v31, %v746_v31  ;;  %v1116_v38 = vpack.c.bf16 %v798_v32, %v798_v32  ;;  %v7758_v39 = vpop.f32.mrb[3].mxu0  ;;  %v7766_v40 = vpop.f32.mrb[3].mxu1 }
  0xfb   : > { %7818 = vmatmul.mubr.msk.bf16.vlgmr.msra.gmra.mrb[16].mxu0 %vm1131_vm3, %v1115_v37  ;;  %7824 = vmatmul.mubr.msk.bf16.vlgmr.msra.gmra.mrb[16].mxu1 %vm1131_vm3, %v1116_v38 }
  0xfc   : > { %7828 = vmatpush3.bf16.msra.mxu0 %v1229_v41  ;;  %7834 = vmatpush3.bf16.msra.mxu1 %v1275_v42 }
  0xfd   : > { %7829 = vmatprep.mubr.msk.bf16.mxu0 %vm8388_vm0, %v8387_v1  ;;  %7835 = vmatprep.mubr.msk.bf16.mxu1 %vm8388_vm0, %v8387_v1 }
  0xfe   : > { %v849_v45 = vpop.f32.mrb[4].mxu0  ;;  %v901_v46 = vpop.f32.mrb[4].mxu1  ;;  %7839 = vmatprep.subr.bf16.mxu0 %v8387_v1  ;;  %7845 = vmatprep.subr.bf16.mxu1 %v8387_v1 }
  0xff   : > { %v850_v49 = vadd.f32 %v849_v45, %v689_v43  ;;  %v902_v50 = vadd.f32 %v901_v46, %v690_v44  ;;  %v7773_v51 = vpop.f32.mrb[5].mxu0  ;;  %v7781_v52 = vpop.f32.mrb[5].mxu1 }
 0x100   : > { %v852_v53 = vpop.f32.mrb[6].mxu0  ;;  %v904_v54 = vpop.f32.mrb[6].mxu1 }
 0x101   : > { %v1117_v55 = vpack.c.bf16 %v850_v49, %v850_v49  ;;  %v1118_v56 = vpack.c.bf16 %v902_v50, %v902_v50  ;;  %v7774_v57 = vpop.f32.mrb[7].mxu0  ;;  %v7782_v58 = vpop.f32.mrb[7].mxu1 }
 0x103   : > { %7830 = vmatmul.mubr.msk.bf16.vlgmr.msra.gmra.mrb[20].mxu0 %vm1131_vm3, %v1117_v55  ;;  %7836 = vmatmul.mubr.msk.bf16.vlgmr.msra.gmra.mrb[20].mxu1 %vm1131_vm3, %v1118_v56 }
 0x104   : > { %7840 = vmatpush3.bf16.msra.mxu0 %v1321_v59  ;;  %7846 = vmatpush3.bf16.msra.mxu1 %v1367_v60 }
 0x105   : > { %7841 = vmatprep.mubr.msk.bf16.mxu0 %vm8388_vm0, %v8387_v1  ;;  %7847 = vmatprep.mubr.msk.bf16.mxu1 %vm8388_vm0, %v8387_v1 }
 0x106   : > { %v953_v63 = vpop.f32.mrb[8].mxu0  ;;  %v1005_v0 = vpop.f32.mrb[8].mxu1  ;;  %7851 = vmatprep.subr.bf16.mxu0 %v8387_v1  ;;  %7857 = vmatprep.subr.bf16.mxu1 %v8387_v1 }
 0x107   : > { %v954_v4 = vadd.f32 %v953_v63, %v691_v61  ;;  %v1006_v5 = vadd.f32 %v1005_v0, %v692_v62  ;;  %v7789_v6 = vpop.f32.mrb[9].mxu0  ;;  %v7797_v8 = vpop.f32.mrb[9].mxu1 }
 0x108   : > { %v956_v9 = vpop.f32.mrb[10].mxu0  ;;  %v1008_v10 = vpop.f32.mrb[10].mxu1 }
 0x109   : > { %v1119_v11 = vpack.c.bf16 %v954_v4, %v954_v4  ;;  %v1120_v12 = vpack.c.bf16 %v1006_v5, %v1006_v5  ;;  %v7790_v13 = vpop.f32.mrb[11].mxu0  ;;  %v7798_v14 = vpop.f32.mrb[11].mxu1 }
 0x10a   : > { %v1517_v13 = vld [vmem:[%s10230_s10] sm:$0x1] }
 0x10b   : > { %7842 = vmatmul.mubr.msk.bf16.vlgmr.msra.gmra.mrb[24].mxu0 %vm1131_vm3, %v1119_v11  ;;  %7848 = vmatmul.mubr.msk.bf16.vlgmr.msra.gmra.mrb[24].mxu1 %vm1131_vm3, %v1120_v12 }
 0x10c   : > { %7852 = vmatpush3.bf16.msra.mxu0 %v1413_v15  ;;  %7858 = vmatpush3.bf16.msra.mxu1 %v1459_v16 }
 0x10d   : > { %7853 = vmatprep.mubr.msk.bf16.mxu0 %vm8388_vm0, %v8387_v1  ;;  %7859 = vmatprep.mubr.msk.bf16.mxu1 %vm8388_vm0, %v8387_v1 }
 0x10e   : > { %v1057_v19 = vpop.f32.mrb[12].mxu0  ;;  %v1109_v20 = vpop.f32.mrb[12].mxu1 }
 0x10f   : > { %v1058_v21 = vadd.f32 %v1057_v19, %v693_v17  ;;  %v1110_v22 = vadd.f32 %v1109_v20, %v694_v18  ;;  %v7805_v23 = vpop.f32.mrb[13].mxu0  ;;  %v7813_v24 = vpop.f32.mrb[13].mxu1 }
 0x110   : > { %v1060_v25 = vpop.f32.mrb[14].mxu0  ;;  %v1112_v26 = vpop.f32.mrb[14].mxu1 }
 0x111   : > { %v1121_v27 = vpack.c.bf16 %v1058_v21, %v1058_v21  ;;  %v1122_v28 = vpack.c.bf16 %v1110_v22, %v1110_v22  ;;  %v7806_v29 = vpop.f32.mrb[15].mxu0  ;;  %v7814_v30 = vpop.f32.mrb[15].mxu1  ;;  %v1539_v25 = vld [vmem:[%s10233_s13] sm:$0xff] }
 0x112   : > { %v1547_v26 = vld [vmem:[%s10233_s13 + $0x40] sm:$0xff] }
 0x113   : > { %7854 = vmatmul.mubr.msk.bf16.vlgmr.msra.gmra.mrb[28].mxu0 %vm1131_vm3, %v1121_v27  ;;  %7860 = vmatmul.mubr.msk.bf16.vlgmr.msra.gmra.mrb[28].mxu1 %vm1131_vm3, %v1122_v28  ;;  %v6599_v27 = vcombine.high %v1539_v25, %v1547_v26  ;;  %v1548_v28 = vld [vmem:[%s10233_s13 + $0x48] sm:$0xff]  ;;  %v6598_v29 = vcombine.low %v1539_v25, %v1547_v26 }
 0x115   : > { %1818 = vmatprep.subr.bf16.mxu0 %v6599_v27  ;;  %v1569_v27 = vld [vmem:[%s10233_s13 + $0xf0] sm:$0xff] }
 0x116   : > { %1819 = vmatpush1.bf16.msra.mxu0 %v6598_v29  ;;  %v1570_v29 = vld [vmem:[%s10233_s13 + $0xf8] sm:$0xff] }
 0x1ce   : > { %v1173_v31 = vpop.f32.mrb[16].mxu0  ;;  %v1219_v32 = vpop.f32.mrb[16].mxu1 }
 0x1cf   : > { %v1502_v33 = vsel %vm1501_vm4, %v1173_v31, 0.0  ;;  %v1503_v34 = vsel %vm1501_vm4, %v1219_v32, 0.0  ;;  %v7819_v35 = vpop.f32.mrb[17].mxu0  ;;  %v7825_v36 = vpop.f32.mrb[17].mxu1  ;;  %v1555_v32 = vld [vmem:[%s10233_s13 + $0x80] sm:$0xff] }
 0x1d0   : > { %v1504_v37 = vadd.f32 %v1503_v34, %v1502_v33  ;;  %v1176_v38 = vpop.f32.mrb[18].mxu0  ;;  %v1222_v39 = vpop.f32.mrb[18].mxu1  ;;  %v1563_v33 = vld [vmem:[%s10233_s13 + $0xc0] sm:$0xff]  ;;  %v1556_v34 = vld [vmem:[%s10233_s13 + $0x88] sm:$0xff] }
 0x1d1   : > { %v7820_v40 = vpop.f32.mrb[19].mxu0  ;;  %v7826_v41 = vpop.f32.mrb[19].mxu1  ;;  %v6615_v35 = vcombine.high %v1555_v32, %v1563_v33  ;;  %v1564_v36 = vld [vmem:[%s10233_s13 + $0xc8] sm:$0xff] }
 0x1d2   : > { %v6616_v38 = vcombine.low %v1556_v34, %v1564_v36  ;;  %v6617_v39 = vcombine.high %v1556_v34, %v1564_v36  ;;  %v1541_v40 = vld [vmem:[%s10233_s13 + $0x10] sm:$0xff]  ;;  %v8041_v36 = vld [vmem:[%s10235_s15 + $0x40] sm:$0xff]  }
 0x1d3   : > { %1820 = vmatprep.subr.bf16.mxu0 %v6615_v35  ;;  %v1549_v41 = vld [vmem:[%s10233_s13 + $0x50] sm:$0xff] }
 0x1d6   : > { %v1265_v42 = vpop.f32.mrb[20].mxu0  ;;  %v1311_v43 = vpop.f32.mrb[20].mxu1 }
 0x1d7   : > { %v1505_v44 = vsel %vm1501_vm4, %v1265_v42, 0.0  ;;  %v1507_v45 = vsel %vm1501_vm4, %v1311_v43, 0.0  ;;  %v7831_v46 = vpop.f32.mrb[21].mxu0  ;;  %v7837_v47 = vpop.f32.mrb[21].mxu1  ;;  %v1542_v42 = vld [vmem:[%s10233_s13 + $0x18] sm:$0xff]  ;;  %v6603_v43 = vcombine.high %v1541_v40, %v1549_v41 }
 0x1d8   : > { %v1506_v48 = vadd.f32 %v1505_v44, %v1504_v37  ;;  %v1268_v49 = vpop.f32.mrb[22].mxu0  ;;  %v1314_v50 = vpop.f32.mrb[22].mxu1  ;;  %v6614_v37 = vcombine.low %v1555_v32, %v1563_v33  ;;  %v1550_v44 = vld [vmem:[%s10233_s13 + $0x58] sm:$0xff]  ;;  %v6602_v46 = vcombine.low %v1541_v40, %v1549_v41  ;;  %v8045_v40 = vld [vmem:[%s10235_s15 + $0x48] sm:$0xff]  }
 0x1d9   : > { %v7832_v51 = vpop.f32.mrb[23].mxu0  ;;  %v7838_v52 = vpop.f32.mrb[23].mxu1  ;;  %v6604_v47 = vcombine.low %v1542_v42, %v1550_v44  ;;  %v8046_v41 = vld [vmem:[%s10235_s15 + $0xc8] sm:$0xff]  }
 0x1da   : > { %v1508_v53 = vadd.f32 %v1507_v45, %v1506_v48  ;;  %1821 = vmatpush1.bf16.msra.mxu0 %v6614_v37  ;;  %v8389_v45 = vmov 0   ;;  %v6605_v48 = vcombine.high %v1542_v42, %v1550_v44  ;;  %v8042_v37 = vld [vmem:[%s10235_s15 + $0xc0] sm:$0xff]   ;;  %v8047_v42 = vld [vmem:[%s10235_s15 + $0x8] sm:$0xff]   ;;  %v8049_v44 = vld [vmem:[%s10235_s15 + $0x50] sm:$0xff]  }
 0x1db   : > { %1850 = vmatprep.mubr.bf16.mxu0 %v8389_v45  ;;  %1891 = vmatprep.mubr.bf16.mxu1 %v8389_v45 }
 0x1dc   : > { %1900 = vmatprep.subr.bf16.mxu0 %v6603_v43  ;;  %v8048_v43 = vld [vmem:[%s10235_s15 + $0x88] sm:$0xff]  }
 0x1de   : > { %v1357_v54 = vpop.f32.mrb[24].mxu0  ;;  %v1403_v55 = vpop.f32.mrb[24].mxu1 }
 0x1df   : > { %v1509_v56 = vsel %vm1501_vm4, %v1357_v54, 0.0  ;;  %v1511_v57 = vsel %vm1501_vm4, %v1403_v55, 0.0  ;;  %v7843_v58 = vpop.f32.mrb[25].mxu0  ;;  %v7849_v59 = vpop.f32.mrb[25].mxu1  ;;  %v1521_v55 = vld [vmem:[%s10232_s12] sm:$0x1] }
 0x1e0   : > { %v1510_v60 = vadd.f32 %v1509_v56, %v1508_v53  ;;  %v1360_v61 = vpop.f32.mrb[26].mxu0  ;;  %v1406_v62 = vpop.f32.mrb[26].mxu1  ;;  %v1520_v53 = vld [vmem:[%s10231_s11] sm:$0x1]  ;;  %v1565_v58 = vld [vmem:[%s10233_s13 + $0xd0] sm:$0xff]  ;;  %v1558_v59 = vld [vmem:[%s10233_s13 + $0x98] sm:$0xff] }
 0x1e1   : > { %v7844_v63 = vpop.f32.mrb[27].mxu0  ;;  %v7850_v0 = vpop.f32.mrb[27].mxu1 }
 0x1e2   : > { %v1512_v2 = vadd.f32 %v1511_v57, %v1510_v60  ;;  %v1557_v57 = vld [vmem:[%s10233_s13 + $0x90] sm:$0xff]  ;;  %v1566_v60 = vld [vmem:[%s10233_s13 + $0xd8] sm:$0xff] }
 0x1e3   : > { %v6619_v63 = vcombine.high %v1557_v57, %v1565_v58  ;;  %v6621_v0 = vcombine.high %v1558_v59, %v1566_v60 }
 0x1e6   : > { %v1449_v3 = vpop.f32.mrb[28].mxu0  ;;  %v1495_v4 = vpop.f32.mrb[28].mxu1 }
 0x1e7   : > { %v1513_v5 = vsel %vm1501_vm4, %v1449_v3, 0.0  ;;  %v1515_v6 = vsel %vm1501_vm4, %v1495_v4, 0.0  ;;  %v7855_v8 = vpop.f32.mrb[29].mxu0  ;;  %v7861_v9 = vpop.f32.mrb[29].mxu1  ;;  %v1551_v3 = vld [vmem:[%s10233_s13 + $0x60] sm:$0xff]  ;;  %v1544_v4 = vld [vmem:[%s10233_s13 + $0x28] sm:$0xff] }
 0x1e8   : > { %v1514_v10 = vadd.f32 %v1513_v5, %v1512_v2  ;;  %v1452_v11 = vpop.f32.mrb[30].mxu0  ;;  %v1498_v12 = vpop.f32.mrb[30].mxu1  ;;  %v1543_v2 = vld [vmem:[%s10233_s13 + $0x20] sm:$0xff]  ;;  %v1552_v5 = vld [vmem:[%s10233_s13 + $0x68] sm:$0xff]  ;;  %v6620_v8 = vcombine.low %v1558_v59, %v1566_v60 }
 0x1e9   : > { %v7856_v14 = vpop.f32.mrb[31].mxu0  ;;  %v7862_v15 = vpop.f32.mrb[31].mxu1  ;;  %v6607_v9 = vcombine.high %v1543_v2, %v1551_v3  ;;  %v1559_v11 = vld [vmem:[%s10233_s13 + $0xa0] sm:$0xff]  ;;  %v8063_v59 = vld [vmem:[%s10235_s15 + $0x28] sm:$0xff]  }
 0x1ea   : > { %v1516_v16 = vadd.f32 %v1515_v6, %v1514_v10  ;;  %v6618_v6 = vcombine.low %v1557_v57, %v1565_v58  ;;  %v6609_v10 = vcombine.high %v1544_v4, %v1552_v5  ;;  %v1567_v12 = vld [vmem:[%s10233_s13 + $0xe0] sm:$0xff]  ;;  %v1568_v14 = vld [vmem:[%s10233_s13 + $0xe8] sm:$0xff]  ;;  %v6606_v15 = vcombine.low %v1543_v2, %v1551_v3  ;;  %v8068_v2 = vld [vmem:[%s10235_s15 + $0xb0] sm:$0xff]  }
 0x1eb   : > { %v8061_v57 = vld [vmem:[%s10235_s15 + $0x68] sm:$0xff]   ;;  %v8069_v3 = vld [vmem:[%s10235_s15 + $0x78] sm:$0xff]  }
 0x1ec   : > { %v1518_v17 = vadd.f32 %v1517_v13, %v1516_v16  ;;  %v1560_v13 = vld [vmem:[%s10233_s13 + $0xa8] sm:$0xff]  ;;  %v6608_v16 = vcombine.low %v1544_v4, %v1552_v5  ;;  %v8070_v4 = vld [vmem:[%s10235_s15 + $0xf8] sm:$0xff]  }
 0x1ed   : > { %v8062_v58 = vld [vmem:[%s10235_s15 + $0xe8] sm:$0xff]   ;;  %v8071_v5 = vld [vmem:[%s10235_s15 + $0x38] sm:$0xff]  }
 0x1ee   : > { %v1519_v18 = vadd.f32 %v1518_v17, %v8578_v7  ;;  %v1540_v7 = vld [vmem:[%s10233_s13 + $0x8] sm:$0xff]  ;;  %v6623_v17 = vcombine.high %v1559_v11, %v1567_v12 }
 0x1ef   : > { %v6600_v30 = vcombine.low %v1540_v7, %v1548_v28  ;;  %v6601_v31 = vcombine.high %v1540_v7, %v1548_v28  ;;  %v1561_v7 = vld [vmem:[%s10233_s13 + $0xb0] sm:$0xff]  ;;  %v1562_v28 = vld [vmem:[%s10233_s13 + $0xb8] sm:$0xff]  ;;  %v8064_v60 = vld [vmem:[%s10235_s15 + $0xa8] sm:$0xff]  }
 0x1f0   : > { %v1522_v19 = vsel %vm1501_vm4, %v1519_v18, 0.0  ;;  %v6627_v32 = vcombine.high %v1561_v7, %v1569_v27  ;;  %v6629_v33 = vcombine.high %v1562_v28, %v1570_v29  ;;  %v6626_v34 = vcombine.low %v1561_v7, %v1569_v27 }
 0x1f1   : > { %1523 = vadd.xlane.f32.xlu0 %v1522_v19  ;;  %1859 = vmatprep.subr.bf16.mxu1 %v6601_v31  ;;  %v1545_v19 = vld [vmem:[%s10233_s13 + $0x30] sm:$0xff]  ;;  %v6628_v35 = vcombine.low %v1562_v28, %v1570_v29 }
 0x1f2   : > { %1860 = vmatpush1.bf16.msra.mxu1 %v6600_v30 }
 0x1f3   : > { %1861 = vmatprep.subr.bf16.mxu1 %v6617_v39  ;;  %v8044_v39 = vld [vmem:[%s10235_s15 + $0x80] sm:$0xff]  }
 0x1f6   : > { %1862 = vmatpush1.bf16.msra.mxu1 %v6616_v38  ;;  %v8043_v38 = vld [vmem:[%s10235_s15] sm:$0xff]  }
 0x1f7   : > { %1941 = vmatprep.subr.bf16.mxu1 %v6605_v48  ;;  %v8052_v48 = vld [vmem:[%s10235_s15 + $0x90] sm:$0xff]  }
 0x27e   : > { %v1524_v20 = vpop.xlane.xlu0 %1523 }
 0x27f   : > { %v1526_v21 = vmul.f32 0.03125, %v1524_v20  ;;  %v1553_v20 = vld [vmem:[%s10233_s13 + $0x70] sm:$0xff] }
 0x280   : > { %v6611_v25 = vcombine.high %v1545_v19, %v1553_v20  ;;  %v6610_v30 = vcombine.low %v1545_v19, %v1553_v20 }
 0x281   : > { %v1527_v22 = vsub.f32 %v1519_v18, %v1526_v21  ;;  %v6625_v18 = vcombine.high %v1560_v13, %v1568_v14  ;;  %v1546_v21 = vld [vmem:[%s10233_s13 + $0x38] sm:$0xff] }
 0x283   : > { %v1528_v23 = vmul.f32 %v1527_v22, %v1527_v22 }
 0x285   : > { %v1529_v24 = vsel %vm1501_vm4, %v1528_v23, 0.0  ;;  %v6622_v23 = vcombine.low %v1559_v11, %v1567_v12 }
 0x286   : > { %1530 = vadd.xlane.f32.xlu0 %v1529_v24  ;;  %v6624_v24 = vcombine.low %v1560_v13, %v1568_v14  ;;  %v8996_v14 = vld [vmem:[%s10234_s14] sm:$0xff] }
 0x313   : > { %v1531_v49 = vpop.xlane.xlu0 %1530 }
 0x314   : > { %v1532_v50 = vmul.f32 0.03125, %v1531_v49  ;;  %v8053_v49 = vld [vmem:[%s10235_s15 + $0x58] sm:$0xff]  }
 0x316   : > { %v1533_v51 = vadd.f32 1e-05, %v1532_v50  ;;  %v8054_v50 = vld [vmem:[%s10235_s15 + $0xd8] sm:$0xff]  }
 0x318   : > { %8315 = vrsqrt.f32 %v1533_v51  ;;  %v8055_v51 = vld [vmem:[%s10235_s15 + $0x18] sm:$0xff]  }
 0x322   : > { %v8316_v52 = vpop.eup %8315 }
 0x323   : > { %v1535_v54 = vmul.f32 %v8316_v52, %v1527_v22  ;;  %v1554_v22 = vld [vmem:[%s10233_s13 + $0x78] sm:$0xff] }
 0x324   : > { %v6613_v26 = vcombine.high %v1546_v21, %v1554_v22  ;;  %v6612_v31 = vcombine.low %v1546_v21, %v1554_v22  ;;  %v8056_v52 = vld [vmem:[%s10235_s15 + $0x98] sm:$0xff]  }
 0x325   : > { %v1536_v56 = vmul.f32 %v1535_v54, %v1520_v53  ;;  %v8057_v53 = vld [vmem:[%s10235_s15 + $0x60] sm:$0xff]  }
 0x326   : > { %v8058_v54 = vld [vmem:[%s10235_s15 + $0xe0] sm:$0xff]  }
 0x327   : > { %v8807_v61 = vadd.f32 %v1536_v56, %v1521_v55  ;;  %v8059_v55 = vld [vmem:[%s10235_s15 + $0x20] sm:$0xff]  }
 0x328   : > { %v8060_v56 = vld [vmem:[%s10235_s15 + $0xa0] sm:$0xff]  }
 0x329   : > { %v8811_v62 = vpack.c.bf16 %v8807_v61, %v8807_v61 }
 0x32b   : > { %6630 = vmatmul.mubr.msk.bf16.vlgmr.msra.gmra.mrb[32].mxu0 %vm707_vm1, %v8811_v62  ;;  %6631 = vmatmul.mubr.msk.bf16.vlgmr.msra.gmra.mrb[32].mxu1 %vm707_vm1, %v8811_v62 }
 0x32c   : > { %1901 = vmatpush1.bf16.msra.mxu0 %v6602_v46  ;;  %1942 = vmatpush1.bf16.msra.mxu1 %v6604_v47  ;;  %v8050_v46 = vld [vmem:[%s10235_s15 + $0xd0] sm:$0xff]  }
 0x32d   : > { %1902 = vmatprep.subr.bf16.mxu0 %v6619_v63  ;;  %1943 = vmatprep.subr.bf16.mxu1 %v6621_v0  ;;  %v8051_v47 = vld [vmem:[%s10235_s15 + $0x10] sm:$0xff]  }
 0x32e   : > { %1932 = vmatprep.mubr.bf16.mxu0 %v8389_v45  ;;  %1973 = vmatprep.mubr.bf16.mxu1 %v8389_v45  ;;  %v8066_v63 = vld [vmem:[%s10235_s15 + $0xf0] sm:$0xff]  }
 0x32f   : > { %v8067_v0 = vld [vmem:[%s10235_s15 + $0x30] sm:$0xff]  }
 0x330   : > { %1903 = vmatpush1.bf16.msra.mxu0 %v6618_v6  ;;  %1944 = vmatpush1.bf16.msra.mxu1 %v6620_v8  ;;  %v8072_v6 = vld [vmem:[%s10235_s15 + $0xb8] sm:$0xff]   ;;  %v8073_v8 = vld [vmem:[%s10235_s15 + $0x140] sm:$0xff]  }
 0x331   : > { %1982 = vmatprep.subr.bf16.mxu0 %v6607_v9  ;;  %2023 = vmatprep.subr.bf16.mxu1 %v6609_v10  ;;  %v8074_v9 = vld [vmem:[%s10235_s15 + $0x1c0] sm:$0xff]   ;;  %v1735_v10 = vlaneseq }
 0x333   : > { %6632 = vmatmul.mubr.msk.bf16.vlgmr.msra.gmra.mrb[36].mxu0 %vm707_vm1, %v8811_v62  ;;  %6633 = vmatmul.mubr.msk.bf16.vlgmr.msra.gmra.mrb[36].mxu1 %vm707_vm1, %v8811_v62  ;;  %v8985_v11 = vshrl.u32 %v1735_v10, 7 }
 0x334   : > { %1983 = vmatpush1.bf16.msra.mxu0 %v6606_v15  ;;  %2024 = vmatpush1.bf16.msra.mxu1 %v6608_v16 }
 0x335   : > { %1984 = vmatprep.subr.bf16.mxu0 %v6623_v17  ;;  %2025 = vmatprep.subr.bf16.mxu1 %v6625_v18  ;;  %v8988_v12 = vsub.s32 0, %v8985_v11  ;;  %v8991_v13 = vsub.s32 2, %v8985_v11  ;;  %v8999_v15 = vsub.s32 1, %v8985_v11  ;;  %v9002_v16 = vsub.s32 3, %v8985_v11 }
 0x336   : > { %2014 = vmatprep.mubr.bf16.mxu0 %v8389_v45  ;;  %2055 = vmatprep.mubr.bf16.mxu1 %v8389_v45 }
 0x337   : > { %v1738_v17 = vrot.slane %v8996_v14, %v8988_v12  ;;  %v1746_v18 = vrot.slane %v8996_v14, %v8991_v13  ;;  %v1742_v19 = vrot.slane %v8996_v14, %v8999_v15  ;;  %v1750_v20 = vrot.slane %v8996_v14, %v9002_v16 }
 0x338   : > { %1985 = vmatpush1.bf16.msra.mxu0 %v6622_v23  ;;  %2026 = vmatpush1.bf16.msra.mxu1 %v6624_v24 }
 0x339   : > { %2064 = vmatprep.subr.bf16.mxu0 %v6611_v25  ;;  %2105 = vmatprep.subr.bf16.mxu1 %v6613_v26 }
 0x33b   : > { %6634 = vmatmul.mubr.msk.bf16.vlgmr.msra.gmra.mrb[40].mxu0 %vm707_vm1, %v8811_v62  ;;  %6635 = vmatmul.mubr.msk.bf16.vlgmr.msra.gmra.mrb[40].mxu1 %vm707_vm1, %v8811_v62 }
 0x33c   : > { %2065 = vmatpush1.bf16.msra.mxu0 %v6610_v30  ;;  %2106 = vmatpush1.bf16.msra.mxu1 %v6612_v31  ;;  %v9013_v30 = vsub.s32 5, %v8985_v11  ;;  %v9016_v31 = vsub.s32 7, %v8985_v11 }
 0x33d   : > { %2066 = vmatprep.subr.bf16.mxu0 %v6627_v32  ;;  %2107 = vmatprep.subr.bf16.mxu1 %v6629_v33 }
 0x33e   : > { %2096 = vmatprep.mubr.bf16.mxu0 %v8389_v45  ;;  %2137 = vmatprep.mubr.bf16.mxu1 %v8389_v45 }
 0x340   : > { %2067 = vmatpush1.bf16.msra.mxu0 %v6626_v34  ;;  %2108 = vmatpush1.bf16.msra.mxu1 %v6628_v35 }
 0x341   : > { %7356 = vmatprep.subr.bf16.mxu0 %v8041_v36  ;;  %7378 = vmatprep.subr.bf16.mxu1 %v8042_v37 }
 0x343   : > { %6636 = vmatmul.mubr.msk.bf16.vlgmr.msra.gmra.mrb[44].mxu0 %vm707_vm1, %v8811_v62  ;;  %6637 = vmatmul.mubr.msk.bf16.vlgmr.msra.gmra.mrb[44].mxu1 %vm707_vm1, %v8811_v62  ;;  %v8065_v62 = vld [vmem:[%s10235_s15 + $0x70] sm:$0xff]  }
 0x344   : > { %7357 = vmatpush3.bf16.msra.mxu0 %v8043_v38  ;;  %7379 = vmatpush3.bf16.msra.mxu1 %v8044_v39 }
 0x345   : > { %7358 = vmatprep.subr.bf16.mxu0 %v8045_v40  ;;  %7380 = vmatprep.subr.bf16.mxu1 %v8046_v41  ;;  %v1758_v40 = vrot.slane %v8996_v14, %v9013_v30  ;;  %v1766_v41 = vrot.slane %v8996_v14, %v9016_v31 }
 0x348   : > { %7359 = vmatpush3.bf16.msra.mxu0 %v8047_v42  ;;  %7381 = vmatpush3.bf16.msra.mxu1 %v8048_v43  ;;  %v8075_v42 = vld [vmem:[%s10235_s15 + $0x100] sm:$0xff]  }
 0x349   : > { %7360 = vmatprep.subr.bf16.mxu0 %v8049_v44  ;;  %7382 = vmatprep.subr.bf16.mxu1 %v8050_v46  ;;  %v8076_v43 = vld [vmem:[%s10235_s15 + $0x180] sm:$0xff]  }
 0x34c   : > { %7361 = vmatpush3.bf16.msra.mxu0 %v8051_v47  ;;  %7383 = vmatpush3.bf16.msra.mxu1 %v8052_v48  ;;  %v8077_v47 = vld [vmem:[%s10235_s15 + $0x148] sm:$0xff]  }
 0x34d   : > { %7362 = vmatprep.subr.bf16.mxu0 %v8053_v49  ;;  %7384 = vmatprep.subr.bf16.mxu1 %v8054_v50  ;;  %v8078_v48 = vld [vmem:[%s10235_s15 + $0x1c8] sm:$0xff]  }
 0x350   : > { %7363 = vmatpush3.bf16.msra.mxu0 %v8055_v51  ;;  %7385 = vmatpush3.bf16.msra.mxu1 %v8056_v52 }
 0x351   : > { %7364 = vmatprep.subr.bf16.mxu0 %v8057_v53  ;;  %7386 = vmatprep.subr.bf16.mxu1 %v8058_v54 }
 0x354   : > { %7365 = vmatpush3.bf16.msra.mxu0 %v8059_v55  ;;  %7387 = vmatpush3.bf16.msra.mxu1 %v8060_v56 }
 0x355   : > { %7366 = vmatprep.subr.bf16.mxu0 %v8061_v57  ;;  %7388 = vmatprep.subr.bf16.mxu1 %v8062_v58  ;;  %v8079_v57 = vld [vmem:[%s10235_s15 + $0x108] sm:$0xff]  }
 0x356   : > { %v8080_v58 = vld [vmem:[%s10235_s15 + $0x188] sm:$0xff]  }
 0x358   : > { %7367 = vmatpush3.bf16.msra.mxu0 %v8063_v59  ;;  %7389 = vmatpush3.bf16.msra.mxu1 %v8064_v60 }
 0x359   : > { %7368 = vmatprep.subr.bf16.mxu0 %v8065_v62  ;;  %7390 = vmatprep.subr.bf16.mxu1 %v8066_v63  ;;  %v8081_v62 = vld [vmem:[%s10235_s15 + $0x150] sm:$0xff]  }
 0x35a   : > { %v8082_v63 = vld [vmem:[%s10235_s15 + $0x1d0] sm:$0xff]  }
 0x35c   : > { %7369 = vmatpush3.bf16.msra.mxu0 %v8067_v0  ;;  %7391 = vmatpush3.bf16.msra.mxu1 %v8068_v2 }
 0x35d   : > { %7370 = vmatprep.subr.bf16.mxu0 %v8069_v3  ;;  %7392 = vmatprep.subr.bf16.mxu1 %v8070_v4 }
 0x360   : > { %7371 = vmatpush3.bf16.msra.mxu0 %v8071_v5  ;;  %7393 = vmatpush3.bf16.msra.mxu1 %v8072_v6  ;;  %v8083_v5 = vld [vmem:[%s10235_s15 + $0x110] sm:$0xff]  }
 0x361   : > { %7400 = vmatprep.subr.bf16.mxu0 %v8073_v8  ;;  %7422 = vmatprep.subr.bf16.mxu1 %v8074_v9  ;;  %v8084_v6 = vld [vmem:[%s10235_s15 + $0x190] sm:$0xff]   ;;  %v8085_v8 = vld [vmem:[%s10235_s15 + $0x158] sm:$0xff]  }
 0x362   : > { %v8086_v9 = vld [vmem:[%s10235_s15 + $0x1d8] sm:$0xff]  }
 0x3fe   : > { %v1852_v21 = vpop.f32.mrb[32].mxu0  ;;  %v1893_v22 = vpop.f32.mrb[32].mxu1 }
 0x3ff   : > { %v1853_v23 = vadd.f32 %v1852_v21, %v1738_v17  ;;  %v1894_v24 = vadd.f32 %v1893_v22, %v1746_v18  ;;  %v1854_v25 = vpop.f32.mrb[33].mxu0  ;;  %v1895_v26 = vpop.f32.mrb[33].mxu1  ;;  %v8087_v22 = vld [vmem:[%s10235_s15 + $0x118] sm:$0xff]  }
 0x400   : > { %v1855_v7 = vadd.f32 %v1854_v25, %v1742_v19  ;;  %v1896_v27 = vadd.f32 %v1895_v26, %v1750_v20  ;;  %v1856_v28 = vpop.f32.mrb[34].mxu0  ;;  %v1897_v29 = vpop.f32.mrb[34].mxu1 }
 0x401   : > { %v2146_v32 = vmax.f32 %v1853_v23, 0.0  ;;  %v2148_v33 = vmax.f32 %v1894_v24, 0.0  ;;  %v1857_v34 = vpop.f32.mrb[35].mxu0  ;;  %v1898_v35 = vpop.f32.mrb[35].mxu1  ;;  %v8088_v23 = vld [vmem:[%s10235_s15 + $0x198] sm:$0xff]   ;;  %v9073_v24 = vsub.s32 6, %v8985_v11 }
 0x402   : > { %v2147_v36 = vmax.f32 %v1855_v7, 0.0  ;;  %v2149_v37 = vmax.f32 %v1896_v27, 0.0  ;;  %v8089_v7 = vld [vmem:[%s10235_s15 + $0x160] sm:$0xff]   ;;  %v9084_v28 = vld [vmem:[%s10234_s14 + $0x8] sm:$0xff]  ;;  %v9095_v34 = vsub.s32 4, %v8985_v11 }
 0x403   : > { %v2162_v44 = vpack.c.bf16 %v2146_v32, %v2146_v32  ;;  %v2164_v46 = vpack.c.bf16 %v2148_v33, %v2148_v33  ;;  %v8090_v27 = vld [vmem:[%s10235_s15 + $0x1e0] sm:$0xff]   ;;  %v1794_v29 = vrot.slane %v9084_v28, %v9073_v24  ;;  %v8093_v35 = vld [vmem:[%s10235_s15 + $0x168] sm:$0xff]  }
 0x404   : > { %v2163_v38 = vpack.c.bf16 %v2147_v36, %v2147_v36  ;;  %v2165_v39 = vpack.c.bf16 %v2149_v37, %v2149_v37  ;;  %v8091_v32 = vld [vmem:[%s10235_s15 + $0x120] sm:$0xff]   ;;  %v8094_v36 = vld [vmem:[%s10235_s15 + $0x1e8] sm:$0xff]  }
 0x405   : > { %v8092_v33 = vld [vmem:[%s10235_s15 + $0x1a0] sm:$0xff]  }
 0x406   : > { %v9034_v49 = vpop.f32.mrb[36].mxu0  ;;  %v9036_v50 = vpop.f32.mrb[36].mxu1  ;;  %3235 = vmatprep.mubr.bf16.mxu0 %v2163_v38  ;;  %3275 = vmatprep.mubr.bf16.mxu1 %v2165_v39 }
 0x407   : > { %v1936_v51 = vpop.f32.mrb[37].mxu0  ;;  %v1977_v52 = vpop.f32.mrb[37].mxu1  ;;  %3236 = vmatmul.mubr.bf16.vlgmr.msra.gmra.mrb[48].mxu0 %v2162_v44  ;;  %3276 = vmatmul.mubr.bf16.vlgmr.msra.gmra.mrb[48].mxu1 %v2164_v46  ;;  %v8096_v44 = vld [vmem:[%s10235_s15 + $0x1a8] sm:$0xff]   ;;  %v1754_v46 = vrot.slane %v8996_v14, %v9095_v34 }
 0x408   : > { %v1937_v53 = vadd.f32 %v1936_v51, %v1758_v40  ;;  %v1978_v54 = vadd.f32 %v1977_v52, %v1766_v41  ;;  %7401 = vmatpush3.bf16.msra.mxu0 %v8075_v42  ;;  %7423 = vmatpush3.bf16.msra.mxu1 %v8076_v43  ;;  %v1938_v55 = vpop.f32.mrb[38].mxu0  ;;  %v1979_v56 = vpop.f32.mrb[38].mxu1  ;;  %v8095_v43 = vld [vmem:[%s10235_s15 + $0x128] sm:$0xff]   ;;  %v8097_v52 = vld [vmem:[%s10235_s15 + $0x170] sm:$0xff]  }
 0x409   : > { %v1939_v59 = vpop.f32.mrb[39].mxu0  ;;  %v1980_v60 = vpop.f32.mrb[39].mxu1  ;;  %7402 = vmatprep.subr.bf16.mxu0 %v8077_v47  ;;  %7424 = vmatprep.subr.bf16.mxu1 %v8078_v48  ;;  %v1762_v47 = vrot.slane %v8996_v14, %v9073_v24  ;;  %v1782_v55 = vrot.slane %v9084_v28, %v9002_v16  ;;  %v8099_v14 = vld [vmem:[%s10235_s15 + $0x130] sm:$0xff]  }
 0x40a   : > { %v2151_v0 = vmax.f32 %v1937_v53, 0.0  ;;  %v2153_v2 = vmax.f32 %v1978_v54, 0.0  ;;  %v8098_v53 = vld [vmem:[%s10235_s15 + $0x1f0] sm:$0xff]   ;;  %v1774_v54 = vrot.slane %v9084_v28, %v8999_v15  ;;  %v8101_v59 = vld [vmem:[%s10235_s15 + $0x178] sm:$0xff]  }
 0x40b   : > { %v8100_v56 = vld [vmem:[%s10235_s15 + $0x1b0] sm:$0xff]   ;;  %v8102_v60 = vld [vmem:[%s10235_s15 + $0x1f8] sm:$0xff]  }
 0x40c   : > { %v2167_v3 = vpack.c.bf16 %v2151_v0, %v2151_v0  ;;  %v2169_v4 = vpack.c.bf16 %v2153_v2, %v2153_v2  ;;  %7403 = vmatpush3.bf16.msra.mxu0 %v8079_v57  ;;  %7425 = vmatpush3.bf16.msra.mxu1 %v8080_v58  ;;  %v1935_v57 = vadd.f32 %v9034_v49, %v1754_v46  ;;  %v8103_v49 = vld [vmem:[%s10235_s15 + $0x138] sm:$0xff]   ;;  %v8125_v46 = vld [vmem:[%s10235_s15 + $0x268] sm:$0xff]  }
 0x40d   : > { %7404 = vmatprep.subr.bf16.mxu0 %v8081_v62  ;;  %7426 = vmatprep.subr.bf16.mxu1 %v8082_v63  ;;  %v1976_v58 = vadd.f32 %v9036_v50, %v1762_v47  ;;  %v8104_v50 = vld [vmem:[%s10235_s15 + $0x1b8] sm:$0xff]   ;;  %v8126_v47 = vld [vmem:[%s10235_s15 + $0x2e8] sm:$0xff]  }
 0x40e   : > { %v9062_v10 = vpop.f32.mrb[40].mxu0  ;;  %v9064_v17 = vpop.f32.mrb[40].mxu1  ;;  %3315 = vmatprep.mubr.bf16.mxu0 %v2167_v3  ;;  %3355 = vmatprep.mubr.bf16.mxu1 %v2169_v4  ;;  %v2150_v0 = vmax.f32 %v1935_v57, 0.0  ;;  %v8105_v3 = vld [vmem:[%s10235_s15 + $0x240] sm:$0xff]   ;;  %v8131_v57 = vld [vmem:[%s10235_s15 + $0x230] sm:$0xff]  }
 0x40f   : > { %v2018_v18 = vpop.f32.mrb[41].mxu0  ;;  %v2059_v19 = vpop.f32.mrb[41].mxu1  ;;  %v2152_v2 = vmax.f32 %v1976_v58, 0.0  ;;  %v8106_v4 = vld [vmem:[%s10235_s15 + $0x2c0] sm:$0xff]  }
 0x410   : > { %7405 = vmatpush3.bf16.msra.mxu0 %v8083_v5  ;;  %7427 = vmatpush3.bf16.msra.mxu1 %v8084_v6  ;;  %v2020_v20 = vpop.f32.mrb[42].mxu0  ;;  %v2061_v21 = vpop.f32.mrb[42].mxu1  ;;  %v2019_v62 = vadd.f32 %v2018_v18, %v1774_v54  ;;  %v2060_v63 = vadd.f32 %v2059_v19, %v1782_v55  ;;  %v8108_v19 = vld [vmem:[%s10235_s15 + $0x280] sm:$0xff]   ;;  %v1778_v54 = vrot.slane %v9084_v28, %v8991_v13  ;;  %v8130_v55 = vld [vmem:[%s10235_s15 + $0x2f0] sm:$0xff]  }
 0x411   : > { %v2021_v25 = vpop.f32.mrb[43].mxu0  ;;  %v2062_v26 = vpop.f32.mrb[43].mxu1  ;;  %7406 = vmatprep.subr.bf16.mxu0 %v8085_v8  ;;  %7428 = vmatprep.subr.bf16.mxu1 %v8086_v9  ;;  %v8107_v8 = vld [vmem:[%s10235_s15 + $0x200] sm:$0xff]   ;;  %v2166_v9 = vpack.c.bf16 %v2150_v0, %v2150_v0  ;;  %v2168_v18 = vpack.c.bf16 %v2152_v2, %v2152_v2  ;;  %v8109_v21 = vld [vmem:[%s10235_s15 + $0x248] sm:$0xff]  }
 0x412   : > { %v2155_v5 = vmax.f32 %v2019_v62, 0.0  ;;  %v2157_v6 = vmax.f32 %v2060_v63, 0.0  ;;  %v8111_v25 = vld [vmem:[%s10235_s15 + $0x208] sm:$0xff]   ;;  %v2058_v62 = vadd.f32 %v9064_v17, %v1778_v54  ;;  %v8134_v63 = vld [vmem:[%s10235_s15 + $0x2f8] sm:$0xff]   ;;  %v8137_v2 = vld [vmem:[%s10235_s15 + $0x340] sm:$0xff]  }
 0x413   : > { %v8112_v26 = vld [vmem:[%s10235_s15 + $0x288] sm:$0xff]   ;;  %v8136_v17 = vld [vmem:[%s10235_s15 + $0x2b8] sm:$0xff]   ;;  %v8164_v54 = vld [vmem:[%s10235_s15 + $0x3b0] sm:$0xff]  }
 0x414   : > { %7407 = vmatpush3.bf16.msra.mxu0 %v8087_v22  ;;  %7429 = vmatpush3.bf16.msra.mxu1 %v8088_v23  ;;  %v2171_v20 = vpack.c.bf16 %v2155_v5, %v2155_v5  ;;  %v8110_v22 = vld [vmem:[%s10235_s15 + $0x2c8] sm:$0xff]   ;;  %v2173_v23 = vpack.c.bf16 %v2157_v6, %v2157_v6  ;;  %v8139_v5 = vld [vmem:[%s10235_s15 + $0x300] sm:$0xff]  }
 0x415   : > { %7408 = vmatprep.subr.bf16.mxu0 %v8089_v7  ;;  %7430 = vmatprep.subr.bf16.mxu1 %v8090_v27  ;;  %v8113_v7 = vld [vmem:[%s10235_s15 + $0x250] sm:$0xff]  }
 0x416   : > { %v9103_v37 = vpop.f32.mrb[44].mxu0  ;;  %v2139_v38 = vpop.f32.mrb[44].mxu1  ;;  %v8114_v27 = vld [vmem:[%s10235_s15 + $0x2d0] sm:$0xff]  }
 0x417   : > { %v9105_v39 = vadd.f32 %v2139_v38, %v1794_v29  ;;  %v9107_v40 = vpop.f32.mrb[45].mxu0  ;;  %v9109_v41 = vpop.f32.mrb[45].mxu1  ;;  %v8115_v29 = vld [vmem:[%s10235_s15 + $0x210] sm:$0xff]   ;;  %v8120_v38 = vld [vmem:[%s10235_s15 + $0x298] sm:$0xff]  }
 0x418   : > { %7409 = vmatpush3.bf16.msra.mxu0 %v8091_v32  ;;  %7431 = vmatpush3.bf16.msra.mxu1 %v8092_v33  ;;  %v2102_v11 = vpop.f32.mrb[46].mxu0  ;;  %v2143_v42 = vpop.f32.mrb[46].mxu1  ;;  %v8116_v32 = vld [vmem:[%s10235_s15 + $0x290] sm:$0xff]   ;;  %v8117_v33 = vld [vmem:[%s10235_s15 + $0x258] sm:$0xff]  }
 0x419   : > { %v2103_v48 = vpop.f32.mrb[47].mxu0  ;;  %v2144_v51 = vpop.f32.mrb[47].mxu1  ;;  %7410 = vmatprep.subr.bf16.mxu0 %v8093_v35  ;;  %7432 = vmatprep.subr.bf16.mxu1 %v8094_v36  ;;  %v8118_v35 = vld [vmem:[%s10235_s15 + $0x2d8] sm:$0xff]   ;;  %v8121_v11 = vld [vmem:[%s10235_s15 + $0x260] sm:$0xff]  }
 0x41a   : > { %v8119_v36 = vld [vmem:[%s10235_s15 + $0x218] sm:$0xff]   ;;  %v8122_v42 = vld [vmem:[%s10235_s15 + $0x2e0] sm:$0xff]   ;;  %v8127_v48 = vld [vmem:[%s10235_s15 + $0x228] sm:$0xff]   ;;  %v1770_v51 = vrot.slane %v9084_v28, %v8988_v12 }
 0x41c   : > { %7411 = vmatpush3.bf16.msra.mxu0 %v8095_v43  ;;  %7433 = vmatpush3.bf16.msra.mxu1 %v8096_v44  ;;  %v8123_v43 = vld [vmem:[%s10235_s15 + $0x220] sm:$0xff]   ;;  %v2017_v58 = vadd.f32 %v9062_v10, %v1770_v51  ;;  %v8161_v51 = vld [vmem:[%s10235_s15 + $0x370] sm:$0xff]  }
 0x41d   : > { %7412 = vmatprep.subr.bf16.mxu0 %v8097_v52  ;;  %7434 = vmatprep.subr.bf16.mxu1 %v8098_v53  ;;  %v8124_v44 = vld [vmem:[%s10235_s15 + $0x2a0] sm:$0xff]   ;;  %v8128_v52 = vld [vmem:[%s10235_s15 + $0x2a8] sm:$0xff]   ;;  %v8129_v53 = vld [vmem:[%s10235_s15 + $0x270] sm:$0xff]  }
 0x41e   : > { %v2154_v0 = vmax.f32 %v2017_v58, 0.0  ;;  %v2160_v58 = vmax.f32 %v9105_v39, 0.0  ;;  %v2434_v39 = vld [vmem:[%s10236_s16] sm:$0x1] }
 0x420   : > { %7413 = vmatpush3.bf16.msra.mxu0 %v8099_v14  ;;  %7435 = vmatpush3.bf16.msra.mxu1 %v8100_v56  ;;  %v1790_v14 = vrot.slane %v9084_v28, %v9013_v30  ;;  %v1798_v56 = vrot.slane %v9084_v28, %v9016_v31  ;;  %v2170_v6 = vpack.c.bf16 %v2154_v0, %v2154_v0 }
 0x421   : > { %7414 = vmatprep.subr.bf16.mxu0 %v8101_v59  ;;  %7436 = vmatprep.subr.bf16.mxu1 %v8102_v60  ;;  %v8132_v59 = vld [vmem:[%s10235_s15 + $0x2b0] sm:$0xff]   ;;  %v8133_v60 = vld [vmem:[%s10235_s15 + $0x278] sm:$0xff]  }
 0x422   : > { %v2142_v10 = vadd.f32 %v9109_v41, %v1798_v56 }
 0x424   : > { %7415 = vmatpush3.bf16.msra.mxu0 %v8103_v49  ;;  %7437 = vmatpush3.bf16.msra.mxu1 %v8104_v50  ;;  %v2101_v49 = vadd.f32 %v9107_v40, %v1790_v14  ;;  %v8135_v50 = vld [vmem:[%s10235_s15 + $0x238] sm:$0xff]   ;;  %v8138_v40 = vld [vmem:[%s10235_s15 + $0x3c0] sm:$0xff]  }
 0x425   : > { %7444 = vmatprep.subr.bf16.mxu0 %v8105_v3  ;;  %7466 = vmatprep.subr.bf16.mxu1 %v8106_v4  ;;  %v2156_v3 = vmax.f32 %v2058_v62, 0.0  ;;  %v2161_v4 = vmax.f32 %v2142_v10, 0.0  ;;  %v8166_v14 = vld [vmem:[%s10235_s15 + $0x3f8] sm:$0xff]  }
 0x426   : > { %v2159_v41 = vmax.f32 %v2101_v49, 0.0 }
 0x427   : > { %3316 = vmatmul.mubr.bf16.vlgmr.msra.gmra.mrb[52].mxu0 %v2166_v9  ;;  %3356 = vmatmul.mubr.bf16.vlgmr.msra.gmra.mrb[52].mxu1 %v2168_v18  ;;  %v2172_v9 = vpack.c.bf16 %v2156_v3, %v2156_v3  ;;  %v8141_v18 = vld [vmem:[%s10235_s15 + $0x348] sm:$0xff]  }
 0x428   : > { %7445 = vmatpush3.bf16.msra.mxu0 %v8107_v8  ;;  %3395 = vmatprep.mubr.bf16.mxu0 %v2171_v20  ;;  %v8140_v8 = vld [vmem:[%s10235_s15 + $0x380] sm:$0xff]   ;;  %v8142_v20 = vld [vmem:[%s10235_s15 + $0x3c8] sm:$0xff]  }
 0x429   : > { %7467 = vmatpush3.bf16.msra.mxu1 %v8108_v19  ;;  %3435 = vmatprep.mubr.bf16.mxu1 %v2173_v23  ;;  %v2175_v19 = vpack.c.bf16 %v2159_v41, %v2159_v41  ;;  %v8144_v23 = vld [vmem:[%s10235_s15 + $0x388] sm:$0xff]  }
 0x42a   : > { %7446 = vmatprep.subr.bf16.mxu0 %v8109_v21  ;;  %7468 = vmatprep.subr.bf16.mxu1 %v8110_v22  ;;  %v2177_v21 = vpack.c.bf16 %v2161_v4, %v2161_v4  ;;  %v8143_v22 = vld [vmem:[%s10235_s15 + $0x308] sm:$0xff]  }
 0x42c   : > { %7447 = vmatpush3.bf16.msra.mxu0 %v8111_v25  ;;  %v8145_v25 = vld [vmem:[%s10235_s15 + $0x350] sm:$0xff]  }
 0x42d   : > { %7469 = vmatpush3.bf16.msra.mxu1 %v8112_v26  ;;  %7448 = vmatprep.subr.bf16.mxu0 %v8113_v7  ;;  %v8146_v26 = vld [vmem:[%s10235_s15 + $0x3d0] sm:$0xff]  }
 0x42e   : > { %7470 = vmatprep.subr.bf16.mxu1 %v8114_v27  ;;  %v8147_v7 = vld [vmem:[%s10235_s15 + $0x310] sm:$0xff]  }
 0x42f   : > { %v8148_v27 = vld [vmem:[%s10235_s15 + $0x390] sm:$0xff]  }
 0x430   : > { %7449 = vmatpush3.bf16.msra.mxu0 %v8115_v29  ;;  %v8149_v29 = vld [vmem:[%s10235_s15 + $0x358] sm:$0xff]  }
 0x431   : > { %7471 = vmatpush3.bf16.msra.mxu1 %v8116_v32  ;;  %7450 = vmatprep.subr.bf16.mxu0 %v8117_v33  ;;  %v8150_v32 = vld [vmem:[%s10235_s15 + $0x3d8] sm:$0xff]  }
 0x432   : > { %7472 = vmatprep.subr.bf16.mxu1 %v8118_v35  ;;  %v8151_v33 = vld [vmem:[%s10235_s15 + $0x318] sm:$0xff]  }
 0x433   : > { %v8152_v35 = vld [vmem:[%s10235_s15 + $0x398] sm:$0xff]  }
 0x434   : > { %7451 = vmatpush3.bf16.msra.mxu0 %v8119_v36  ;;  %v8153_v36 = vld [vmem:[%s10235_s15 + $0x360] sm:$0xff]  }
 0x435   : > { %7473 = vmatpush3.bf16.msra.mxu1 %v8120_v38  ;;  %7452 = vmatprep.subr.bf16.mxu0 %v8121_v11  ;;  %v8154_v38 = vld [vmem:[%s10235_s15 + $0x3e0] sm:$0xff]  }
 0x436   : > { %7474 = vmatprep.subr.bf16.mxu1 %v8122_v42  ;;  %v8155_v11 = vld [vmem:[%s10235_s15 + $0x320] sm:$0xff]  }
 0x437   : > { %v8156_v42 = vld [vmem:[%s10235_s15 + $0x3a0] sm:$0xff]  }
 0x438   : > { %7453 = vmatpush3.bf16.msra.mxu0 %v8123_v43  ;;  %v8157_v43 = vld [vmem:[%s10235_s15 + $0x368] sm:$0xff]  }
 0x439   : > { %7475 = vmatpush3.bf16.msra.mxu1 %v8124_v44  ;;  %7454 = vmatprep.subr.bf16.mxu0 %v8125_v46  ;;  %v8158_v44 = vld [vmem:[%s10235_s15 + $0x3e8] sm:$0xff]  }
 0x43a   : > { %7476 = vmatprep.subr.bf16.mxu1 %v8126_v47  ;;  %v8159_v46 = vld [vmem:[%s10235_s15 + $0x328] sm:$0xff]   ;;  %v1786_v47 = vrot.slane %v9084_v28, %v9095_v34  ;;  %v8163_v28 = vld [vmem:[%s10235_s15 + $0x330] sm:$0xff]  }
 0x43c   : > { %7455 = vmatpush3.bf16.msra.mxu0 %v8127_v48  ;;  %v8160_v48 = vld [vmem:[%s10235_s15 + $0x3a8] sm:$0xff]  }
 0x43d   : > { %7477 = vmatpush3.bf16.msra.mxu1 %v8128_v52  ;;  %7456 = vmatprep.subr.bf16.mxu0 %v8129_v53  ;;  %v8162_v52 = vld [vmem:[%s10235_s15 + $0x3f0] sm:$0xff]   ;;  %v2099_v53 = vadd.f32 %v9103_v37, %v1786_v47  ;;  %v8167_v37 = vld [vmem:[%s10235_s15 + $0x338] sm:$0xff]  }
 0x43e   : > { %7478 = vmatprep.subr.bf16.mxu1 %v8130_v55  ;;  %v8165_v55 = vld [vmem:[%s10235_s15 + $0x378] sm:$0xff]  }
 0x43f   : > { %v2158_v56 = vmax.f32 %v2099_v53, 0.0 }
 0x440   : > { %7457 = vmatpush3.bf16.msra.mxu0 %v8131_v57  ;;  %v8168_v57 = vld [vmem:[%s10235_s15 + $0x3b8] sm:$0xff]  }
 0x441   : > { %7479 = vmatpush3.bf16.msra.mxu1 %v8132_v59  ;;  %7458 = vmatprep.subr.bf16.mxu0 %v8133_v60  ;;  %v2174_v59 = vpack.c.bf16 %v2158_v56, %v2158_v56  ;;  %v2176_v60 = vpack.c.bf16 %v2160_v58, %v2160_v58 }
 0x442   : > { %7480 = vmatprep.subr.bf16.mxu1 %v8134_v63 }
 0x444   : > { %7459 = vmatpush3.bf16.msra.mxu0 %v8135_v50 }
 0x445   : > { %7481 = vmatpush3.bf16.msra.mxu1 %v8136_v17  ;;  %7488 = vmatprep.subr.bf16.mxu0 %v8137_v2 }
 0x446   : > { %7510 = vmatprep.subr.bf16.mxu1 %v8138_v40 }
 0x447   : > { %3396 = vmatmul.mubr.bf16.vlgmr.msra.gmra.mrb[56].mxu0 %v2170_v6 }
 0x448   : > { %3436 = vmatmul.mubr.bf16.vlgmr.msra.gmra.mrb[56].mxu1 %v2172_v9  ;;  %7489 = vmatpush3.bf16.msra.mxu0 %v8139_v5 }
 0x449   : > { %3475 = vmatprep.mubr.bf16.mxu0 %v2175_v19  ;;  %7511 = vmatpush3.bf16.msra.mxu1 %v8140_v8 }
 0x44a   : > { %3515 = vmatprep.mubr.bf16.mxu1 %v2177_v21  ;;  %7490 = vmatprep.subr.bf16.mxu0 %v8141_v18 }
 0x44b   : > { %7512 = vmatprep.subr.bf16.mxu1 %v8142_v20 }
 0x44c   : > { %7491 = vmatpush3.bf16.msra.mxu0 %v8143_v22 }
 0x44d   : > { %7513 = vmatpush3.bf16.msra.mxu1 %v8144_v23  ;;  %7492 = vmatprep.subr.bf16.mxu0 %v8145_v25 }
 0x44e   : > { %7514 = vmatprep.subr.bf16.mxu1 %v8146_v26 }
 0x450   : > { %7493 = vmatpush3.bf16.msra.mxu0 %v8147_v7 }
 0x451   : > { %7515 = vmatpush3.bf16.msra.mxu1 %v8148_v27  ;;  %7494 = vmatprep.subr.bf16.mxu0 %v8149_v29 }
 0x452   : > { %7516 = vmatprep.subr.bf16.mxu1 %v8150_v32 }
 0x454   : > { %7495 = vmatpush3.bf16.msra.mxu0 %v8151_v33 }
 0x455   : > { %7517 = vmatpush3.bf16.msra.mxu1 %v8152_v35  ;;  %7496 = vmatprep.subr.bf16.mxu0 %v8153_v36 }
 0x456   : > { %7518 = vmatprep.subr.bf16.mxu1 %v8154_v38 }
 0x458   : > { %7497 = vmatpush3.bf16.msra.mxu0 %v8155_v11 }
 0x459   : > { %7519 = vmatpush3.bf16.msra.mxu1 %v8156_v42  ;;  %7498 = vmatprep.subr.bf16.mxu0 %v8157_v43 }
 0x45a   : > { %7520 = vmatprep.subr.bf16.mxu1 %v8158_v44 }
 0x45c   : > { %7499 = vmatpush3.bf16.msra.mxu0 %v8159_v46 }
 0x45d   : > { %7521 = vmatpush3.bf16.msra.mxu1 %v8160_v48  ;;  %7500 = vmatprep.subr.bf16.mxu0 %v8161_v51 }
 0x45e   : > { %7522 = vmatprep.subr.bf16.mxu1 %v8162_v52 }
 0x460   : > { %7501 = vmatpush3.bf16.msra.mxu0 %v8163_v28 }
 0x461   : > { %7523 = vmatpush3.bf16.msra.mxu1 %v8164_v54  ;;  %7502 = vmatprep.subr.bf16.mxu0 %v8165_v55 }
 0x462   : > { %7524 = vmatprep.subr.bf16.mxu1 %v8166_v14 }
 0x464   : > { %7503 = vmatpush3.bf16.msra.mxu0 %v8167_v37 }
 0x465   : > { %7525 = vmatpush3.bf16.msra.mxu1 %v8168_v57  ;;  %7863 = vmatprep.subr.bf16.mxu0 %v8387_v1 }
 0x466   : > { %7871 = vmatprep.subr.bf16.mxu1 %v8387_v1 }
 0x467   : > { %3476 = vmatmul.mubr.bf16.vlgmr.msra.gmra.mrb[60].mxu0 %v2174_v59 }
 0x468   : > { %3516 = vmatmul.mubr.bf16.vlgmr.msra.gmra.mrb[60].mxu1 %v2176_v60  ;;  %7867 = vmatprep.mubr.msk.bf16.mxu0 %vm8388_vm0, %v8387_v1 }
 0x469   : > { %7875 = vmatprep.mubr.msk.bf16.mxu1 %vm8388_vm0, %v8387_v1 }
 0x4da   : > { %v7372_v62 = vpop.f32.mrb[48].mxu0  ;;  %v7394_v63 = vpop.f32.mrb[48].mxu1 }
 0x4db   : > { %v7373_v49 = vpop.f32.mrb[49].mxu0  ;;  %v7395_v10 = vpop.f32.mrb[49].mxu1 }
 0x4dc   : > { %v7374_v50 = vadd.f32 %v7373_v49, %v7372_v62  ;;  %v7396_v0 = vadd.f32 %v7395_v10, %v7394_v63  ;;  %v7375_v17 = vpop.f32.mrb[50].mxu0  ;;  %v7397_v2 = vpop.f32.mrb[50].mxu1  ;;  %v8169_v49 = vld [vmem:[%s10254_s30 + $0x80] sm:$0xff]   ;;  %v8170_v10 = vld [vmem:[%s10254_s30 + $0x90] sm:$0xff]  }
 0x4dd   : > { %v7376_v3 = vpop.f32.mrb[51].mxu0  ;;  %v7398_v40 = vpop.f32.mrb[51].mxu1  ;;  %7864 = vmatpush3.bf16.msra.mxu0 %v8169_v49  ;;  %7872 = vmatpush3.bf16.msra.mxu1 %v8170_v10 }
 0x4de   : > { %v3238_v41 = vadd.f32 %v7374_v50, %v2434_v39  ;;  %7865 = vmatprep.subr.bf16.mxu0 %v8387_v1  ;;  %7873 = vmatprep.subr.bf16.mxu1 %v8387_v1  ;;  %v8172_v50 = vld [vmem:[%s10254_s30 + $0x98] sm:$0xff]   ;;  %v3524_v40 = vld [vmem:[%s10237_s17] sm:$0x1] }
 0x4e0   : > { %v3278_v4 = vadd.f32 %v7396_v0, %v3238_v41 }
 0x4e1   : > { %7874 = vmatpush3.bf16.msra.mxu1 %v8172_v50 }
 0x4e2   : > { %7887 = vmatprep.subr.bf16.mxu1 %v8387_v1 }
 0x4fa   : > { %v7416_v5 = vpop.f32.mrb[52].mxu0  ;;  %v7438_v6 = vpop.f32.mrb[52].mxu1 }
 0x4fb   : > { %v7417_v8 = vpop.f32.mrb[53].mxu0  ;;  %v7439_v9 = vpop.f32.mrb[53].mxu1 }
 0x4fc   : > { %v7418_v18 = vadd.f32 %v7417_v8, %v7416_v5  ;;  %v7440_v19 = vadd.f32 %v7439_v9, %v7438_v6  ;;  %v7419_v20 = vpop.f32.mrb[54].mxu0  ;;  %v7441_v21 = vpop.f32.mrb[54].mxu1  ;;  %v8173_v8 = vld [vmem:[%s10254_s30 + $0xa0] sm:$0xff]   ;;  %v8174_v9 = vld [vmem:[%s10254_s30 + $0xb0] sm:$0xff]  }
 0x4fd   : > { %v7420_v22 = vpop.f32.mrb[55].mxu0  ;;  %v7442_v23 = vpop.f32.mrb[55].mxu1  ;;  %v8176_v20 = vld [vmem:[%s10254_s30 + $0xb8] sm:$0xff]   ;;  %v8177_v21 = vld [vmem:[%s10254_s30 + $0xc0] sm:$0xff]  }
 0x4fe   : > { %v3318_v25 = vadd.f32 %v7418_v18, %v3278_v4  ;;  %v3525_v4 = vld [vmem:[%s10238_s18] sm:$0x1]  ;;  %v8178_v22 = vld [vmem:[%s10254_s30 + $0xd0] sm:$0xff]   ;;  %v8179_v23 = vld [vmem:[%s10254_s30 + $0xc8] sm:$0xff]  }
 0x500   : > { %v3358_v26 = vadd.f32 %v7440_v19, %v3318_v25  ;;  %v8175_v19 = vld [vmem:[%s10254_s30 + $0xa8] sm:$0xff]   ;;  %v8180_v25 = vld [vmem:[%s10254_s30 + $0xd8] sm:$0xff]  }
 0x51a   : > { %v7460_v7 = vpop.f32.mrb[56].mxu0 }
 0x51b   : > { %v7482_v27 = vpop.f32.mrb[56].mxu1  ;;  %v7461_v29 = vpop.f32.mrb[57].mxu0 }
 0x51c   : > { %v7462_v32 = vadd.f32 %v7461_v29, %v7460_v7  ;;  %v7483_v33 = vpop.f32.mrb[57].mxu1  ;;  %v7463_v35 = vpop.f32.mrb[58].mxu0  ;;  %v8182_v7 = vld [vmem:[%s10254_s30 + $0xf0] sm:$0xff]   ;;  %v8184_v29 = vld [vmem:[%s10254_s30 + $0xf8] sm:$0xff]  }
 0x51d   : > { %v7484_v36 = vadd.f32 %v7483_v33, %v7482_v27  ;;  %v7485_v38 = vpop.f32.mrb[58].mxu1  ;;  %v7464_v11 = vpop.f32.mrb[59].mxu0  ;;  %v8183_v27 = vld [vmem:[%s10254_s30 + $0xe8] sm:$0xff]   ;;  %v6831_v35 = vld [vmem:[%s10229_s9 + $0x12] sm:$0x3] }
 0x51e   : > { %v3398_v42 = vadd.f32 %v7462_v32, %v3358_v26  ;;  %v7486_v43 = vpop.f32.mrb[59].mxu1  ;;  %v8181_v26 = vld [vmem:[%s10254_s30 + $0xe0] sm:$0xff]   ;;  %v6830_v32 = vld [vmem:[%s10229_s9 + $0x10] sm:$0x3]  ;;  %v6798_v38 = vld [vmem:[%s10228_s8 + $0x8] sm:$0x1] }
 0x51f   : > { %v4024_v33 = vsel %vm1135_vm2, %v6830_v32, 0  ;;  %v6799_v11 = vld [vmem:[%s10228_s8 + $0x9] sm:$0x1] }
 0x520   : > { %v3438_v44 = vadd.f32 %v7484_v36, %v3398_v42  ;;  %v4070_v36 = vsel %vm1135_vm2, %v6831_v35, 0 }
 0x53a   : > { %v7504_v46 = vpop.f32.mrb[60].mxu0 }
 0x53b   : > { %v7526_v47 = vpop.f32.mrb[60].mxu1  ;;  %v7505_v48 = vpop.f32.mrb[61].mxu0 }
 0x53c   : > { %v7506_v51 = vadd.f32 %v7505_v48, %v7504_v46  ;;  %v7527_v52 = vpop.f32.mrb[61].mxu1  ;;  %v7507_v28 = vpop.f32.mrb[62].mxu0  ;;  %v6833_v46 = vld [vmem:[%s10229_s9 + $0x16] sm:$0x3] }
 0x53d   : > { %v7528_v53 = vadd.f32 %v7527_v52, %v7526_v47  ;;  %v7529_v54 = vpop.f32.mrb[62].mxu1  ;;  %v7508_v55 = vpop.f32.mrb[63].mxu0 }
 0x53e   : > { %v3478_v14 = vadd.f32 %v7506_v51, %v3438_v44  ;;  %v7530_v37 = vpop.f32.mrb[63].mxu1  ;;  %v6832_v44 = vld [vmem:[%s10229_s9 + $0x14] sm:$0x3] }
 0x540   : > { %v3518_v56 = vadd.f32 %v7528_v53, %v3478_v14 }
 0x542   : > { %v3523_v57 = vadd.f32 %v3518_v56, %v8807_v61  ;;  %v8171_v61 = vld [vmem:[%s10254_s30 + $0x88] sm:$0xff]   ;;  %v4116_v56 = vsel %vm1135_vm2, %v6832_v44, 0 }
 0x543   : > { %7866 = vmatpush3.bf16.msra.mxu0 %v8171_v61 }
 0x544   : > { %v3526_v58 = vsel %vm1501_vm4, %v3523_v57, 0.0  ;;  %7879 = vmatprep.subr.bf16.mxu0 %v8387_v1 }
 0x545   : > { %3527 = vadd.xlane.f32.xlu1 %v3526_v58  ;;  %v6800_v58 = vld [vmem:[%s10228_s8 + $0xa] sm:$0x1] }
 0x5d2   : > { %v3528_v59 = vpop.xlane.xlu1 %3527 }
 0x5d3   : > { %v3529_v60 = vmul.f32 0.03125, %v3528_v59  ;;  %v6801_v59 = vld [vmem:[%s10228_s8 + $0xb] sm:$0x1] }
 0x5d5   : > { %v3530_v62 = vsub.f32 %v3523_v57, %v3529_v60  ;;  %v4162_v57 = vsel %vm1135_vm2, %v6833_v46, 0 }
 0x5d7   : > { %v3531_v63 = vmul.f32 %v3530_v62, %v3530_v62 }
 0x5d9   : > { %v3532_v39 = vsel %vm1501_vm4, %v3531_v63, 0.0  ;;  %v6834_v63 = vld [vmem:[%s10229_s9 + $0x18] sm:$0x3] }
 0x5da   : > { %3533 = vadd.xlane.f32.xlu1 %v3532_v39  ;;  %v6835_v39 = vld [vmem:[%s10229_s9 + $0x1a] sm:$0x3] }
 0x667   : > { %v3534_v0 = vpop.xlane.xlu1 %3533 }
 0x668   : > { %v3535_v17 = vmul.f32 0.03125, %v3534_v0 }
 0x66a   : > { %v3536_v2 = vadd.f32 1e-05, %v3535_v17 }
 0x66c   : > { %8317 = vrsqrt.f32 %v3536_v2 }
 0x676   : > { %v8318_v3 = vpop.eup %8317 }
 0x677   : > { %v3538_v41 = vmul.f32 %v8318_v3, %v3530_v62 }
 0x679   : > { %v3539_v5 = vmul.f32 %v3538_v41, %v3524_v40 }
 0x67b   : > { %v9393_v6 = vadd.f32 %v3539_v5, %v3525_v4  ;;  %v4208_v4 = vsel %vm1135_vm2, %v6834_v63, 0  ;;  %v4254_v5 = vsel %vm1135_vm2, %v6835_v39, 0 }
 0x67d   : > { %v3541_v18 = vpack.c.bf16 %v9393_v6, %v9393_v6 }
 0x67f   : > { %7868 = vmatmul.mubr.msk.bf16.vlgmr.msra.gmra.mrb[64].mxu0 %vm707_vm1, %v3541_v18  ;;  %7876 = vmatmul.mubr.msk.bf16.vlgmr.msra.gmra.mrb[64].mxu1 %vm707_vm1, %v3541_v18 }
 0x680   : > { %7880 = vmatpush3.bf16.msra.mxu0 %v8173_v8  ;;  %7888 = vmatpush3.bf16.msra.mxu1 %v8174_v9  ;;  %v6802_v8 = vld [vmem:[%s10228_s8 + $0xc] sm:$0x1]  ;;  %v6803_v9 = vld [vmem:[%s10228_s8 + $0xd] sm:$0x1] }
 0x681   : > { %7881 = vmatprep.subr.bf16.mxu0 %v8387_v1  ;;  %7889 = vmatprep.subr.bf16.mxu1 %v8387_v1 }
 0x682   : > { %7883 = vmatprep.mubr.msk.bf16.mxu0 %vm8388_vm0, %v8387_v1  ;;  %7891 = vmatprep.mubr.msk.bf16.mxu1 %vm8388_vm0, %v8387_v1 }
 0x684   : > { %7882 = vmatpush3.bf16.msra.mxu0 %v8175_v19  ;;  %7890 = vmatpush3.bf16.msra.mxu1 %v8176_v20  ;;  %v6836_v20 = vld [vmem:[%s10229_s9 + $0x1c] sm:$0x3] }
 0x685   : > { %7895 = vmatprep.subr.bf16.mxu0 %v8387_v1  ;;  %7903 = vmatprep.subr.bf16.mxu1 %v8387_v1 }
 0x687   : > { %7884 = vmatmul.mubr.msk.bf16.vlgmr.msra.gmra.mrb[68].mxu0 %vm707_vm1, %v3541_v18  ;;  %7892 = vmatmul.mubr.msk.bf16.vlgmr.msra.gmra.mrb[68].mxu1 %vm707_vm1, %v3541_v18 }
 0x688   : > { %7896 = vmatpush3.bf16.msra.mxu0 %v8177_v21  ;;  %7904 = vmatpush3.bf16.msra.mxu1 %v8178_v22  ;;  %v6837_v21 = vld [vmem:[%s10229_s9 + $0x1e] sm:$0x3] }
 0x689   : > { %7897 = vmatprep.subr.bf16.mxu0 %v8387_v1  ;;  %7905 = vmatprep.subr.bf16.mxu1 %v8387_v1 }
 0x68a   : > { %7899 = vmatprep.mubr.msk.bf16.mxu0 %vm8388_vm0, %v8387_v1  ;;  %7907 = vmatprep.mubr.msk.bf16.mxu1 %vm8388_vm0, %v8387_v1 }
 0x68c   : > { %7898 = vmatpush3.bf16.msra.mxu0 %v8179_v23  ;;  %7906 = vmatpush3.bf16.msra.mxu1 %v8180_v25 }
 0x68d   : > { %7911 = vmatprep.subr.bf16.mxu0 %v8387_v1  ;;  %7919 = vmatprep.subr.bf16.mxu1 %v8387_v1 }
 0x68f   : > { %7900 = vmatmul.mubr.msk.bf16.vlgmr.msra.gmra.mrb[72].mxu0 %vm707_vm1, %v3541_v18  ;;  %7908 = vmatmul.mubr.msk.bf16.vlgmr.msra.gmra.mrb[72].mxu1 %vm707_vm1, %v3541_v18 }
 0x690   : > { %7912 = vmatpush3.bf16.msra.mxu0 %v8181_v26  ;;  %7920 = vmatpush3.bf16.msra.mxu1 %v8182_v7 }
 0x691   : > { %7913 = vmatprep.subr.bf16.mxu0 %v8387_v1  ;;  %7921 = vmatprep.subr.bf16.mxu1 %v8387_v1 }
 0x692   : > { %7915 = vmatprep.mubr.msk.bf16.mxu0 %vm8388_vm0, %v8387_v1  ;;  %7923 = vmatprep.mubr.msk.bf16.mxu1 %vm8388_vm0, %v8387_v1 }
 0x694   : > { %7914 = vmatpush3.bf16.msra.mxu0 %v8183_v27  ;;  %7922 = vmatpush3.bf16.msra.mxu1 %v8184_v29 }
 0x695   : > { %7927 = vmatprep.subr.bf16.mxu0 %v8387_v1  ;;  %7933 = vmatprep.subr.bf16.mxu1 %v8387_v1 }
 0x697   : > { %7916 = vmatmul.mubr.msk.bf16.vlgmr.msra.gmra.mrb[76].mxu0 %vm707_vm1, %v3541_v18  ;;  %7924 = vmatmul.mubr.msk.bf16.vlgmr.msra.gmra.mrb[76].mxu1 %vm707_vm1, %v3541_v18 }
 0x698   : > { %7928 = vmatpush3.bf16.msra.mxu0 %v4024_v33  ;;  %7929 = vmatprep.mubr.msk.bf16.mxu0 %vm8388_vm0, %v8387_v1 }
 0x699   : > { %7935 = vmatprep.mubr.msk.bf16.mxu1 %vm8388_vm0, %v8387_v1  ;;  %7939 = vmatprep.subr.bf16.mxu0 %v8387_v1 }
 0x69a   : > { %7934 = vmatpush3.bf16.msra.mxu1 %v4070_v36  ;;  %v4300_v36 = vsel %vm1135_vm2, %v6836_v20, 0 }
 0x69b   : > { %7945 = vmatprep.subr.bf16.mxu1 %v8387_v1 }
 0x752   : > { %v3633_v42 = vpop.f32.mrb[64].mxu0  ;;  %v3685_v43 = vpop.f32.mrb[64].mxu1 }
 0x753   : > { %v3634_v47 = vadd.f32 %v6798_v38, %v3633_v42  ;;  %v3686_v48 = vadd.f32 %v6799_v11, %v3685_v43  ;;  %v7869_v51 = vpop.f32.mrb[65].mxu0  ;;  %v7877_v52 = vpop.f32.mrb[65].mxu1  ;;  %v4346_v38 = vsel %vm1135_vm2, %v6837_v21, 0  ;;  %v6804_v11 = vld [vmem:[%s10228_s8 + $0xe] sm:$0x1] }
 0x754   : > { %v3636_v28 = vpop.f32.mrb[66].mxu0  ;;  %v3688_v53 = vpop.f32.mrb[66].mxu1  ;;  %v6805_v42 = vld [vmem:[%s10228_s8 + $0xf] sm:$0x1] }
 0x755   : > { %v4003_v54 = vpack.c.bf16 %v3634_v47, %v3634_v47  ;;  %v4004_v55 = vpack.c.bf16 %v3686_v48, %v3686_v48  ;;  %v7870_v14 = vpop.f32.mrb[67].mxu0  ;;  %v7878_v37 = vpop.f32.mrb[67].mxu1 }
 0x757   : > { %7930 = vmatmul.mubr.msk.bf16.vlgmr.msra.gmra.mrb[80].mxu0 %vm1131_vm3, %v4003_v54  ;;  %7936 = vmatmul.mubr.msk.bf16.vlgmr.msra.gmra.mrb[80].mxu1 %vm1131_vm3, %v4004_v55 }
 0x758   : > { %7940 = vmatpush3.bf16.msra.mxu0 %v4116_v56  ;;  %7946 = vmatpush3.bf16.msra.mxu1 %v4162_v57 }
 0x759   : > { %7941 = vmatprep.mubr.msk.bf16.mxu0 %vm8388_vm0, %v8387_v1  ;;  %7947 = vmatprep.mubr.msk.bf16.mxu1 %vm8388_vm0, %v8387_v1 }
 0x75a   : > { %v3737_v60 = vpop.f32.mrb[68].mxu0  ;;  %v3789_v62 = vpop.f32.mrb[68].mxu1  ;;  %7951 = vmatprep.subr.bf16.mxu0 %v8387_v1  ;;  %7957 = vmatprep.subr.bf16.mxu1 %v8387_v1 }
 0x75b   : > { %v3738_v49 = vadd.f32 %v6800_v58, %v3737_v60  ;;  %v3790_v10 = vadd.f32 %v6801_v59, %v3789_v62  ;;  %v7885_v61 = vpop.f32.mrb[69].mxu0  ;;  %v7893_v50 = vpop.f32.mrb[69].mxu1 }
 0x75c   : > { %v3740_v0 = vpop.f32.mrb[70].mxu0  ;;  %v3792_v17 = vpop.f32.mrb[70].mxu1 }
 0x75d   : > { %v4005_v2 = vpack.c.bf16 %v3738_v49, %v3738_v49  ;;  %v4006_v3 = vpack.c.bf16 %v3790_v10, %v3790_v10  ;;  %v7886_v40 = vpop.f32.mrb[71].mxu0  ;;  %v7894_v41 = vpop.f32.mrb[71].mxu1 }
 0x75f   : > { %7942 = vmatmul.mubr.msk.bf16.vlgmr.msra.gmra.mrb[84].mxu0 %vm1131_vm3, %v4005_v2  ;;  %7948 = vmatmul.mubr.msk.bf16.vlgmr.msra.gmra.mrb[84].mxu1 %vm1131_vm3, %v4006_v3 }
 0x760   : > { %7952 = vmatpush3.bf16.msra.mxu0 %v4208_v4  ;;  %7958 = vmatpush3.bf16.msra.mxu1 %v4254_v5 }
 0x761   : > { %7953 = vmatprep.mubr.msk.bf16.mxu0 %vm8388_vm0, %v8387_v1  ;;  %7959 = vmatprep.mubr.msk.bf16.mxu1 %vm8388_vm0, %v8387_v1 }
 0x762   : > { %v3841_v18 = vpop.f32.mrb[72].mxu0  ;;  %v3893_v19 = vpop.f32.mrb[72].mxu1  ;;  %7963 = vmatprep.subr.bf16.mxu0 %v8387_v1  ;;  %7969 = vmatprep.subr.bf16.mxu1 %v8387_v1 }
 0x763   : > { %v3842_v22 = vadd.f32 %v6802_v8, %v3841_v18  ;;  %v3894_v23 = vadd.f32 %v6803_v9, %v3893_v19  ;;  %v7901_v25 = vpop.f32.mrb[73].mxu0  ;;  %v7909_v26 = vpop.f32.mrb[73].mxu1 }
 0x764   : > { %v3844_v7 = vpop.f32.mrb[74].mxu0  ;;  %v3896_v27 = vpop.f32.mrb[74].mxu1 }
 0x765   : > { %v4007_v29 = vpack.c.bf16 %v3842_v22, %v3842_v22  ;;  %v4008_v32 = vpack.c.bf16 %v3894_v23, %v3894_v23  ;;  %v7902_v33 = vpop.f32.mrb[75].mxu0  ;;  %v7910_v35 = vpop.f32.mrb[75].mxu1 }
 0x767   : > { %7954 = vmatmul.mubr.msk.bf16.vlgmr.msra.gmra.mrb[88].mxu0 %vm1131_vm3, %v4007_v29  ;;  %7960 = vmatmul.mubr.msk.bf16.vlgmr.msra.gmra.mrb[88].mxu1 %vm1131_vm3, %v4008_v32 }
 0x768   : > { %7964 = vmatpush3.bf16.msra.mxu0 %v4300_v36  ;;  %7970 = vmatpush3.bf16.msra.mxu1 %v4346_v38 }
 0x769   : > { %7965 = vmatprep.mubr.msk.bf16.mxu0 %vm8388_vm0, %v8387_v1  ;;  %7971 = vmatprep.mubr.msk.bf16.mxu1 %vm8388_vm0, %v8387_v1 }
 0x76a   : > { %v3945_v43 = vpop.f32.mrb[76].mxu0  ;;  %v3997_v44 = vpop.f32.mrb[76].mxu1 }
 0x76b   : > { %v3946_v46 = vadd.f32 %v6804_v11, %v3945_v43  ;;  %v3998_v47 = vadd.f32 %v6805_v42, %v3997_v44  ;;  %v7917_v48 = vpop.f32.mrb[77].mxu0  ;;  %v7925_v51 = vpop.f32.mrb[77].mxu1 }
 0x76c   : > { %v3948_v52 = vpop.f32.mrb[78].mxu0  ;;  %v4000_v28 = vpop.f32.mrb[78].mxu1 }
 0x76d   : > { %v4009_v53 = vpack.c.bf16 %v3946_v46, %v3946_v46  ;;  %v4010_v54 = vpack.c.bf16 %v3998_v47, %v3998_v47  ;;  %v7918_v55 = vpop.f32.mrb[79].mxu0  ;;  %v7926_v14 = vpop.f32.mrb[79].mxu1  ;;  %v6846_v47 = vld [vmem:[%s10230_s10 + $0x1] sm:$0x1] }
 0x76f   : > { %7966 = vmatmul.mubr.msk.bf16.vlgmr.msra.gmra.mrb[92].mxu0 %vm1131_vm3, %v4009_v53  ;;  %7972 = vmatmul.mubr.msk.bf16.vlgmr.msra.gmra.mrb[92].mxu1 %vm1131_vm3, %v4010_v54 }
 0x770   : > { %4740 = vmatprep.mubr.bf16.mxu0 %v8389_v45  ;;  %4781 = vmatprep.mubr.bf16.mxu1 %v8389_v45 }
 0x82a   : > { %v4060_v37 = vpop.f32.mrb[80].mxu0  ;;  %v4106_v56 = vpop.f32.mrb[80].mxu1 }
 0x82b   : > { %v4388_v57 = vsel %vm1501_vm4, %v4060_v37, 0.0  ;;  %v4389_v58 = vsel %vm1501_vm4, %v4106_v56, 0.0  ;;  %v7931_v59 = vpop.f32.mrb[81].mxu0  ;;  %v7937_v60 = vpop.f32.mrb[81].mxu1 }
 0x82c   : > { %v4390_v62 = vadd.f32 %v4389_v58, %v4388_v57  ;;  %v4063_v63 = vpop.f32.mrb[82].mxu0  ;;  %v4109_v39 = vpop.f32.mrb[82].mxu1  ;;  %v6849_v58 = vld [vmem:[%s10233_s13 + $0x100] sm:$0xff] }
 0x82d   : > { %v7932_v49 = vpop.f32.mrb[83].mxu0  ;;  %v7938_v10 = vpop.f32.mrb[83].mxu1  ;;  %v6857_v59 = vld [vmem:[%s10233_s13 + $0x140] sm:$0xff] }
 0x82e   : > { %v6884_v60 = vcombine.high %v6849_v58, %v6857_v59  ;;  %v6883_v63 = vcombine.low %v6849_v58, %v6857_v59  ;;  %v6865_v10 = vld [vmem:[%s10233_s13 + $0x180] sm:$0xff] }
 0x830   : > { %4708 = vmatprep.subr.bf16.mxu0 %v6884_v60  ;;  %v6863_v60 = vld [vmem:[%s10233_s13 + $0x170] sm:$0xff] }
 0x831   : > { %4709 = vmatpush1.bf16.msra.mxu0 %v6883_v63  ;;  %v6864_v63 = vld [vmem:[%s10233_s13 + $0x178] sm:$0xff] }
 0x832   : > { %v4152_v61 = vpop.f32.mrb[84].mxu0  ;;  %v4198_v50 = vpop.f32.mrb[84].mxu1 }
 0x833   : > { %v4391_v0 = vsel %vm1501_vm4, %v4152_v61, 0.0  ;;  %v7943_v17 = vpop.f32.mrb[85].mxu0  ;;  %v7949_v2 = vpop.f32.mrb[85].mxu1  ;;  %v4393_v4 = vsel %vm1501_vm4, %v4198_v50, 0.0  ;;  %v6873_v61 = vld [vmem:[%s10233_s13 + $0x1c0] sm:$0xff]  ;;  %v6866_v50 = vld [vmem:[%s10233_s13 + $0x188] sm:$0xff] }
 0x834   : > { %v4392_v3 = vadd.f32 %v4391_v0, %v4390_v62  ;;  %v4155_v40 = vpop.f32.mrb[86].mxu0  ;;  %v4201_v41 = vpop.f32.mrb[86].mxu1  ;;  %v6858_v62 = vld [vmem:[%s10233_s13 + $0x148] sm:$0xff]  ;;  %v6900_v0 = vcombine.high %v6865_v10, %v6873_v61  ;;  %v6899_v2 = vcombine.low %v6865_v10, %v6873_v61 }
 0x835   : > { %v7944_v5 = vpop.f32.mrb[87].mxu0  ;;  %v7950_v8 = vpop.f32.mrb[87].mxu1  ;;  %v6874_v17 = vld [vmem:[%s10233_s13 + $0x1c8] sm:$0xff]  ;;  %v6851_v41 = vld [vmem:[%s10233_s13 + $0x110] sm:$0xff] }
 0x836   : > { %v4394_v9 = vadd.f32 %v4393_v4, %v4392_v3  ;;  %v6901_v3 = vcombine.low %v6866_v50, %v6874_v17  ;;  %v6902_v40 = vcombine.high %v6866_v50, %v6874_v17  ;;  %4710 = vmatprep.subr.bf16.mxu0 %v6900_v0  ;;  %v6859_v4 = vld [vmem:[%s10233_s13 + $0x150] sm:$0xff]  ;;  %v6852_v5 = vld [vmem:[%s10233_s13 + $0x118] sm:$0xff] }
 0x837   : > { %4711 = vmatpush1.bf16.msra.mxu0 %v6899_v2  ;;  %v6887_v8 = vcombine.low %v6851_v41, %v6859_v4  ;;  %v6871_v50 = vld [vmem:[%s10233_s13 + $0x1b0] sm:$0xff]  ;;  %v6872_v17 = vld [vmem:[%s10233_s13 + $0x1b8] sm:$0xff] }
 0x838   : > { %v6879_v0 = vld [vmem:[%s10233_s13 + $0x1f0] sm:$0xff]  ;;  %v6880_v2 = vld [vmem:[%s10233_s13 + $0x1f8] sm:$0xff] }
 0x83a   : > { %v4244_v18 = vpop.f32.mrb[88].mxu0  ;;  %v4290_v19 = vpop.f32.mrb[88].mxu1 }
 0x83b   : > { %v4395_v20 = vsel %vm1501_vm4, %v4244_v18, 0.0  ;;  %v7955_v21 = vpop.f32.mrb[89].mxu0  ;;  %v7961_v22 = vpop.f32.mrb[89].mxu1  ;;  %v4397_v7 = vsel %vm1501_vm4, %v4290_v19, 0.0  ;;  %v6860_v18 = vld [vmem:[%s10233_s13 + $0x158] sm:$0xff] }
 0x83c   : > { %v4396_v23 = vadd.f32 %v4395_v20, %v4394_v9  ;;  %v4247_v25 = vpop.f32.mrb[90].mxu0  ;;  %v4293_v26 = vpop.f32.mrb[90].mxu1  ;;  %v6888_v9 = vcombine.high %v6851_v41, %v6859_v4  ;;  %v6889_v19 = vcombine.low %v6852_v5, %v6860_v18  ;;  %v6890_v20 = vcombine.high %v6852_v5, %v6860_v18  ;;  %v8186_v18 = vld [vmem:[%s10235_s15 + $0x4c0] sm:$0xff]  }
 0x83d   : > { %v7956_v27 = vpop.f32.mrb[91].mxu0  ;;  %v7962_v29 = vpop.f32.mrb[91].mxu1  ;;  %v6847_v26 = vld [vmem:[%s10231_s11 + $0x1] sm:$0x1]  ;;  %v6912_v41 = vcombine.high %v6871_v50, %v6879_v0  ;;  %v6914_v4 = vcombine.high %v6872_v17, %v6880_v2  ;;  %v6911_v5 = vcombine.low %v6871_v50, %v6879_v0 }
 0x83e   : > { %v4398_v32 = vadd.f32 %v4397_v7, %v4396_v23  ;;  %4790 = vmatprep.subr.bf16.mxu0 %v6888_v9  ;;  %v6848_v27 = vld [vmem:[%s10232_s12 + $0x1] sm:$0x1] }
 0x83f   : > { %v8185_v9 = vld [vmem:[%s10235_s15 + $0x440] sm:$0xff]  }
 0x842   : > { %v4336_v33 = vpop.f32.mrb[92].mxu0  ;;  %v4382_v35 = vpop.f32.mrb[92].mxu1 }
 0x843   : > { %v4399_v36 = vsel %vm1501_vm4, %v4336_v33, 0.0  ;;  %v7967_v38 = vpop.f32.mrb[93].mxu0  ;;  %v7973_v11 = vpop.f32.mrb[93].mxu1  ;;  %v4401_v46 = vsel %vm1501_vm4, %v4382_v35, 0.0  ;;  %v6875_v33 = vld [vmem:[%s10233_s13 + $0x1d0] sm:$0xff]  ;;  %v6868_v35 = vld [vmem:[%s10233_s13 + $0x198] sm:$0xff] }
 0x844   : > { %v4400_v42 = vadd.f32 %v4399_v36, %v4398_v32  ;;  %v4339_v43 = vpop.f32.mrb[94].mxu0  ;;  %v4385_v44 = vpop.f32.mrb[94].mxu1  ;;  %v6867_v32 = vld [vmem:[%s10233_s13 + $0x190] sm:$0xff]  ;;  %v6876_v36 = vld [vmem:[%s10233_s13 + $0x1d8] sm:$0xff] }
 0x845   : > { %v7968_v48 = vpop.f32.mrb[95].mxu0  ;;  %v7974_v51 = vpop.f32.mrb[95].mxu1  ;;  %v6906_v43 = vcombine.high %v6868_v35, %v6876_v36  ;;  %v6853_v44 = vld [vmem:[%s10233_s13 + $0x120] sm:$0xff] }
 0x846   : > { %v4402_v52 = vadd.f32 %v4401_v46, %v4400_v42  ;;  %v6904_v42 = vcombine.high %v6867_v32, %v6875_v33  ;;  %v6861_v46 = vld [vmem:[%s10233_s13 + $0x160] sm:$0xff]  ;;  %v6862_v48 = vld [vmem:[%s10233_s13 + $0x168] sm:$0xff]  ;;  %v6903_v51 = vcombine.low %v6867_v32, %v6875_v33  ;;  %v8198_v32 = vld [vmem:[%s10235_s15 + $0x4d8] sm:$0xff]  }
 0x847   : > { %v8199_v33 = vld [vmem:[%s10235_s15 + $0x418] sm:$0xff]  }
 0x848   : > { %v4405_v28 = vadd.f32 %v6846_v47, %v4402_v52  ;;  %v6854_v47 = vld [vmem:[%s10233_s13 + $0x128] sm:$0xff]  ;;  %v6905_v52 = vcombine.low %v6868_v35, %v6876_v36  ;;  %v8200_v35 = vld [vmem:[%s10235_s15 + $0x498] sm:$0xff]   ;;  %v8201_v36 = vld [vmem:[%s10235_s15 + $0x460] sm:$0xff]  }
 0x84a   : > { %v4406_v53 = vadd.f32 %v4405_v28, %v9393_v6  ;;  %v6850_v6 = vld [vmem:[%s10233_s13 + $0x108] sm:$0xff]  ;;  %v6892_v28 = vcombine.high %v6853_v44, %v6861_v46 }
 0x84b   : > { %v6885_v39 = vcombine.low %v6850_v6, %v6858_v62  ;;  %v6886_v49 = vcombine.high %v6850_v6, %v6858_v62  ;;  %v6855_v6 = vld [vmem:[%s10233_s13 + $0x130] sm:$0xff]  ;;  %v6856_v62 = vld [vmem:[%s10233_s13 + $0x138] sm:$0xff] }
 0x84c   : > { %v4411_v54 = vsel %vm1501_vm4, %v4406_v53, 0.0  ;;  %v6896_v10 = vcombine.high %v6855_v6, %v6863_v60  ;;  %v6898_v61 = vcombine.high %v6856_v62, %v6864_v63 }
 0x84d   : > { %4412 = vadd.xlane.f32.xlu0 %v4411_v54  ;;  %4749 = vmatprep.subr.bf16.mxu1 %v6886_v49  ;;  %v6869_v54 = vld [vmem:[%s10233_s13 + $0x1a0] sm:$0xff] }
 0x84e   : > { %4750 = vmatpush1.bf16.msra.mxu1 %v6885_v39 }
 0x84f   : > { %4751 = vmatprep.subr.bf16.mxu1 %v6902_v40  ;;  %v6897_v40 = vcombine.low %v6856_v62, %v6864_v63 }
 0x852   : > { %4752 = vmatpush1.bf16.msra.mxu1 %v6901_v3  ;;  %v6895_v3 = vcombine.low %v6855_v6, %v6863_v60 }
 0x853   : > { %4831 = vmatprep.subr.bf16.mxu1 %v6890_v20  ;;  %v8188_v20 = vld [vmem:[%s10235_s15 + $0x480] sm:$0xff]  }
 0x8da   : > { %v4413_v55 = vpop.xlane.xlu0 %4412 }
 0x8db   : > { %v4414_v14 = vmul.f32 0.03125, %v4413_v55  ;;  %v6877_v55 = vld [vmem:[%s10233_s13 + $0x1e0] sm:$0xff] }
 0x8dc   : > { %v6908_v58 = vcombine.high %v6869_v54, %v6877_v55  ;;  %v6907_v39 = vcombine.low %v6869_v54, %v6877_v55  ;;  %v8213_v54 = vld [vmem:[%s10235_s15 + $0x478] sm:$0xff]  }
 0x8dd   : > { %v4415_v37 = vsub.f32 %v4406_v53, %v4414_v14  ;;  %v6894_v53 = vcombine.high %v6854_v47, %v6862_v48  ;;  %v6870_v14 = vld [vmem:[%s10233_s13 + $0x1a8] sm:$0xff]  ;;  %v8214_v55 = vld [vmem:[%s10235_s15 + $0x4f8] sm:$0xff]  }
 0x8df   : > { %v4416_v56 = vmul.f32 %v4415_v37, %v4415_v37 }
 0x8e1   : > { %v4417_v57 = vsel %vm1501_vm4, %v4416_v56, 0.0  ;;  %v6891_v56 = vcombine.low %v6853_v44, %v6861_v46  ;;  %v8205_v44 = vld [vmem:[%s10235_s15 + $0x468] sm:$0xff]  }
 0x8e2   : > { %4418 = vadd.xlane.f32.xlu1 %v4417_v57  ;;  %v6893_v57 = vcombine.low %v6854_v47, %v6862_v48  ;;  %v8206_v46 = vld [vmem:[%s10235_s15 + $0x4e8] sm:$0xff]  }
 0x8e3   : > { %v8207_v47 = vld [vmem:[%s10235_s15 + $0x428] sm:$0xff]  }
 0x8e4   : > { %v8208_v48 = vld [vmem:[%s10235_s15 + $0x4a8] sm:$0xff]  }
 0x96f   : > { %v4419_v21 = vpop.xlane.xlu1 %4418 }
 0x970   : > { %v4420_v22 = vmul.f32 0.03125, %v4419_v21  ;;  %v8189_v21 = vld [vmem:[%s10235_s15 + $0x448] sm:$0xff]  }
 0x972   : > { %v4421_v23 = vadd.f32 1e-05, %v4420_v22  ;;  %v8191_v22 = vld [vmem:[%s10235_s15 + $0x408] sm:$0xff]  }
 0x974   : > { %8319 = vrsqrt.f32 %v4421_v23  ;;  %v8192_v23 = vld [vmem:[%s10235_s15 + $0x488] sm:$0xff]  }
 0x97e   : > { %v8320_v25 = vpop.eup %8319 }
 0x97f   : > { %v4423_v7 = vmul.f32 %v8320_v25, %v4415_v37  ;;  %v6878_v37 = vld [vmem:[%s10233_s13 + $0x1e8] sm:$0xff]  ;;  %v8193_v25 = vld [vmem:[%s10235_s15 + $0x450] sm:$0xff]  }
 0x980   : > { %v6910_v59 = vcombine.high %v6870_v14, %v6878_v37  ;;  %v6909_v49 = vcombine.low %v6870_v14, %v6878_v37  ;;  %v8215_v14 = vld [vmem:[%s10235_s15 + $0x438] sm:$0xff]  }
 0x981   : > { %v4424_v29 = vmul.f32 %v6847_v26, %v4423_v7  ;;  %v8194_v26 = vld [vmem:[%s10235_s15 + $0x4d0] sm:$0xff]   ;;  %v8216_v37 = vld [vmem:[%s10235_s15 + $0x4b8] sm:$0xff]  }
 0x982   : > { %v8195_v7 = vld [vmem:[%s10235_s15 + $0x410] sm:$0xff]  }
 0x983   : > { %v9621_v38 = vadd.f32 %v6848_v27, %v4424_v29  ;;  %v8196_v27 = vld [vmem:[%s10235_s15 + $0x490] sm:$0xff]   ;;  %v8197_v29 = vld [vmem:[%s10235_s15 + $0x458] sm:$0xff]  }
 0x985   : > { %v9625_v11 = vpack.c.bf16 %v9621_v38, %v9621_v38 }
 0x987   : > { %6915 = vmatmul.mubr.msk.bf16.vlgmr.msra.gmra.mrb[96].mxu0 %vm707_vm1, %v9625_v11  ;;  %6916 = vmatmul.mubr.msk.bf16.vlgmr.msra.gmra.mrb[96].mxu1 %vm707_vm1, %v9625_v11 }
 0x988   : > { %4791 = vmatpush1.bf16.msra.mxu0 %v6887_v8  ;;  %4832 = vmatpush1.bf16.msra.mxu1 %v6889_v19  ;;  %v6913_v8 = vcombine.low %v6872_v17, %v6880_v2  ;;  %v8187_v19 = vld [vmem:[%s10235_s15 + $0x400] sm:$0xff]  }
 0x989   : > { %4792 = vmatprep.subr.bf16.mxu0 %v6904_v42  ;;  %4833 = vmatprep.subr.bf16.mxu1 %v6906_v43  ;;  %v8203_v42 = vld [vmem:[%s10235_s15 + $0x420] sm:$0xff]  }
 0x98a   : > { %4822 = vmatprep.mubr.bf16.mxu0 %v8389_v45  ;;  %4863 = vmatprep.mubr.bf16.mxu1 %v8389_v45  ;;  %v8204_v43 = vld [vmem:[%s10235_s15 + $0x4a0] sm:$0xff]  }
 0x98c   : > { %4793 = vmatpush1.bf16.msra.mxu0 %v6903_v51  ;;  %4834 = vmatpush1.bf16.msra.mxu1 %v6905_v52  ;;  %v8209_v51 = vld [vmem:[%s10235_s15 + $0x470] sm:$0xff]  }
 0x98d   : > { %4872 = vmatprep.subr.bf16.mxu0 %v6892_v28  ;;  %4913 = vmatprep.subr.bf16.mxu1 %v6894_v53  ;;  %v8210_v52 = vld [vmem:[%s10235_s15 + $0x4f0] sm:$0xff]  }
 0x98e   : > { %v8211_v28 = vld [vmem:[%s10235_s15 + $0x430] sm:$0xff]  }
 0x98f   : > { %6917 = vmatmul.mubr.msk.bf16.vlgmr.msra.gmra.mrb[100].mxu0 %vm707_vm1, %v9625_v11  ;;  %6918 = vmatmul.mubr.msk.bf16.vlgmr.msra.gmra.mrb[100].mxu1 %vm707_vm1, %v9625_v11  ;;  %v8212_v53 = vld [vmem:[%s10235_s15 + $0x4b0] sm:$0xff]  }
 0x990   : > { %4873 = vmatpush1.bf16.msra.mxu0 %v6891_v56  ;;  %4914 = vmatpush1.bf16.msra.mxu1 %v6893_v57  ;;  %v8217_v56 = vld [vmem:[%s10235_s15 + $0x540] sm:$0xff]  }
 0x991   : > { %4874 = vmatprep.subr.bf16.mxu0 %v6908_v58  ;;  %4915 = vmatprep.subr.bf16.mxu1 %v6910_v59  ;;  %v8218_v57 = vld [vmem:[%s10235_s15 + $0x5c0] sm:$0xff]   ;;  %v9802_v58 = vld [vmem:[%s10234_s14 + $0x10] sm:$0xff] }
 0x992   : > { %4904 = vmatprep.mubr.bf16.mxu0 %v8389_v45  ;;  %4945 = vmatprep.mubr.bf16.mxu1 %v8389_v45  ;;  %v4628_v59 = vrot.slane %v9802_v58, %v8988_v12  ;;  %v4636_v6 = vrot.slane %v9802_v58, %v8991_v13  ;;  %v4632_v60 = vrot.slane %v9802_v58, %v8999_v15 }
 0x993   : > { %v4640_v62 = vrot.slane %v9802_v58, %v9002_v16 }
 0x994   : > { %4875 = vmatpush1.bf16.msra.mxu0 %v6907_v39  ;;  %4916 = vmatpush1.bf16.msra.mxu1 %v6909_v49 }
 0x995   : > { %4954 = vmatprep.subr.bf16.mxu0 %v6896_v10  ;;  %4995 = vmatprep.subr.bf16.mxu1 %v6898_v61 }
 0x997   : > { %6919 = vmatmul.mubr.msk.bf16.vlgmr.msra.gmra.mrb[104].mxu0 %vm707_vm1, %v9625_v11  ;;  %6920 = vmatmul.mubr.msk.bf16.vlgmr.msra.gmra.mrb[104].mxu1 %vm707_vm1, %v9625_v11 }
 0x998   : > { %4955 = vmatpush1.bf16.msra.mxu0 %v6895_v3  ;;  %4996 = vmatpush1.bf16.msra.mxu1 %v6897_v40 }
 0x999   : > { %4956 = vmatprep.subr.bf16.mxu0 %v6912_v41  ;;  %4997 = vmatprep.subr.bf16.mxu1 %v6914_v4 }
 0x99a   : > { %4986 = vmatprep.mubr.bf16.mxu0 %v8389_v45  ;;  %5027 = vmatprep.mubr.bf16.mxu1 %v8389_v45  ;;  %v8190_v45 = vld [vmem:[%s10235_s15 + $0x4c8] sm:$0xff]  }
 0x99c   : > { %4957 = vmatpush1.bf16.msra.mxu0 %v6911_v5  ;;  %4998 = vmatpush1.bf16.msra.mxu1 %v6913_v8 }
 0x99d   : > { %7572 = vmatprep.subr.bf16.mxu0 %v8185_v9  ;;  %7594 = vmatprep.subr.bf16.mxu1 %v8186_v18 }
 0x99f   : > { %6921 = vmatmul.mubr.msk.bf16.vlgmr.msra.gmra.mrb[108].mxu0 %vm707_vm1, %v9625_v11  ;;  %6922 = vmatmul.mubr.msk.bf16.vlgmr.msra.gmra.mrb[108].mxu1 %vm707_vm1, %v9625_v11  ;;  %v8202_v11 = vld [vmem:[%s10235_s15 + $0x4e0] sm:$0xff]  }
 0x9a0   : > { %7573 = vmatpush3.bf16.msra.mxu0 %v8187_v19  ;;  %7595 = vmatpush3.bf16.msra.mxu1 %v8188_v20  ;;  %v4648_v20 = vrot.slane %v9802_v58, %v9013_v30 }
 0x9a1   : > { %7574 = vmatprep.subr.bf16.mxu0 %v8189_v21  ;;  %7596 = vmatprep.subr.bf16.mxu1 %v8190_v45  ;;  %v4656_v21 = vrot.slane %v9802_v58, %v9016_v31  ;;  %v8219_v45 = vld [vmem:[%s10235_s15 + $0x500] sm:$0xff]  }
 0x9a4   : > { %7575 = vmatpush3.bf16.msra.mxu0 %v8191_v22  ;;  %7597 = vmatpush3.bf16.msra.mxu1 %v8192_v23  ;;  %v8220_v22 = vld [vmem:[%s10235_s15 + $0x580] sm:$0xff]  }
 0x9a5   : > { %7576 = vmatprep.subr.bf16.mxu0 %v8193_v25  ;;  %7598 = vmatprep.subr.bf16.mxu1 %v8194_v26  ;;  %v8221_v26 = vld [vmem:[%s10235_s15 + $0x548] sm:$0xff]  }
 0x9a8   : > { %7577 = vmatpush3.bf16.msra.mxu0 %v8195_v7  ;;  %7599 = vmatpush3.bf16.msra.mxu1 %v8196_v27  ;;  %v8222_v7 = vld [vmem:[%s10235_s15 + $0x5c8] sm:$0xff]  }
 0x9a9   : > { %7578 = vmatprep.subr.bf16.mxu0 %v8197_v29  ;;  %7600 = vmatprep.subr.bf16.mxu1 %v8198_v32 }
 0x9ac   : > { %7579 = vmatpush3.bf16.msra.mxu0 %v8199_v33  ;;  %7601 = vmatpush3.bf16.msra.mxu1 %v8200_v35 }
 0x9ad   : > { %7580 = vmatprep.subr.bf16.mxu0 %v8201_v36  ;;  %7602 = vmatprep.subr.bf16.mxu1 %v8202_v11 }
 0x9b0   : > { %7581 = vmatpush3.bf16.msra.mxu0 %v8203_v42  ;;  %7603 = vmatpush3.bf16.msra.mxu1 %v8204_v43  ;;  %v8223_v43 = vld [vmem:[%s10235_s15 + $0x508] sm:$0xff]  }
 0x9b1   : > { %7582 = vmatprep.subr.bf16.mxu0 %v8205_v44  ;;  %7604 = vmatprep.subr.bf16.mxu1 %v8206_v46  ;;  %v8224_v44 = vld [vmem:[%s10235_s15 + $0x588] sm:$0xff]  }
 0x9b4   : > { %7583 = vmatpush3.bf16.msra.mxu0 %v8207_v47  ;;  %7605 = vmatpush3.bf16.msra.mxu1 %v8208_v48  ;;  %v8225_v48 = vld [vmem:[%s10235_s15 + $0x550] sm:$0xff]  }
 0x9b5   : > { %7584 = vmatprep.subr.bf16.mxu0 %v8209_v51  ;;  %7606 = vmatprep.subr.bf16.mxu1 %v8210_v52  ;;  %v8226_v51 = vld [vmem:[%s10235_s15 + $0x5d0] sm:$0xff]  }
 0x9b8   : > { %7585 = vmatpush3.bf16.msra.mxu0 %v8211_v28  ;;  %7607 = vmatpush3.bf16.msra.mxu1 %v8212_v53 }
 0x9b9   : > { %7586 = vmatprep.subr.bf16.mxu0 %v8213_v54  ;;  %7608 = vmatprep.subr.bf16.mxu1 %v8214_v55  ;;  %v8227_v55 = vld [vmem:[%s10235_s15 + $0x510] sm:$0xff]  }
 0x9bc   : > { %7587 = vmatpush3.bf16.msra.mxu0 %v8215_v14  ;;  %7609 = vmatpush3.bf16.msra.mxu1 %v8216_v37  ;;  %v8228_v14 = vld [vmem:[%s10235_s15 + $0x590] sm:$0xff]   ;;  %v8229_v37 = vld [vmem:[%s10235_s15 + $0x558] sm:$0xff]  }
 0x9bd   : > { %7616 = vmatprep.subr.bf16.mxu0 %v8217_v56  ;;  %7638 = vmatprep.subr.bf16.mxu1 %v8218_v57  ;;  %v8230_v56 = vld [vmem:[%s10235_s15 + $0x5d8] sm:$0xff]  }
 0xa5a   : > { %v4742_v63 = vpop.f32.mrb[96].mxu0  ;;  %v4783_v39 = vpop.f32.mrb[96].mxu1 }
 0xa5b   : > { %v4743_v49 = vadd.f32 %v4742_v63, %v4628_v59  ;;  %v4784_v10 = vadd.f32 %v4783_v39, %v4636_v6  ;;  %v4744_v61 = vpop.f32.mrb[97].mxu0  ;;  %v4785_v50 = vpop.f32.mrb[97].mxu1  ;;  %v8231_v39 = vld [vmem:[%s10235_s15 + $0x518] sm:$0xff]  }
 0xa5c   : > { %v4745_v0 = vadd.f32 %v4744_v61, %v4632_v60  ;;  %v4786_v17 = vadd.f32 %v4785_v50, %v4640_v62  ;;  %v4746_v2 = vpop.f32.mrb[98].mxu0  ;;  %v4787_v3 = vpop.f32.mrb[98].mxu1  ;;  %v8233_v50 = vld [vmem:[%s10235_s15 + $0x560] sm:$0xff]  }
 0xa5d   : > { %v5036_v40 = vmax.f32 %v4743_v49, 0.0  ;;  %v5038_v41 = vmax.f32 %v4784_v10, 0.0  ;;  %v4747_v4 = vpop.f32.mrb[99].mxu0  ;;  %v4788_v5 = vpop.f32.mrb[99].mxu1  ;;  %v8232_v49 = vld [vmem:[%s10235_s15 + $0x598] sm:$0xff]   ;;  %v8235_v3 = vld [vmem:[%s10235_s15 + $0x520] sm:$0xff]  }
 0xa5e   : > { %v5037_v8 = vmax.f32 %v4745_v0, 0.0  ;;  %v5039_v9 = vmax.f32 %v4786_v17, 0.0  ;;  %v8234_v0 = vld [vmem:[%s10235_s15 + $0x5e0] sm:$0xff]   ;;  %v9875_v17 = vld [vmem:[%s10234_s14 + $0x18] sm:$0xff]  ;;  %v8238_v4 = vld [vmem:[%s10235_s15 + $0x5e8] sm:$0xff]  }
 0xa5f   : > { %v5052_v23 = vpack.c.bf16 %v5036_v40, %v5036_v40  ;;  %v5054_v25 = vpack.c.bf16 %v5038_v41, %v5038_v41  ;;  %v4684_v2 = vrot.slane %v9875_v17, %v9073_v24  ;;  %v8236_v40 = vld [vmem:[%s10235_s15 + $0x5a0] sm:$0xff]   ;;  %v8237_v41 = vld [vmem:[%s10235_s15 + $0x568] sm:$0xff]  }
 0xa60   : > { %v5053_v18 = vpack.c.bf16 %v5037_v8, %v5037_v8  ;;  %v5055_v19 = vpack.c.bf16 %v5039_v9, %v5039_v9 }
 0xa62   : > { %v9828_v27 = vpop.f32.mrb[100].mxu0  ;;  %v9830_v29 = vpop.f32.mrb[100].mxu1  ;;  %6127 = vmatprep.mubr.bf16.mxu0 %v5053_v18  ;;  %6167 = vmatprep.mubr.bf16.mxu1 %v5055_v19 }
 0xa63   : > { %v4826_v32 = vpop.f32.mrb[101].mxu0  ;;  %v4867_v33 = vpop.f32.mrb[101].mxu1  ;;  %6128 = vmatmul.mubr.bf16.vlgmr.msra.gmra.mrb[112].mxu0 %v5052_v23  ;;  %6168 = vmatmul.mubr.bf16.vlgmr.msra.gmra.mrb[112].mxu1 %v5054_v25  ;;  %v4644_v23 = vrot.slane %v9802_v58, %v9095_v34  ;;  %v4652_v25 = vrot.slane %v9802_v58, %v9073_v24  ;;  %v8243_v24 = vld [vmem:[%s10235_s15 + $0x530] sm:$0xff]  }
 0xa64   : > { %v4827_v35 = vadd.f32 %v4826_v32, %v4648_v20  ;;  %v4868_v36 = vadd.f32 %v4867_v33, %v4656_v21  ;;  %7617 = vmatpush3.bf16.msra.mxu0 %v8219_v45  ;;  %7639 = vmatpush3.bf16.msra.mxu1 %v8220_v22  ;;  %v4828_v11 = vpop.f32.mrb[102].mxu0  ;;  %v4869_v42 = vpop.f32.mrb[102].mxu1  ;;  %v8239_v45 = vld [vmem:[%s10235_s15 + $0x528] sm:$0xff]   ;;  %v8241_v32 = vld [vmem:[%s10235_s15 + $0x570] sm:$0xff]  }
 0xa65   : > { %v4829_v46 = vpop.f32.mrb[103].mxu0  ;;  %v4870_v47 = vpop.f32.mrb[103].mxu1  ;;  %7618 = vmatprep.subr.bf16.mxu0 %v8221_v26  ;;  %7640 = vmatprep.subr.bf16.mxu1 %v8222_v7  ;;  %v8240_v22 = vld [vmem:[%s10235_s15 + $0x5a8] sm:$0xff]   ;;  %v8242_v33 = vld [vmem:[%s10235_s15 + $0x5f0] sm:$0xff]   ;;  %v4825_v11 = vadd.f32 %v9828_v27, %v4644_v23  ;;  %v4866_v42 = vadd.f32 %v9830_v29, %v4652_v25  ;;  %v8247_v27 = vld [vmem:[%s10235_s15 + $0x538] sm:$0xff]  }
 0xa66   : > { %v5041_v52 = vmax.f32 %v4827_v35, 0.0  ;;  %v5043_v28 = vmax.f32 %v4868_v36, 0.0  ;;  %v4664_v35 = vrot.slane %v9875_v17, %v8999_v15  ;;  %v4672_v36 = vrot.slane %v9875_v17, %v9002_v16  ;;  %v8244_v58 = vld [vmem:[%s10235_s15 + $0x5b0] sm:$0xff]   ;;  %v8245_v15 = vld [vmem:[%s10235_s15 + $0x578] sm:$0xff]   ;;  %v8272_v23 = vld [vmem:[%s10235_s15 + $0x6a8] sm:$0xff]  }
 0xa67   : > { %v8246_v16 = vld [vmem:[%s10235_s15 + $0x5f8] sm:$0xff]   ;;  %v5040_v46 = vmax.f32 %v4825_v11, 0.0  ;;  %v5042_v47 = vmax.f32 %v4866_v42, 0.0  ;;  %v8273_v25 = vld [vmem:[%s10235_s15 + $0x670] sm:$0xff]   ;;  %v8281_v42 = vld [vmem:[%s10235_s15 + $0x740] sm:$0xff]  }
 0xa68   : > { %v5057_v53 = vpack.c.bf16 %v5041_v52, %v5041_v52  ;;  %v5059_v54 = vpack.c.bf16 %v5043_v28, %v5043_v28  ;;  %7619 = vmatpush3.bf16.msra.mxu0 %v8223_v43  ;;  %7641 = vmatpush3.bf16.msra.mxu1 %v8224_v44  ;;  %v8248_v29 = vld [vmem:[%s10235_s15 + $0x5b8] sm:$0xff]  }
 0xa69   : > { %7620 = vmatprep.subr.bf16.mxu0 %v8225_v48  ;;  %7642 = vmatprep.subr.bf16.mxu1 %v8226_v51  ;;  %v8249_v48 = vld [vmem:[%s10235_s15 + $0x640] sm:$0xff]  }
 0xa6a   : > { %v9856_v57 = vpop.f32.mrb[104].mxu0  ;;  %v9858_v59 = vpop.f32.mrb[104].mxu1  ;;  %6207 = vmatprep.mubr.bf16.mxu0 %v5057_v53  ;;  %6247 = vmatprep.mubr.bf16.mxu1 %v5059_v54  ;;  %v8250_v51 = vld [vmem:[%s10235_s15 + $0x6c0] sm:$0xff]   ;;  %v5056_v54 = vpack.c.bf16 %v5040_v46, %v5040_v46  ;;  %v8285_v46 = vld [vmem:[%s10235_s15 + $0x748] sm:$0xff]  }
 0xa6b   : > { %v4908_v6 = vpop.f32.mrb[105].mxu0  ;;  %v4949_v60 = vpop.f32.mrb[105].mxu1  ;;  %v8251_v53 = vld [vmem:[%s10235_s15 + $0x600] sm:$0xff]  }
 0xa6c   : > { %7621 = vmatpush3.bf16.msra.mxu0 %v8227_v55  ;;  %7643 = vmatpush3.bf16.msra.mxu1 %v8228_v14  ;;  %v4910_v62 = vpop.f32.mrb[106].mxu0  ;;  %v4951_v63 = vpop.f32.mrb[106].mxu1  ;;  %v4909_v43 = vadd.f32 %v4908_v6, %v4664_v35  ;;  %v4950_v44 = vadd.f32 %v4949_v60, %v4672_v36  ;;  %v5058_v55 = vpack.c.bf16 %v5042_v47, %v5042_v47  ;;  %v8252_v14 = vld [vmem:[%s10235_s15 + $0x680] sm:$0xff]   ;;  %v8254_v6 = vld [vmem:[%s10235_s15 + $0x6c8] sm:$0xff]  }
 0xa6d   : > { %v4911_v10 = vpop.f32.mrb[107].mxu0  ;;  %v4952_v61 = vpop.f32.mrb[107].mxu1  ;;  %7622 = vmatprep.subr.bf16.mxu0 %v8229_v37  ;;  %7644 = vmatprep.subr.bf16.mxu1 %v8230_v56  ;;  %v8253_v56 = vld [vmem:[%s10235_s15 + $0x648] sm:$0xff]  }
 0xa6e   : > { %v5045_v52 = vmax.f32 %v4909_v43, 0.0  ;;  %v5047_v28 = vmax.f32 %v4950_v44, 0.0  ;;  %v8255_v62 = vld [vmem:[%s10235_s15 + $0x608] sm:$0xff]   ;;  %v8259_v10 = vld [vmem:[%s10235_s15 + $0x610] sm:$0xff]   ;;  %v8283_v43 = vld [vmem:[%s10235_s15 + $0x700] sm:$0xff]  }
 0xa6f   : > { %v8256_v63 = vld [vmem:[%s10235_s15 + $0x688] sm:$0xff]   ;;  %v8260_v61 = vld [vmem:[%s10235_s15 + $0x690] sm:$0xff]  }
 0xa70   : > { %7623 = vmatpush3.bf16.msra.mxu0 %v8231_v39  ;;  %7645 = vmatpush3.bf16.msra.mxu1 %v8232_v49  ;;  %v5061_v37 = vpack.c.bf16 %v5045_v52, %v5045_v52  ;;  %v5063_v60 = vpack.c.bf16 %v5047_v28, %v5047_v28  ;;  %v8257_v39 = vld [vmem:[%s10235_s15 + $0x650] sm:$0xff]   ;;  %v8287_v52 = vld [vmem:[%s10235_s15 + $0x708] sm:$0xff]  }
 0xa71   : > { %7624 = vmatprep.subr.bf16.mxu0 %v8233_v50  ;;  %7646 = vmatprep.subr.bf16.mxu1 %v8234_v0  ;;  %v8258_v49 = vld [vmem:[%s10235_s15 + $0x6d0] sm:$0xff]   ;;  %v8261_v50 = vld [vmem:[%s10235_s15 + $0x658] sm:$0xff]   ;;  %v8288_v28 = vld [vmem:[%s10235_s15 + $0x788] sm:$0xff]  }
 0xa72   : > { %v9891_v5 = vpop.f32.mrb[108].mxu0  ;;  %v5029_v8 = vpop.f32.mrb[108].mxu1  ;;  %v8262_v0 = vld [vmem:[%s10235_s15 + $0x6d8] sm:$0xff]  }
 0xa73   : > { %v9893_v9 = vadd.f32 %v5029_v8, %v4684_v2  ;;  %v9895_v18 = vpop.f32.mrb[109].mxu0  ;;  %v9897_v19 = vpop.f32.mrb[109].mxu1  ;;  %v8263_v2 = vld [vmem:[%s10235_s15 + $0x618] sm:$0xff]   ;;  %v8268_v8 = vld [vmem:[%s10235_s15 + $0x6a0] sm:$0xff]  }
 0xa74   : > { %7625 = vmatpush3.bf16.msra.mxu0 %v8235_v3  ;;  %7647 = vmatpush3.bf16.msra.mxu1 %v8236_v40  ;;  %v4992_v20 = vpop.f32.mrb[110].mxu0  ;;  %v5033_v21 = vpop.f32.mrb[110].mxu1  ;;  %v8264_v3 = vld [vmem:[%s10235_s15 + $0x698] sm:$0xff]   ;;  %v8265_v40 = vld [vmem:[%s10235_s15 + $0x660] sm:$0xff]  }
 0xa75   : > { %v4993_v26 = vpop.f32.mrb[111].mxu0  ;;  %v5034_v7 = vpop.f32.mrb[111].mxu1  ;;  %7626 = vmatprep.subr.bf16.mxu0 %v8237_v41  ;;  %7648 = vmatprep.subr.bf16.mxu1 %v8238_v4  ;;  %v8266_v41 = vld [vmem:[%s10235_s15 + $0x6e0] sm:$0xff]   ;;  %v8269_v20 = vld [vmem:[%s10235_s15 + $0x668] sm:$0xff]  }
 0xa76   : > { %v8267_v4 = vld [vmem:[%s10235_s15 + $0x620] sm:$0xff]   ;;  %v8270_v21 = vld [vmem:[%s10235_s15 + $0x6e8] sm:$0xff]   ;;  %v4668_v26 = vrot.slane %v9875_v17, %v8991_v13  ;;  %v8274_v7 = vld [vmem:[%s10235_s15 + $0x6f0] sm:$0xff]  }
 0xa77   : > { %v8276_v13 = vld [vmem:[%s10235_s15 + $0x6b0] sm:$0xff]  }
 0xa78   : > { %7627 = vmatpush3.bf16.msra.mxu0 %v8239_v45  ;;  %7649 = vmatpush3.bf16.msra.mxu1 %v8240_v22  ;;  %v8271_v45 = vld [vmem:[%s10235_s15 + $0x628] sm:$0xff]   ;;  %v4660_v22 = vrot.slane %v9875_v17, %v8988_v12  ;;  %v4680_v12 = vrot.slane %v9875_v17, %v9013_v30  ;;  %v8277_v30 = vld [vmem:[%s10235_s15 + $0x678] sm:$0xff]   ;;  %v4948_v36 = vadd.f32 %v9858_v59, %v4668_v26 }
 0xa79   : > { %7628 = vmatprep.subr.bf16.mxu0 %v8241_v32  ;;  %7650 = vmatprep.subr.bf16.mxu1 %v8242_v33  ;;  %v4688_v32 = vrot.slane %v9875_v17, %v9016_v31  ;;  %v8275_v33 = vld [vmem:[%s10235_s15 + $0x630] sm:$0xff]   ;;  %v8278_v31 = vld [vmem:[%s10235_s15 + $0x6f8] sm:$0xff]  }
 0xa7a   : > { %v4907_v35 = vadd.f32 %v9856_v57, %v4660_v22  ;;  %v8280_v59 = vld [vmem:[%s10235_s15 + $0x6b8] sm:$0xff]  }
 0xa7b   : > { %v5032_v57 = vadd.f32 %v9897_v19, %v4688_v32 }
 0xa7c   : > { %7629 = vmatpush3.bf16.msra.mxu0 %v8243_v24  ;;  %7651 = vmatpush3.bf16.msra.mxu1 %v8244_v58  ;;  %v4991_v24 = vadd.f32 %v9895_v18, %v4680_v12  ;;  %v8279_v58 = vld [vmem:[%s10235_s15 + $0x638] sm:$0xff]   ;;  %v5044_v11 = vmax.f32 %v4907_v35, 0.0  ;;  %v8282_v18 = vld [vmem:[%s10235_s15 + $0x7c0] sm:$0xff]  }
 0xa7d   : > { %7630 = vmatprep.subr.bf16.mxu0 %v8245_v15  ;;  %7652 = vmatprep.subr.bf16.mxu1 %v8246_v16  ;;  %v5046_v15 = vmax.f32 %v4948_v36, 0.0  ;;  %v5051_v16 = vmax.f32 %v5032_v57, 0.0 }
 0xa7e   : > { %v5049_v19 = vmax.f32 %v4991_v24, 0.0  ;;  %v5060_v44 = vpack.c.bf16 %v5044_v11, %v5044_v11 }
 0xa80   : > { %7631 = vmatpush3.bf16.msra.mxu0 %v8247_v27  ;;  %7653 = vmatpush3.bf16.msra.mxu1 %v8248_v29  ;;  %v8284_v27 = vld [vmem:[%s10235_s15 + $0x780] sm:$0xff]   ;;  %v5062_v29 = vpack.c.bf16 %v5046_v15, %v5046_v15  ;;  %v5065_v47 = vpack.c.bf16 %v5049_v19, %v5049_v19 }
 0xa81   : > { %7660 = vmatprep.subr.bf16.mxu0 %v8249_v48  ;;  %7682 = vmatprep.subr.bf16.mxu1 %v8250_v51  ;;  %v8286_v48 = vld [vmem:[%s10235_s15 + $0x7c8] sm:$0xff]   ;;  %v5067_v51 = vpack.c.bf16 %v5051_v16, %v5051_v16 }
 0xa83   : > { %6208 = vmatmul.mubr.bf16.vlgmr.msra.gmra.mrb[116].mxu0 %v5056_v54  ;;  %6248 = vmatmul.mubr.bf16.vlgmr.msra.gmra.mrb[116].mxu1 %v5058_v55  ;;  %v8290_v54 = vld [vmem:[%s10235_s15 + $0x7d0] sm:$0xff]  }
 0xa84   : > { %7661 = vmatpush3.bf16.msra.mxu0 %v8251_v53  ;;  %6287 = vmatprep.mubr.bf16.mxu0 %v5061_v37  ;;  %v8289_v53 = vld [vmem:[%s10235_s15 + $0x750] sm:$0xff]   ;;  %v8293_v37 = vld [vmem:[%s10235_s15 + $0x758] sm:$0xff]  }
 0xa85   : > { %7683 = vmatpush3.bf16.msra.mxu1 %v8252_v14  ;;  %6327 = vmatprep.mubr.bf16.mxu1 %v5063_v60  ;;  %v8291_v55 = vld [vmem:[%s10235_s15 + $0x710] sm:$0xff]   ;;  %v8296_v60 = vld [vmem:[%s10235_s15 + $0x798] sm:$0xff]  }
 0xa86   : > { %7662 = vmatprep.subr.bf16.mxu0 %v8253_v56  ;;  %7684 = vmatprep.subr.bf16.mxu1 %v8254_v6  ;;  %v8292_v14 = vld [vmem:[%s10235_s15 + $0x790] sm:$0xff]   ;;  %v8294_v56 = vld [vmem:[%s10235_s15 + $0x7d8] sm:$0xff]  }
 0xa87   : > { %v8295_v6 = vld [vmem:[%s10235_s15 + $0x718] sm:$0xff]  }
 0xa88   : > { %7663 = vmatpush3.bf16.msra.mxu0 %v8255_v62  ;;  %v8297_v62 = vld [vmem:[%s10235_s15 + $0x760] sm:$0xff]  }
 0xa89   : > { %7685 = vmatpush3.bf16.msra.mxu1 %v8256_v63  ;;  %7664 = vmatprep.subr.bf16.mxu0 %v8257_v39  ;;  %v8298_v63 = vld [vmem:[%s10235_s15 + $0x7e0] sm:$0xff]  }
 0xa8a   : > { %7686 = vmatprep.subr.bf16.mxu1 %v8258_v49  ;;  %v8299_v39 = vld [vmem:[%s10235_s15 + $0x720] sm:$0xff]  }
 0xa8b   : > { %v8300_v49 = vld [vmem:[%s10235_s15 + $0x7a0] sm:$0xff]  }
 0xa8c   : > { %7665 = vmatpush3.bf16.msra.mxu0 %v8259_v10  ;;  %v8301_v10 = vld [vmem:[%s10235_s15 + $0x768] sm:$0xff]  }
 0xa8d   : > { %7687 = vmatpush3.bf16.msra.mxu1 %v8260_v61  ;;  %7666 = vmatprep.subr.bf16.mxu0 %v8261_v50  ;;  %v8302_v61 = vld [vmem:[%s10235_s15 + $0x7e8] sm:$0xff]  }
 0xa8e   : > { %7688 = vmatprep.subr.bf16.mxu1 %v8262_v0  ;;  %v8303_v50 = vld [vmem:[%s10235_s15 + $0x728] sm:$0xff]   ;;  %v4676_v0 = vrot.slane %v9875_v17, %v9095_v34  ;;  %v8307_v34 = vld [vmem:[%s10235_s15 + $0x730] sm:$0xff]  }
 0xa90   : > { %7667 = vmatpush3.bf16.msra.mxu0 %v8263_v2  ;;  %v8304_v2 = vld [vmem:[%s10235_s15 + $0x7a8] sm:$0xff]   ;;  %v4989_v17 = vadd.f32 %v9891_v5, %v4676_v0  ;;  %v8311_v5 = vld [vmem:[%s10235_s15 + $0x738] sm:$0xff]  }
 0xa91   : > { %7689 = vmatpush3.bf16.msra.mxu1 %v8264_v3  ;;  %7668 = vmatprep.subr.bf16.mxu0 %v8265_v40  ;;  %v8305_v3 = vld [vmem:[%s10235_s15 + $0x770] sm:$0xff]  }
 0xa92   : > { %7690 = vmatprep.subr.bf16.mxu1 %v8266_v41  ;;  %v8306_v40 = vld [vmem:[%s10235_s15 + $0x7f0] sm:$0xff]  }
 0xa93   : > { %v8308_v41 = vld [vmem:[%s10235_s15 + $0x7b0] sm:$0xff]  }
 0xa94   : > { %7669 = vmatpush3.bf16.msra.mxu0 %v8267_v4  ;;  %v8309_v4 = vld [vmem:[%s10235_s15 + $0x778] sm:$0xff]  }
 0xa95   : > { %7691 = vmatpush3.bf16.msra.mxu1 %v8268_v8  ;;  %7670 = vmatprep.subr.bf16.mxu0 %v8269_v20  ;;  %v8310_v8 = vld [vmem:[%s10235_s15 + $0x7f8] sm:$0xff]   ;;  %v5048_v20 = vmax.f32 %v4989_v17, 0.0 }
 0xa96   : > { %7692 = vmatprep.subr.bf16.mxu1 %v8270_v21  ;;  %v8312_v21 = vld [vmem:[%s10235_s15 + $0x7b8] sm:$0xff]  }
 0xa97   : > { %v5064_v22 = vpack.c.bf16 %v5048_v20, %v5048_v20 }
 0xa98   : > { %7671 = vmatpush3.bf16.msra.mxu0 %v8271_v45  ;;  %v5050_v45 = vmax.f32 %v9893_v9, 0.0 }
 0xa99   : > { %7693 = vmatpush3.bf16.msra.mxu1 %v8272_v23  ;;  %7672 = vmatprep.subr.bf16.mxu0 %v8273_v25 }
 0xa9a   : > { %7694 = vmatprep.subr.bf16.mxu1 %v8274_v7  ;;  %v5066_v23 = vpack.c.bf16 %v5050_v45, %v5050_v45  ;;  %v7179_v7 = vld [vmem:[%s10236_s16 + $0x1] sm:$0x1] }
 0xa9c   : > { %7673 = vmatpush3.bf16.msra.mxu0 %v8275_v33 }
 0xa9d   : > { %7695 = vmatpush3.bf16.msra.mxu1 %v8276_v13  ;;  %7674 = vmatprep.subr.bf16.mxu0 %v8277_v30 }
 0xa9e   : > { %7696 = vmatprep.subr.bf16.mxu1 %v8278_v31 }
 0xaa0   : > { %7675 = vmatpush3.bf16.msra.mxu0 %v8279_v58 }
 0xaa1   : > { %7697 = vmatpush3.bf16.msra.mxu1 %v8280_v59  ;;  %7704 = vmatprep.subr.bf16.mxu0 %v8281_v42 }
 0xaa2   : > { %7726 = vmatprep.subr.bf16.mxu1 %v8282_v18 }
 0xaa3   : > { %6288 = vmatmul.mubr.bf16.vlgmr.msra.gmra.mrb[120].mxu0 %v5060_v44 }
 0xaa4   : > { %6328 = vmatmul.mubr.bf16.vlgmr.msra.gmra.mrb[120].mxu1 %v5062_v29  ;;  %7705 = vmatpush3.bf16.msra.mxu0 %v8283_v43 }
 0xaa5   : > { %6367 = vmatprep.mubr.bf16.mxu0 %v5065_v47  ;;  %7727 = vmatpush3.bf16.msra.mxu1 %v8284_v27 }
 0xaa6   : > { %6407 = vmatprep.mubr.bf16.mxu1 %v5067_v51  ;;  %7706 = vmatprep.subr.bf16.mxu0 %v8285_v46 }
 0xaa7   : > { %7728 = vmatprep.subr.bf16.mxu1 %v8286_v48 }
 0xaa8   : > { %7707 = vmatpush3.bf16.msra.mxu0 %v8287_v52 }
 0xaa9   : > { %7729 = vmatpush3.bf16.msra.mxu1 %v8288_v28  ;;  %7708 = vmatprep.subr.bf16.mxu0 %v8289_v53 }
 0xaaa   : > { %7730 = vmatprep.subr.bf16.mxu1 %v8290_v54 }
 0xaac   : > { %7709 = vmatpush3.bf16.msra.mxu0 %v8291_v55 }
 0xaad   : > { %7731 = vmatpush3.bf16.msra.mxu1 %v8292_v14  ;;  %7710 = vmatprep.subr.bf16.mxu0 %v8293_v37 }
 0xaae   : > { %7732 = vmatprep.subr.bf16.mxu1 %v8294_v56 }
 0xab0   : > { %7711 = vmatpush3.bf16.msra.mxu0 %v8295_v6 }
 0xab1   : > { %7733 = vmatpush3.bf16.msra.mxu1 %v8296_v60  ;;  %7712 = vmatprep.subr.bf16.mxu0 %v8297_v62 }
 0xab2   : > { %7734 = vmatprep.subr.bf16.mxu1 %v8298_v63 }
 0xab4   : > { %7713 = vmatpush3.bf16.msra.mxu0 %v8299_v39 }
 0xab5   : > { %7735 = vmatpush3.bf16.msra.mxu1 %v8300_v49  ;;  %7714 = vmatprep.subr.bf16.mxu0 %v8301_v10 }
 0xab6   : > { %7736 = vmatprep.subr.bf16.mxu1 %v8302_v61 }
 0xab8   : > { %7715 = vmatpush3.bf16.msra.mxu0 %v8303_v50 }
 0xab9   : > { %7737 = vmatpush3.bf16.msra.mxu1 %v8304_v2  ;;  %7716 = vmatprep.subr.bf16.mxu0 %v8305_v3 }
 0xaba   : > { %7738 = vmatprep.subr.bf16.mxu1 %v8306_v40 }
 0xabc   : > { %7717 = vmatpush3.bf16.msra.mxu0 %v8307_v34 }
 0xabd   : > { %7739 = vmatpush3.bf16.msra.mxu1 %v8308_v41  ;;  %7718 = vmatprep.subr.bf16.mxu0 %v8309_v4 }
 0xabe   : > { %7740 = vmatprep.subr.bf16.mxu1 %v8310_v8 }
 0xac0   : > { %7719 = vmatpush3.bf16.msra.mxu0 %v8311_v5  ;;  %v8313_v5 = vld [vmem:[%s10239_s19] sm:$0xff]  }
 0xac1   : > { %7741 = vmatpush3.bf16.msra.mxu1 %v8312_v21  ;;  %7975 = vmatprep.subr.bf16.mxu0 %v8387_v1 }
 0xac3   : > { %6368 = vmatmul.mubr.bf16.vlgmr.msra.gmra.mrb[124].mxu0 %v5064_v22 }
 0xac4   : > { %6408 = vmatmul.mubr.bf16.vlgmr.msra.gmra.mrb[124].mxu1 %v5066_v23  ;;  %7979 = vmatprep.mubr.msk.bf16.mxu0 %vm8388_vm0, %v8387_v1  ;;  %v7308_v23 = vld [vmem:[%s10237_s17 + $0x1] sm:$0x1] }
 0xac5   : > { %7976 = vmatpush3.bf16.msra.mxu0 %v8313_v5 }
 0xac6   : > { %7977 = vmatprep.subr.bf16.mxu0 %v8387_v1  ;;  %v6440_v1 = vld [vmem:[%s10240_s20] sm:$0x1] }
 0xb36   : > { %v7588_v25 = vpop.f32.mrb[112].mxu0  ;;  %v7610_v26 = vpop.f32.mrb[112].mxu1 }
 0xb37   : > { %v7589_v12 = vpop.f32.mrb[113].mxu0  ;;  %v7611_v9 = vpop.f32.mrb[113].mxu1 }
 0xb38   : > { %v7590_v32 = vadd.f32 %v7589_v12, %v7588_v25  ;;  %v7612_v33 = vadd.f32 %v7611_v9, %v7610_v26  ;;  %v7591_v35 = vpop.f32.mrb[114].mxu0  ;;  %v7613_v13 = vpop.f32.mrb[114].mxu1  ;;  %v7309_v26 = vld [vmem:[%s10238_s18 + $0x1] sm:$0x1] }
 0xb39   : > { %v7592_v30 = vpop.f32.mrb[115].mxu0  ;;  %v7614_v36 = vpop.f32.mrb[115].mxu1 }
 0xb3a   : > { %v6130_v31 = vadd.f32 %v7590_v32, %v7179_v7 }
 0xb3c   : > { %v6170_v24 = vadd.f32 %v7612_v33, %v6130_v31 }
 0xb56   : > { %v7632_v57 = vpop.f32.mrb[116].mxu0  ;;  %v7654_v58 = vpop.f32.mrb[116].mxu1 }
 0xb57   : > { %v7633_v11 = vpop.f32.mrb[117].mxu0  ;;  %v7655_v59 = vpop.f32.mrb[117].mxu1 }
 0xb58   : > { %v7634_v42 = vadd.f32 %v7633_v11, %v7632_v57  ;;  %v7656_v15 = vadd.f32 %v7655_v59, %v7654_v58  ;;  %v7635_v18 = vpop.f32.mrb[118].mxu0  ;;  %v7657_v19 = vpop.f32.mrb[118].mxu1 }
 0xb59   : > { %v7636_v16 = vpop.f32.mrb[119].mxu0  ;;  %v7658_v43 = vpop.f32.mrb[119].mxu1 }
 0xb5a   : > { %v6210_v44 = vadd.f32 %v7634_v42, %v6170_v24 }
 0xb5c   : > { %v6250_v27 = vadd.f32 %v7656_v15, %v6210_v44 }
 0xb76   : > { %v7676_v29 = vpop.f32.mrb[120].mxu0 }
 0xb77   : > { %v7698_v46 = vpop.f32.mrb[120].mxu1  ;;  %v7677_v47 = vpop.f32.mrb[121].mxu0 }
 0xb78   : > { %v7678_v48 = vadd.f32 %v7677_v47, %v7676_v29  ;;  %v7699_v51 = vpop.f32.mrb[121].mxu1  ;;  %v7679_v52 = vpop.f32.mrb[122].mxu0 }
 0xb79   : > { %v7700_v28 = vadd.f32 %v7699_v51, %v7698_v46  ;;  %v7701_v53 = vpop.f32.mrb[122].mxu1  ;;  %v7680_v54 = vpop.f32.mrb[123].mxu0 }
 0xb7a   : > { %v6290_v55 = vadd.f32 %v7678_v48, %v6250_v27  ;;  %v7702_v14 = vpop.f32.mrb[123].mxu1 }
 0xb7c   : > { %v6330_v37 = vadd.f32 %v7700_v28, %v6290_v55 }
 0xb96   : > { %v7720_v56 = vpop.f32.mrb[124].mxu0 }
 0xb97   : > { %v7742_v6 = vpop.f32.mrb[124].mxu1  ;;  %v7721_v60 = vpop.f32.mrb[125].mxu0 }
 0xb98   : > { %v7722_v62 = vadd.f32 %v7721_v60, %v7720_v56  ;;  %v7743_v63 = vpop.f32.mrb[125].mxu1  ;;  %v7723_v39 = vpop.f32.mrb[126].mxu0 }
 0xb99   : > { %v7744_v49 = vadd.f32 %v7743_v63, %v7742_v6  ;;  %v7745_v10 = vpop.f32.mrb[126].mxu1  ;;  %v7724_v61 = vpop.f32.mrb[127].mxu0 }
 0xb9a   : > { %v6370_v50 = vadd.f32 %v7722_v62, %v6330_v37  ;;  %v7746_v0 = vpop.f32.mrb[127].mxu1 }
 0xb9c   : > { %v6410_v2 = vadd.f32 %v7744_v49, %v6370_v50 }
 0xb9e   : > { %v6415_v3 = vadd.f32 %v6410_v2, %v9621_v38  ;;  %v8314_v38 = vld [vmem:[%s10239_s19 + $0x8] sm:$0xff]  }
 0xb9f   : > { %7978 = vmatpush3.bf16.msra.mxu0 %v8314_v38 }
 0xba0   : > { %v6420_v40 = vsel %vm1501_vm4, %v6415_v3, 0.0 }
 0xba1   : > { %6421 = vadd.xlane.f32.xlu0 %v6420_v40 }
 0xc2e   : > { %v6422_v34 = vpop.xlane.xlu0 %6421 }
 0xc2f   : > { %v6423_v17 = vmul.f32 0.03125, %v6422_v34 }
 0xc31   : > { %v6424_v41 = vsub.f32 %v6415_v3, %v6423_v17 }
 0xc33   : > { %v6425_v4 = vmul.f32 %v6424_v41, %v6424_v41 }
 0xc35   : > { %v6426_v8 = vsel %vm1501_vm4, %v6425_v4, 0.0 }
 0xc36   : > { %6427 = vadd.xlane.f32.xlu1 %v6426_v8 }
 0xcc3   : > { %v6428_v20 = vpop.xlane.xlu1 %6427 }
 0xcc4   : > { %v6429_v21 = vmul.f32 0.03125, %v6428_v20 }
 0xcc6   : > { %v6430_v45 = vadd.f32 1e-05, %v6429_v21 }
 0xcc8   : > { %8321 = vrsqrt.f32 %v6430_v45 }
 0xcd2   : > { %v8322_v22 = vpop.eup %8321 }
 0xcd3   : > { %v6432_v25 = vmul.f32 %v8322_v22, %v6424_v41 }
 0xcd5   : > { %v6433_v7 = vmul.f32 %v7308_v23, %v6432_v25 }
 0xcd7   : > { %v6434_v12 = vadd.f32 %v7309_v26, %v6433_v7 }
 0xcd9   : > { %v6435_v9 = vpack.c.bf16 %v6434_v12, %v6434_v12 }
 0xcdb   : > { %7980 = vmatmul.mubr.msk.bf16.vlgmr.msra.gmra.mrb[128].mxu0 %vm707_vm1, %v6435_v9 }
 0xdae   : > { %v6490_v32 = vpop.f32.mrb[128].mxu0 }
 0xdaf   : > { %v6491_v33 = vadd.f32 %v6490_v32, %v6440_v1  ;;  %v7981_v35 = vpop.f32.mrb[129].mxu0 }
 0xdb0   : > { %v6493_v13 = vpop.f32.mrb[130].mxu0 }
 0xdb1   : > { %6496 = vst [vmem:[%s646_s3] sm:$0x1] %v6491_v33  ;;  %v7982_v30 = vpop.f32.mrb[131].mxu0 }
 0xdb2   : > { %8336 = shalt.err (!%p8333_p3)
}
 0xdb3   : > { %s8337_s28 = scalar_lea.hbm %s10178_s7, 16  ;;  %s8341_s23 = scalar_lea.hbm %s10241_s21, 32 }
 0xdb4   : > { %p8338_p4 = scmp.ne.s32.totalorder %s10178_s7, %s8337_s28  ;;  %p8342_p9 = scmp.lt.u32.totalorder %s10178_s7, %s10241_s21 }
 0xdb5   : > { %p8343_p10 = scmp.lt.u32.totalorder %s8341_s23, %s8337_s28  ;;  %p8345_p12 = scmp.lt.u32.totalorder %s8337_s28, %s10178_s7 }
 0xdb6   : > { %p8339_p7 = pnand %p8338_p4, %p8539_p5 }
 0xdb7   : > { %p8344_p11 = por %p8343_p10, %p8342_p9 }
 0xdb8   : > { %p8340_p8 = pneg %p8339_p7 }
 0xdb9   : > { %p8346_p13 = por %p8345_p12, %p8344_p11 }
 0xdbb   : > { %p8347_p0 = pnand %p8346_p13, %p8340_p8 }
 0xdbd   : > { %8350 = shalt.err (!%p8347_p0)
}
 0xdbe   : > { %7983 = dma.vmem_to_hbm [thread:$0]  (%p8539_p5), %s10180_s5, 16, %s10178_s7, %s6498_s26  }
 0xdbf PF: > { %p7989_p1 = scmp.ge.s32.totalorder %s8385_s24, 2  ;;  %s6522_s25 = sand.u32 1, %s8373_s1  }
 0xdc0   : > { %s6523_s22 = scalar_lea.sflag [#allocation4], %s6522_s25 }
 0xdc1   : > { %p7986_p2 = pnand %p7989_p1, %p8543_p6 }
 0xdc3   : > { %8368 = dma.done.wait (!%p7986_p2), %s6523_s22, 16  }
 0xdc4   : > { %8370 = vsyncadd (!%p7986_p2), %s6523_s22, 4294967280  ;;  %s10257_s24 = sld [smem:[#allocation7_spill]]  ;;  %s10258_s28 = sld [smem:[#allocation6_spill]] }
 0xdc5   : > { %s10259_s7 = sld [smem:[#allocation8_spill]]  ;;  %s10260_s1 = smov %s8377_s6 }
 0xdca   : > { %p33_p3 = scmp.ge.s32.totalorder %s10257_s24, 4   ;;  %s10261_s6 = smov %s10258_s28 }
 0xdcc   :  { %35 = sbr.rel (!%p33_p3) target bundleno = 7 (0x7), region = 151 }
 0xdd3   :  { %6527 = vsyncpa [#allocation4], 1 }
 0xdd4   :  { %6529 = vsyncpa [#allocation4 + $0x1], 1 }

</bundles_post_ra>
